<compile_context>
chip_gen: v7x
topology: tpu7x:2x2x1
jax: 0.10.0
libtpu: 0.0.40
codegen_flags: <defaults>
</compile_context>

<pallas_src>
import functools

import jax
import jax.numpy as jnp
from jax.experimental import pallas as pl
from jax.experimental.pallas import tpu as pltpu

EPS = 1e-5
MXU_DTYPE = jnp.bfloat16          # matmul-operand dtype (f32 accumulation)
ACT_DTYPE = jnp.bfloat16          # inter-layer activation storage dtype
VMEM_LIMIT = 48 * 1024 * 1024     # explicit scoped-VMEM budget (>16MiB v5e / 32MiB v6e-v7x defaults)


# ----------------------------------------------------------------------------
# In-kernel helpers
# ----------------------------------------------------------------------------
def _mm(a, b):
    return jnp.dot(a.astype(MXU_DTYPE), b.astype(MXU_DTYPE),
                   preferred_element_type=jnp.float32)


def _bn_rows(x, gamma, beta, relu, eps):
    """Training-mode BatchNorm over axis 0 (rows); two-pass stats in f32."""
    inv_m = 1.0 / x.shape[0]
    mean = jnp.sum(x, axis=0, keepdims=True) * inv_m
    d = x - mean
    var = jnp.sum(d * d, axis=0, keepdims=True) * inv_m    # biased variance
    y = d * jax.lax.rsqrt(var + eps)
    if gamma is not None:
        y = y * gamma + beta
    if relu:
        y = jnp.maximum(y, 0.0)
    return y


# ----------------------------------------------------------------------------
# Pallas kernels (one view per grid step; everything stays in VMEM)
# ----------------------------------------------------------------------------
def _conv_bn_kernel(p_ref, w_ref, gb_ref, o_ref, *, relu, eps):
    # conv (im2col matmul) + BN + optional ReLU
    acc = _mm(p_ref[...], w_ref[...])
    gb = gb_ref[...].astype(jnp.float32)
    o_ref[...] = _bn_rows(acc, gb[0:1], gb[1:2], relu, eps).astype(o_ref.dtype)


def _conv_bn_add_relu_kernel(p_ref, w_ref, gb_ref, id_ref, o_ref, *, eps):
    # conv + BN + residual add + ReLU  (BasicBlock tail, identity shortcut)
    acc = _mm(p_ref[...], w_ref[...])
    gb = gb_ref[...].astype(jnp.float32)
    y = _bn_rows(acc, gb[0:1], gb[1:2], False, eps)
    o_ref[...] = jnp.maximum(y + id_ref[...].astype(jnp.float32),
                             0.0).astype(o_ref.dtype)


def _conv_bn_down_add_relu_kernel(p_ref, w_ref, gb_ref, xs_ref, wd_ref, gbd_ref,
                                  o_ref, *, eps):
    # conv + BN  plus fused downsample (1x1 conv + BN) + add + ReLU
    acc = _mm(p_ref[...], w_ref[...])
    gb = gb_ref[...].astype(jnp.float32)
    y = _bn_rows(acc, gb[0:1], gb[1:2], False, eps)
    dacc = _mm(xs_ref[...], wd_ref[...])
    gbd = gbd_ref[...].astype(jnp.float32)
    idn = _bn_rows(dacc, gbd[0:1], gbd[1:2], False, eps)
    o_ref[...] = jnp.maximum(y + idn, 0.0).astype(o_ref.dtype)


def _head_kernel(feat_ref, w0_ref, w1_ref, w2_ref, pw0_ref, pw1_ref,
                 fc_gb_ref, fc_b2_ref, pr_gb_ref, pr_b1_ref,
                 z_ref, p_out_ref, *, eps):
    # Projection MLP (encoder.fc) + predictor fully fused; single grid step.
    fc_gb = fc_gb_ref[...].astype(jnp.float32)    # (4, dim): g0, b0, g1, b1
    pr_gb = pr_gb_ref[...].astype(jnp.float32)    # (2, pred_dim)
    b2 = fc_b2_ref[...].astype(jnp.float32)       # (1, dim)
    pb1 = pr_b1_ref[...].astype(jnp.float32)      # (1, dim)
    n_views = feat_ref.shape[0]
    for v in range(n_views):                      # static loop; BN stays per-view
        x = feat_ref[v]                           # (N, prev_dim)
        h = _bn_rows(_mm(x, w0_ref[...]), fc_gb[0:1], fc_gb[1:2], True, eps)
        h = _bn_rows(_mm(h, w1_ref[...]), fc_gb[2:3], fc_gb[3:4], True, eps)
        h = _mm(h, w2_ref[...]) + b2
        z = _bn_rows(h, None, None, False, eps)   # BatchNorm1d(dim, affine=False)
        z_ref[v] = z.astype(z_ref.dtype)
        q = _bn_rows(_mm(z, pw0_ref[...]), pr_gb[0:1], pr_gb[1:2], True, eps)
        p_out_ref[v] = (_mm(q, pw1_ref[...]) + pb1).astype(p_out_ref.dtype)


# ----------------------------------------------------------------------------
# Glue: im2col / pooling (plain JAX, fused by XLA)
# ----------------------------------------------------------------------------
def _im2col(x, kh, kw, stride, pad, pad_taps=0):
    # x: [V, N, H, W, C] -> patches [V, N*Ho*Wo, (kh*kw+pad_taps)*C]
    v, n, h, w, c = x.shape
    xp = jnp.pad(x, ((0, 0), (0, 0), (pad, pad), (pad, pad), (0, 0)))
    ho = (h + 2 * pad - kh) // stride + 1
    wo = (w + 2 * pad - kw) // stride + 1
    cols = []
    for i in range(kh):
        for j in range(kw):
            cols.append(
                xp[:, :, i:i + stride * ho:stride, j:j + stride * wo:stride, :])
    for _ in range(pad_taps):        # lane-friendly K pad folded into the stack
        cols.append(jnp.zeros_like(cols[0]))
    patches = jnp.stack(cols, axis=-2)   # [V, N, Ho, Wo, taps, C]
    return patches.reshape(v, n * ho * wo, (kh * kw + pad_taps) * c), ho, wo


def maxpool2d(x, k=3, stride=2, pad=1):
    v, n, h, w, c = x.shape
    xp = jnp.pad(x, ((0, 0), (0, 0), (pad, pad), (pad, pad), (0, 0)),
                 constant_values=-jnp.inf)
    ho = (h + 2 * pad - k) // stride + 1
    wo = (w + 2 * pad - k) // stride + 1
    out = None
    for i in range(k):
        for j in range(k):
            patch = xp[:, :, i:i + stride * ho:stride, j:j + stride * wo:stride, :]
            out = patch if out is None else jnp.maximum(out, patch)
    return out


# ----------------------------------------------------------------------------
# Fused conv+BN(+ReLU)(+residual)(+downsample) pallas_call wrapper
# ----------------------------------------------------------------------------
def conv_bn(x, w_hwio, gb, *, stride, pad, relu=True, identity=None, down=None):
    # x: [V, N, H, W, Cin] -> [V, N, Ho, Wo, Cout]; exactly one pallas_call.
    # `identity`: pre-computed residual rows [V, m, Cout] (added, then ReLU).
    # `down`: (x_strided_rows [V, m, Cin], w_down [Cin, Cout], gb_down [2, Cout])
    #         -> downsample conv+BN fused in-kernel, then add + ReLU.
    v, n = x.shape[0], x.shape[1]
    kh, kw, cin, cout = w_hwio.shape
    k_raw = kh * kw * cin
    pad_taps = 0
    if k_raw % 16 != 0:                       # bf16-packing-friendly contraction
        assert cin == 1, "only the 7x7 stem (Cin=1) needs contraction padding"
        pad_taps = ((k_raw + 63) // 64) * 64 - k_raw
    patches, ho, wo = _im2col(x.astype(MXU_DTYPE), kh, kw, stride, pad, pad_taps)
    m, k = patches.shape[1], patches.shape[2]
    w2d = w_hwio.reshape(k_raw, cout)
    if pad_taps:
        w2d = jnp.pad(w2d, ((0, pad_taps * cin), (0, 0)))   # tiny weight, not the patch array
    w2d = w2d.astype(MXU_DTYPE)

    in_specs = [
        pl.BlockSpec((None, m, k), lambda vi: (vi, 0, 0)),   # per-view patches
        pl.BlockSpec((k, cout), lambda vi: (0, 0)),          # shared weights
        pl.BlockSpec((2, cout), lambda vi: (0, 0)),          # packed gamma/beta
    ]
    args = [patches, w2d, gb]

    if down is not None:
        assert relu and identity is None      # residual tail always applies ReLU
        xs_rows, wd2d, gbd = down
        cind = xs_rows.shape[-1]
        kernel = functools.partial(_conv_bn_down_add_relu_kernel, eps=EPS)
        in_specs += [pl.BlockSpec((None, m, cind), lambda vi: (vi, 0, 0)),
                     pl.BlockSpec((cind, cout), lambda vi: (0, 0)),
                     pl.BlockSpec((2, cout), lambda vi: (0, 0))]
        args += [xs_rows, wd2d, gbd]
    elif identity is not None:
        assert relu                           # residual tail always applies ReLU
        kernel = functools.partial(_conv_bn_add_relu_kernel, eps=EPS)
        in_specs.append(pl.BlockSpec((None, m, cout), lambda vi: (vi, 0, 0)))
        args.append(identity)
    else:
        kernel = functools.partial(_conv_bn_kernel, relu=relu, eps=EPS)

    out = pl.pallas_call(
        kernel,
        grid=(v,),
        in_specs=in_specs,
        out_specs=pl.BlockSpec((None, m, cout), lambda vi: (vi, 0, 0)),
        out_shape=jax.ShapeDtypeStruct((v, m, cout), ACT_DTYPE),
        compiler_params=pltpu.CompilerParams(
            dimension_semantics=("parallel",),    # views -> both TCs on v7x
            vmem_limit_bytes=VMEM_LIMIT),
    )(*args)
    return out.reshape(v, n, ho, wo, cout)


# ----------------------------------------------------------------------------
# Fused projection-MLP + predictor head (single grid step)
# ----------------------------------------------------------------------------
def head(P, feat):
    # feat: [V, N, 128] f32 -> (z [V, N, 128], p [V, N, 128]) f32; one pallas_call.
    v, n, d = feat.shape
    dim = P["fc_w2"].shape[1]
    pred = P["pr_w0"].shape[1]

    def full(shape):
        nd = len(shape)
        return pl.BlockSpec(shape, lambda i, nd=nd: (0,) * nd)

    args = (feat,
            P["fc_w0"].astype(MXU_DTYPE), P["fc_w1"].astype(MXU_DTYPE),
            P["fc_w2"].astype(MXU_DTYPE),
            P["pr_w0"].astype(MXU_DTYPE), P["pr_w1"].astype(MXU_DTYPE),
            P["fc_gb"], P["fc_bias2"], P["pr_gb"], P["pr_bias1"])
    in_specs = [full((v, n, d)),
                full((d, d)), full((d, d)), full((d, dim)),
                full((dim, pred)), full((pred, dim)),
                full((4, d)), full((1, dim)), full((2, pred)), full((1, dim))]
    out_specs = (full((v, n, dim)), full((v, n, dim)))
    out_shape = (jax.ShapeDtypeStruct((v, n, dim), jnp.float32),
                 jax.ShapeDtypeStruct((v, n, dim), jnp.float32))

    z, p = pl.pallas_call(
        functools.partial(_head_kernel, eps=EPS),
        grid=(1,),
        in_specs=in_specs,
        out_specs=out_specs,
        out_shape=out_shape,
        compiler_params=pltpu.CompilerParams(
            dimension_semantics=("arbitrary",),
            vmem_limit_bytes=VMEM_LIMIT),
    )(*args)
    return z, p


# ----------------------------------------------------------------------------
# Model: truncated ResNet18 encoder + projection MLP + predictor
# ----------------------------------------------------------------------------
def basic_block(x, p, stride):
    out = conv_bn(x, p["conv1_w"], p["bn1_gb"], stride=stride, pad=1, relu=True)
    v, n, ho, wo, cout = out.shape
    m = n * ho * wo
    if "down_w" in p:
        cin = x.shape[-1]
        xs_rows = x[:, :, ::stride, ::stride, :].reshape(v, m, cin)
        down = (xs_rows,
                p["down_w"].reshape(cin, cout).astype(MXU_DTYPE),
                p["down_gb"])
        return conv_bn(out, p["conv2_w"], p["bn2_gb"], stride=1, pad=1, down=down)
    identity = x.reshape(v, m, cout)
    return conv_bn(out, p["conv2_w"], p["bn2_gb"], stride=1, pad=1,
                   identity=identity)


def encoder_backbone(P, x):
    # x: [V, N, H, W, 1]  ->  features [V, N, 128]
    x = conv_bn(x, P["conv1_w"], P["bn1_gb"], stride=2, pad=3, relu=True)  # stem
    x = maxpool2d(x)                                                        # 3x3, s2, p1
    x = basic_block(x, P["layer1"][0], stride=1)
    x = basic_block(x, P["layer1"][1], stride=1)
    x = basic_block(x, P["layer2"][0], stride=2)
    x = basic_block(x, P["layer2"][1], stride=1)
    # layer3/layer4 = Identity; adaptive avg pool + flatten (f32 accumulation)
    return jnp.mean(x.astype(jnp.float32), axis=(2, 3))


def simsiam_forward(P, orig, x1, anom):
    # Stack the three views on a leading axis; that axis is the Pallas grid
    # axis for every conv, so BatchNorm statistics stay per-view (identical
    # semantics to three separate encoder calls in the PyTorch module).
    x = jnp.stack([orig, x1, anom], axis=0)                   # [3, N, 1, H, W]
    x = jnp.transpose(x, (0, 1, 3, 4, 2)).astype(ACT_DTYPE)   # [3, N, H, W, 1]
    feat = encoder_backbone(P, x)                             # [3, N, 128] f32
    z, p = head(P, feat)                                      # [3, N, 128] each
    z = jax.lax.stop_gradient(z)                              # .detach()
    return (p[0], p[1], p[2], z[0], z[1], z[2])


# ----------------------------------------------------------------------------
# Deterministic parameter init (shapes match the PyTorch module)
# ----------------------------------------------------------------------------
def init_params(key):
    keys = iter(jax.random.split(key, 64))

    def nrm(shape, scale=0.05):
        return scale * jax.random.normal(next(keys), shape, dtype=jnp.float32)

    def bn_gb(c, zero_gamma=False):
        g = jnp.zeros((c,), jnp.float32) if zero_gamma else jnp.ones((c,), jnp.float32)
        return jnp.stack([g, jnp.zeros((c,), jnp.float32)], axis=0)   # (2, c)

    def block(cin, cout, downsample):
        p = {
            "conv1_w": nrm((3, 3, cin, cout)),
            "bn1_gb": bn_gb(cout),
            "conv2_w": nrm((3, 3, cout, cout)),
            # zero_init_residual=True -> last BN gamma of each block is 0
            "bn2_gb": bn_gb(cout, zero_gamma=True),
        }
        if downsample:
            p["down_w"] = nrm((1, 1, cin, cout))
            p["down_gb"] = bn_gb(cout)
        return p

    P = {
        "conv1_w": nrm((7, 7, 1, 64)),   # replaced conv1: Conv2d(1, 64, 7, 2, 3)
        "bn1_gb": bn_gb(64),
        "layer1": [block(64, 64, False), block(64, 64, False)],
        "layer2": [block(64, 128, True), block(128, 128, False)],
        # encoder.fc: Linear(128,128,no bias)/BN/ReLU x2, Linear(128,128,bias),
        #             BatchNorm1d(128, affine=False)
        "fc_w0": nrm((128, 128)),
        "fc_w1": nrm((128, 128)),
        "fc_w2": nrm((128, 128)),
        "fc_gb": jnp.concatenate([bn_gb(128), bn_gb(128)], axis=0),   # (4,128)=g0,b0,g1,b1
        "fc_bias2": jnp.zeros((1, 128), jnp.float32),
        # predictor: Linear(128,64,no bias)/BN/ReLU, Linear(64,128)
        "pr_w0": nrm((128, 64)),
        "pr_gb": bn_gb(64),
        "pr_w1": nrm((64, 128)),
        "pr_bias1": nrm((1, 128)),
    }
    return P


if __name__ == "__main__":
    root = jax.random.PRNGKey(0)
    pkey, dkey = jax.random.split(root)
    params = init_params(pkey)

    k1, k2, k3 = jax.random.split(dkey, 3)
    orig = jax.random.normal(k1, (2, 1, 16, 16), jnp.float32)
    x1 = jax.random.normal(k2, (2, 1, 16, 16), jnp.float32)
    anom = jax.random.normal(k3, (2, 1, 16, 16), jnp.float32)

    fwd = jax.jit(simsiam_forward)
    outs = fwd(params, orig, x1, anom)
    jax.block_until_ready(outs)

    p_org, p1, p_anom, z_org, z1, z_anom = outs
    assert p_org.shape == (2, 128) and p1.shape == (2, 128) and p_anom.shape == (2, 128)
    assert z_org.shape == (2, 128) and z1.shape == (2, 128) and z_anom.shape == (2, 128)
    assert all(bool(jnp.all(jnp.isfinite(o))) for o in outs)
    print("KERNEL_OK")
</pallas_src>

<mosaic_0001>
module attributes {stable_mosaic.version = 11 : i64} {
  func.func @_conv_bn_kernel(%arg0: i32, %arg1: memref<1x128x64xbf16, #tpu.memory_space<vmem>>, %arg2: memref<64x64xbf16, #tpu.memory_space<vmem>>, %arg3: memref<2x64xf32, #tpu.memory_space<vmem>>, %arg4: memref<1x128x64xbf16, #tpu.memory_space<vmem>>) attributes {dimension_semantics = [#tpu.dimension_semantics<parallel>], iteration_bounds = array<i64: 3>, scalar_prefetch = 0 : i64, scratch_operands = 0 : i64, tpu.core_type = #tpu.core_type<tc>, window_params = [{transform_indices = @transform_0, window_bounds = array<i64: 1, 128, 64>}, {pipeline_mode = #tpu.pipeline_mode<synchronous>, transform_indices = @transform_1, window_bounds = array<i64: 64, 64>}, {pipeline_mode = #tpu.pipeline_mode<synchronous>, transform_indices = @transform_2, window_bounds = array<i64: 2, 64>}, {transform_indices = @transform_3, window_bounds = array<i64: 1, 128, 64>}]} {
    %c0 = arith.constant 0 : index
    %c0_0 = arith.constant 0 : index
    %c0_1 = arith.constant 0 : index
    %0 = vector.load %arg1[%c0, %c0_0, %c0_1] : memref<1x128x64xbf16, #tpu.memory_space<vmem>>, vector<1x128x64xbf16>
    %1 = vector.shape_cast %0 : vector<1x128x64xbf16> to vector<128x64xbf16>
    %c0_2 = arith.constant 0 : index
    %c0_3 = arith.constant 0 : index
    %2 = vector.load %arg2[%c0_2, %c0_3] : memref<64x64xbf16, #tpu.memory_space<vmem>>, vector<64x64xbf16>
    %cst = arith.constant dense<0.000000e+00> : vector<128x64xf32>
    %3 = tpu.matmul %1, %2, %cst {dimension_numbers = #tpu.dot_dimension_numbers<[1], [0], [0], [1], [0, 0, 1, 1], [], []>} : vector<128x64xbf16>, vector<64x64xbf16>, vector<128x64xf32> -> vector<128x64xf32>
    %c0_4 = arith.constant 0 : index
    %c0_5 = arith.constant 0 : index
    %4 = vector.load %arg3[%c0_4, %c0_5] : memref<2x64xf32, #tpu.memory_space<vmem>>, vector<2x64xf32>
    %5 = vector.extract_strided_slice %4 {offsets = [0, 0], sizes = [1, 64], strides = [1, 1]} : vector<2x64xf32> to vector<1x64xf32>
    %6 = vector.extract_strided_slice %4 {offsets = [1, 0], sizes = [1, 64], strides = [1, 1]} : vector<2x64xf32> to vector<1x64xf32>
    %cst_6 = arith.constant dense<0.000000e+00> : vector<64xf32>
    %7 = vector.multi_reduction <add>, %3, %cst_6 [0] : vector<128x64xf32> to vector<64xf32>
    %8 = vector.shape_cast %7 : vector<64xf32> to vector<1x64xf32>
    %cst_7 = arith.constant 7.812500e-03 : f32
    %9 = vector.broadcast %cst_7 : f32 to vector<1x64xf32>
    %10 = arith.mulf %8, %9 : vector<1x64xf32>
    %11 = vector.broadcast %10 : vector<1x64xf32> to vector<128x64xf32>
    %12 = arith.subf %3, %11 : vector<128x64xf32>
    %13 = arith.mulf %12, %12 : vector<128x64xf32>
    %cst_8 = arith.constant dense<0.000000e+00> : vector<64xf32>
    %14 = vector.multi_reduction <add>, %13, %cst_8 [0] : vector<128x64xf32> to vector<64xf32>
    %15 = vector.shape_cast %14 : vector<64xf32> to vector<1x64xf32>
    %cst_9 = arith.constant 7.812500e-03 : f32
    %16 = vector.broadcast %cst_9 : f32 to vector<1x64xf32>
    %17 = arith.mulf %15, %16 : vector<1x64xf32>
    %cst_10 = arith.constant 9.99999974E-6 : f32
    %18 = vector.broadcast %cst_10 : f32 to vector<1x64xf32>
    %19 = arith.addf %17, %18 : vector<1x64xf32>
    %20 = math.rsqrt %19 : vector<1x64xf32>
    %21 = vector.broadcast %20 : vector<1x64xf32> to vector<128x64xf32>
    %22 = arith.mulf %12, %21 : vector<128x64xf32>
    %23 = vector.broadcast %5 : vector<1x64xf32> to vector<128x64xf32>
    %24 = arith.mulf %22, %23 : vector<128x64xf32>
    %25 = vector.broadcast %6 : vector<1x64xf32> to vector<128x64xf32>
    %26 = arith.addf %24, %25 : vector<128x64xf32>
    %cst_11 = arith.constant 0.000000e+00 : f32
    %27 = vector.broadcast %cst_11 : f32 to vector<128x64xf32>
    %28 = arith.maximumf %26, %27 : vector<128x64xf32>
    %29 = arith.truncf %28 : vector<128x64xf32> to vector<128x64xbf16>
    %c0_12 = arith.constant 0 : index
    %c0_13 = arith.constant 0 : index
    %c0_14 = arith.constant 0 : index
    %30 = vector.load %arg4[%c0_12, %c0_13, %c0_14] : memref<1x128x64xbf16, #tpu.memory_space<vmem>>, vector<1x128x64xbf16>
    %31 = vector.shape_cast %30 : vector<1x128x64xbf16> to vector<128x64xbf16>
    %32 = vector.shape_cast %29 : vector<128x64xbf16> to vector<1x128x64xbf16>
    tpu.vector_store %arg4[%c0_12, %c0_13, %c0_14], %32 {strides = array<i32>} : memref<1x128x64xbf16, #tpu.memory_space<vmem>>, vector<1x128x64xbf16>,
    return
  }
  func.func @transform_0(%arg0: i32) -> (i32, i32, i32) {
    %c0_i32 = arith.constant 0 : i32
    %c0_i32_0 = arith.constant 0 : i32
    %c0_i32_1 = arith.constant 0 : i32
    return %arg0, %c0_i32, %c0_i32_0 : i32, i32, i32
  }
  func.func @transform_1(%arg0: i32) -> (i32, i32) {
    %c0_i32 = arith.constant 0 : i32
    %c0_i32_0 = arith.constant 0 : i32
    %c0_i32_1 = arith.constant 0 : i32
    return %c0_i32, %c0_i32_0 : i32, i32
  }
  func.func @transform_2(%arg0: i32) -> (i32, i32) {
    %c0_i32 = arith.constant 0 : i32
    %c0_i32_0 = arith.constant 0 : i32
    %c0_i32_1 = arith.constant 0 : i32
    return %c0_i32, %c0_i32_0 : i32, i32
  }
  func.func @transform_3(%arg0: i32) -> (i32, i32, i32) {
    %c0_i32 = arith.constant 0 : i32
    %c0_i32_0 = arith.constant 0 : i32
    %c0_i32_1 = arith.constant 0 : i32
    return %arg0, %c0_i32, %c0_i32_0 : i32, i32, i32
  }
}

module attributes {stable_mosaic.version = 11 : i64} {
  func.func @_conv_bn_kernel(%arg0: i32, %arg1: memref<1x32x576xbf16, #tpu.memory_space<vmem>>, %arg2: memref<576x64xbf16, #tpu.memory_space<vmem>>, %arg3: memref<2x64xf32, #tpu.memory_space<vmem>>, %arg4: memref<1x32x64xbf16, #tpu.memory_space<vmem>>) attributes {dimension_semantics = [#tpu.dimension_semantics<parallel>], iteration_bounds = array<i64: 3>, scalar_prefetch = 0 : i64, scratch_operands = 0 : i64, tpu.core_type = #tpu.core_type<tc>, window_params = [{transform_indices = @transform_0, window_bounds = array<i64: 1, 32, 576>}, {pipeline_mode = #tpu.pipeline_mode<synchronous>, transform_indices = @transform_1, window_bounds = array<i64: 576, 64>}, {pipeline_mode = #tpu.pipeline_mode<synchronous>, transform_indices = @transform_2, window_bounds = array<i64: 2, 64>}, {transform_indices = @transform_3, window_bounds = array<i64: 1, 32, 64>}]} {
    %c0 = arith.constant 0 : index
    %c0_0 = arith.constant 0 : index
    %c0_1 = arith.constant 0 : index
    %0 = vector.load %arg1[%c0, %c0_0, %c0_1] : memref<1x32x576xbf16, #tpu.memory_space<vmem>>, vector<1x32x576xbf16>
    %1 = vector.shape_cast %0 : vector<1x32x576xbf16> to vector<32x576xbf16>
    %c0_2 = arith.constant 0 : index
    %c0_3 = arith.constant 0 : index
    %2 = vector.load %arg2[%c0_2, %c0_3] : memref<576x64xbf16, #tpu.memory_space<vmem>>, vector<576x64xbf16>
    %cst = arith.constant dense<0.000000e+00> : vector<32x64xf32>
    %3 = tpu.matmul %1, %2, %cst {dimension_numbers = #tpu.dot_dimension_numbers<[1], [0], [0], [1], [0, 0, 1, 1], [], []>} : vector<32x576xbf16>, vector<576x64xbf16>, vector<32x64xf32> -> vector<32x64xf32>
    %c0_4 = arith.constant 0 : index
    %c0_5 = arith.constant 0 : index
    %4 = vector.load %arg3[%c0_4, %c0_5] : memref<2x64xf32, #tpu.memory_space<vmem>>, vector<2x64xf32>
    %5 = vector.extract_strided_slice %4 {offsets = [0, 0], sizes = [1, 64], strides = [1, 1]} : vector<2x64xf32> to vector<1x64xf32>
    %6 = vector.extract_strided_slice %4 {offsets = [1, 0], sizes = [1, 64], strides = [1, 1]} : vector<2x64xf32> to vector<1x64xf32>
    %cst_6 = arith.constant dense<0.000000e+00> : vector<64xf32>
    %7 = vector.multi_reduction <add>, %3, %cst_6 [0] : vector<32x64xf32> to vector<64xf32>
    %8 = vector.shape_cast %7 : vector<64xf32> to vector<1x64xf32>
    %cst_7 = arith.constant 3.125000e-02 : f32
    %9 = vector.broadcast %cst_7 : f32 to vector<1x64xf32>
    %10 = arith.mulf %8, %9 : vector<1x64xf32>
    %11 = vector.broadcast %10 : vector<1x64xf32> to vector<32x64xf32>
    %12 = arith.subf %3, %11 : vector<32x64xf32>
    %13 = arith.mulf %12, %12 : vector<32x64xf32>
    %cst_8 = arith.constant dense<0.000000e+00> : vector<64xf32>
    %14 = vector.multi_reduction <add>, %13, %cst_8 [0] : vector<32x64xf32> to vector<64xf32>
    %15 = vector.shape_cast %14 : vector<64xf32> to vector<1x64xf32>
    %cst_9 = arith.constant 3.125000e-02 : f32
    %16 = vector.broadcast %cst_9 : f32 to vector<1x64xf32>
    %17 = arith.mulf %15, %16 : vector<1x64xf32>
    %cst_10 = arith.constant 9.99999974E-6 : f32
    %18 = vector.broadcast %cst_10 : f32 to vector<1x64xf32>
    %19 = arith.addf %17, %18 : vector<1x64xf32>
    %20 = math.rsqrt %19 : vector<1x64xf32>
    %21 = vector.broadcast %20 : vector<1x64xf32> to vector<32x64xf32>
    %22 = arith.mulf %12, %21 : vector<32x64xf32>
    %23 = vector.broadcast %5 : vector<1x64xf32> to vector<32x64xf32>
    %24 = arith.mulf %22, %23 : vector<32x64xf32>
    %25 = vector.broadcast %6 : vector<1x64xf32> to vector<32x64xf32>
    %26 = arith.addf %24, %25 : vector<32x64xf32>
    %cst_11 = arith.constant 0.000000e+00 : f32
    %27 = vector.broadcast %cst_11 : f32 to vector<32x64xf32>
    %28 = arith.maximumf %26, %27 : vector<32x64xf32>
    %29 = arith.truncf %28 : vector<32x64xf32> to vector<32x64xbf16>
    %c0_12 = arith.constant 0 : index
    %c0_13 = arith.constant 0 : index
    %c0_14 = arith.constant 0 : index
    %30 = vector.load %arg4[%c0_12, %c0_13, %c0_14] : memref<1x32x64xbf16, #tpu.memory_space<vmem>>, vector<1x32x64xbf16>
    %31 = vector.shape_cast %30 : vector<1x32x64xbf16> to vector<32x64xbf16>
    %32 = vector.shape_cast %29 : vector<32x64xbf16> to vector<1x32x64xbf16>
    tpu.vector_store %arg4[%c0_12, %c0_13, %c0_14], %32 {strides = array<i32>} : memref<1x32x64xbf16, #tpu.memory_space<vmem>>, vector<1x32x64xbf16>,
    return
  }
  func.func @transform_0(%arg0: i32) -> (i32, i32, i32) {
    %c0_i32 = arith.constant 0 : i32
    %c0_i32_0 = arith.constant 0 : i32
    %c0_i32_1 = arith.constant 0 : i32
    return %arg0, %c0_i32, %c0_i32_0 : i32, i32, i32
  }
  func.func @transform_1(%arg0: i32) -> (i32, i32) {
    %c0_i32 = arith.constant 0 : i32
    %c0_i32_0 = arith.constant 0 : i32
    %c0_i32_1 = arith.constant 0 : i32
    return %c0_i32, %c0_i32_0 : i32, i32
  }
  func.func @transform_2(%arg0: i32) -> (i32, i32) {
    %c0_i32 = arith.constant 0 : i32
    %c0_i32_0 = arith.constant 0 : i32
    %c0_i32_1 = arith.constant 0 : i32
    return %c0_i32, %c0_i32_0 : i32, i32
  }
  func.func @transform_3(%arg0: i32) -> (i32, i32, i32) {
    %c0_i32 = arith.constant 0 : i32
    %c0_i32_0 = arith.constant 0 : i32
    %c0_i32_1 = arith.constant 0 : i32
    return %arg0, %c0_i32, %c0_i32_0 : i32, i32, i32
  }
}

module attributes {stable_mosaic.version = 11 : i64} {
  func.func @_conv_bn_add_relu_kernel(%arg0: i32, %arg1: memref<1x32x576xbf16, #tpu.memory_space<vmem>>, %arg2: memref<576x64xbf16, #tpu.memory_space<vmem>>, %arg3: memref<2x64xf32, #tpu.memory_space<vmem>>, %arg4: memref<1x32x64xbf16, #tpu.memory_space<vmem>>, %arg5: memref<1x32x64xbf16, #tpu.memory_space<vmem>>) attributes {dimension_semantics = [#tpu.dimension_semantics<parallel>], iteration_bounds = array<i64: 3>, scalar_prefetch = 0 : i64, scratch_operands = 0 : i64, tpu.core_type = #tpu.core_type<tc>, window_params = [{transform_indices = @transform_0, window_bounds = array<i64: 1, 32, 576>}, {pipeline_mode = #tpu.pipeline_mode<synchronous>, transform_indices = @transform_1, window_bounds = array<i64: 576, 64>}, {pipeline_mode = #tpu.pipeline_mode<synchronous>, transform_indices = @transform_2, window_bounds = array<i64: 2, 64>}, {transform_indices = @transform_3, window_bounds = array<i64: 1, 32, 64>}, {transform_indices = @transform_4, window_bounds = array<i64: 1, 32, 64>}]} {
    %c0 = arith.constant 0 : index
    %c0_0 = arith.constant 0 : index
    %c0_1 = arith.constant 0 : index
    %0 = vector.load %arg1[%c0, %c0_0, %c0_1] : memref<1x32x576xbf16, #tpu.memory_space<vmem>>, vector<1x32x576xbf16>
    %1 = vector.shape_cast %0 : vector<1x32x576xbf16> to vector<32x576xbf16>
    %c0_2 = arith.constant 0 : index
    %c0_3 = arith.constant 0 : index
    %2 = vector.load %arg2[%c0_2, %c0_3] : memref<576x64xbf16, #tpu.memory_space<vmem>>, vector<576x64xbf16>
    %cst = arith.constant dense<0.000000e+00> : vector<32x64xf32>
    %3 = tpu.matmul %1, %2, %cst {dimension_numbers = #tpu.dot_dimension_numbers<[1], [0], [0], [1], [0, 0, 1, 1], [], []>} : vector<32x576xbf16>, vector<576x64xbf16>, vector<32x64xf32> -> vector<32x64xf32>
    %c0_4 = arith.constant 0 : index
    %c0_5 = arith.constant 0 : index
    %4 = vector.load %arg3[%c0_4, %c0_5] : memref<2x64xf32, #tpu.memory_space<vmem>>, vector<2x64xf32>
    %5 = vector.extract_strided_slice %4 {offsets = [0, 0], sizes = [1, 64], strides = [1, 1]} : vector<2x64xf32> to vector<1x64xf32>
    %6 = vector.extract_strided_slice %4 {offsets = [1, 0], sizes = [1, 64], strides = [1, 1]} : vector<2x64xf32> to vector<1x64xf32>
    %cst_6 = arith.constant dense<0.000000e+00> : vector<64xf32>
    %7 = vector.multi_reduction <add>, %3, %cst_6 [0] : vector<32x64xf32> to vector<64xf32>
    %8 = vector.shape_cast %7 : vector<64xf32> to vector<1x64xf32>
    %cst_7 = arith.constant 3.125000e-02 : f32
    %9 = vector.broadcast %cst_7 : f32 to vector<1x64xf32>
    %10 = arith.mulf %8, %9 : vector<1x64xf32>
    %11 = vector.broadcast %10 : vector<1x64xf32> to vector<32x64xf32>
    %12 = arith.subf %3, %11 : vector<32x64xf32>
    %13 = arith.mulf %12, %12 : vector<32x64xf32>
    %cst_8 = arith.constant dense<0.000000e+00> : vector<64xf32>
    %14 = vector.multi_reduction <add>, %13, %cst_8 [0] : vector<32x64xf32> to vector<64xf32>
    %15 = vector.shape_cast %14 : vector<64xf32> to vector<1x64xf32>
    %cst_9 = arith.constant 3.125000e-02 : f32
    %16 = vector.broadcast %cst_9 : f32 to vector<1x64xf32>
    %17 = arith.mulf %15, %16 : vector<1x64xf32>
    %cst_10 = arith.constant 9.99999974E-6 : f32
    %18 = vector.broadcast %cst_10 : f32 to vector<1x64xf32>
    %19 = arith.addf %17, %18 : vector<1x64xf32>
    %20 = math.rsqrt %19 : vector<1x64xf32>
    %21 = vector.broadcast %20 : vector<1x64xf32> to vector<32x64xf32>
    %22 = arith.mulf %12, %21 : vector<32x64xf32>
    %23 = vector.broadcast %5 : vector<1x64xf32> to vector<32x64xf32>
    %24 = arith.mulf %22, %23 : vector<32x64xf32>
    %25 = vector.broadcast %6 : vector<1x64xf32> to vector<32x64xf32>
    %26 = arith.addf %24, %25 : vector<32x64xf32>
    %c0_11 = arith.constant 0 : index
    %c0_12 = arith.constant 0 : index
    %c0_13 = arith.constant 0 : index
    %27 = vector.load %arg4[%c0_11, %c0_12, %c0_13] : memref<1x32x64xbf16, #tpu.memory_space<vmem>>, vector<1x32x64xbf16>
    %28 = vector.shape_cast %27 : vector<1x32x64xbf16> to vector<32x64xbf16>
    %29 = arith.extf %28 : vector<32x64xbf16> to vector<32x64xf32>
    %30 = arith.addf %26, %29 : vector<32x64xf32>
    %cst_14 = arith.constant 0.000000e+00 : f32
    %31 = vector.broadcast %cst_14 : f32 to vector<32x64xf32>
    %32 = arith.maximumf %30, %31 : vector<32x64xf32>
    %33 = arith.truncf %32 : vector<32x64xf32> to vector<32x64xbf16>
    %c0_15 = arith.constant 0 : index
    %c0_16 = arith.constant 0 : index
    %c0_17 = arith.constant 0 : index
    %34 = vector.load %arg5[%c0_15, %c0_16, %c0_17] : memref<1x32x64xbf16, #tpu.memory_space<vmem>>, vector<1x32x64xbf16>
    %35 = vector.shape_cast %34 : vector<1x32x64xbf16> to vector<32x64xbf16>
    %36 = vector.shape_cast %33 : vector<32x64xbf16> to vector<1x32x64xbf16>
    tpu.vector_store %arg5[%c0_15, %c0_16, %c0_17], %36 {strides = array<i32>} : memref<1x32x64xbf16, #tpu.memory_space<vmem>>, vector<1x32x64xbf16>,
    return
  }
  func.func @transform_0(%arg0: i32) -> (i32, i32, i32) {
    %c0_i32 = arith.constant 0 : i32
    %c0_i32_0 = arith.constant 0 : i32
    %c0_i32_1 = arith.constant 0 : i32
    return %arg0, %c0_i32, %c0_i32_0 : i32, i32, i32
  }
  func.func @transform_1(%arg0: i32) -> (i32, i32) {
    %c0_i32 = arith.constant 0 : i32
    %c0_i32_0 = arith.constant 0 : i32
    %c0_i32_1 = arith.constant 0 : i32
    return %c0_i32, %c0_i32_0 : i32, i32
  }
  func.func @transform_2(%arg0: i32) -> (i32, i32) {
    %c0_i32 = arith.constant 0 : i32
    %c0_i32_0 = arith.constant 0 : i32
    %c0_i32_1 = arith.constant 0 : i32
    return %c0_i32, %c0_i32_0 : i32, i32
  }
  func.func @transform_3(%arg0: i32) -> (i32, i32, i32) {
    %c0_i32 = arith.constant 0 : i32
    %c0_i32_0 = arith.constant 0 : i32
    %c0_i32_1 = arith.constant 0 : i32
    return %arg0, %c0_i32, %c0_i32_0 : i32, i32, i32
  }
  func.func @transform_4(%arg0: i32) -> (i32, i32, i32) {
    %c0_i32 = arith.constant 0 : i32
    %c0_i32_0 = arith.constant 0 : i32
    %c0_i32_1 = arith.constant 0 : i32
    return %arg0, %c0_i32, %c0_i32_0 : i32, i32, i32
  }
}

module attributes {stable_mosaic.version = 11 : i64} {
  func.func @_conv_bn_kernel(%arg0: i32, %arg1: memref<1x8x576xbf16, #tpu.memory_space<vmem>>, %arg2: memref<576x128xbf16, #tpu.memory_space<vmem>>, %arg3: memref<2x128xf32, #tpu.memory_space<vmem>>, %arg4: memref<1x8x128xbf16, #tpu.memory_space<vmem>>) attributes {dimension_semantics = [#tpu.dimension_semantics<parallel>], iteration_bounds = array<i64: 3>, scalar_prefetch = 0 : i64, scratch_operands = 0 : i64, tpu.core_type = #tpu.core_type<tc>, window_params = [{transform_indices = @transform_0, window_bounds = array<i64: 1, 8, 576>}, {pipeline_mode = #tpu.pipeline_mode<synchronous>, transform_indices = @transform_1, window_bounds = array<i64: 576, 128>}, {pipeline_mode = #tpu.pipeline_mode<synchronous>, transform_indices = @transform_2, window_bounds = array<i64: 2, 128>}, {transform_indices = @transform_3, window_bounds = array<i64: 1, 8, 128>}]} {
    %c0 = arith.constant 0 : index
    %c0_0 = arith.constant 0 : index
    %c0_1 = arith.constant 0 : index
    %0 = vector.load %arg1[%c0, %c0_0, %c0_1] : memref<1x8x576xbf16, #tpu.memory_space<vmem>>, vector<1x8x576xbf16>
    %1 = vector.shape_cast %0 : vector<1x8x576xbf16> to vector<8x576xbf16>
    %c0_2 = arith.constant 0 : index
    %c0_3 = arith.constant 0 : index
    %2 = vector.load %arg2[%c0_2, %c0_3] : memref<576x128xbf16, #tpu.memory_space<vmem>>, vector<576x128xbf16>
    %cst = arith.constant dense<0.000000e+00> : vector<8x128xf32>
    %3 = tpu.matmul %1, %2, %cst {dimension_numbers = #tpu.dot_dimension_numbers<[1], [0], [0], [1], [0, 0, 1, 1], [], []>} : vector<8x576xbf16>, vector<576x128xbf16>, vector<8x128xf32> -> vector<8x128xf32>
    %c0_4 = arith.constant 0 : index
    %c0_5 = arith.constant 0 : index
    %4 = vector.load %arg3[%c0_4, %c0_5] : memref<2x128xf32, #tpu.memory_space<vmem>>, vector<2x128xf32>
    %5 = vector.extract_strided_slice %4 {offsets = [0, 0], sizes = [1, 128], strides = [1, 1]} : vector<2x128xf32> to vector<1x128xf32>
    %6 = vector.extract_strided_slice %4 {offsets = [1, 0], sizes = [1, 128], strides = [1, 1]} : vector<2x128xf32> to vector<1x128xf32>
    %cst_6 = arith.constant dense<0.000000e+00> : vector<128xf32>
    %7 = vector.multi_reduction <add>, %3, %cst_6 [0] : vector<8x128xf32> to vector<128xf32>
    %8 = vector.shape_cast %7 : vector<128xf32> to vector<1x128xf32>
    %cst_7 = arith.constant 1.250000e-01 : f32
    %9 = vector.broadcast %cst_7 : f32 to vector<1x128xf32>
    %10 = arith.mulf %8, %9 : vector<1x128xf32>
    %11 = vector.broadcast %10 : vector<1x128xf32> to vector<8x128xf32>
    %12 = arith.subf %3, %11 : vector<8x128xf32>
    %13 = arith.mulf %12, %12 : vector<8x128xf32>
    %cst_8 = arith.constant dense<0.000000e+00> : vector<128xf32>
    %14 = vector.multi_reduction <add>, %13, %cst_8 [0] : vector<8x128xf32> to vector<128xf32>
    %15 = vector.shape_cast %14 : vector<128xf32> to vector<1x128xf32>
    %cst_9 = arith.constant 1.250000e-01 : f32
    %16 = vector.broadcast %cst_9 : f32 to vector<1x128xf32>
    %17 = arith.mulf %15, %16 : vector<1x128xf32>
    %cst_10 = arith.constant 9.99999974E-6 : f32
    %18 = vector.broadcast %cst_10 : f32 to vector<1x128xf32>
    %19 = arith.addf %17, %18 : vector<1x128xf32>
    %20 = math.rsqrt %19 : vector<1x128xf32>
    %21 = vector.broadcast %20 : vector<1x128xf32> to vector<8x128xf32>
    %22 = arith.mulf %12, %21 : vector<8x128xf32>
    %23 = vector.broadcast %5 : vector<1x128xf32> to vector<8x128xf32>
    %24 = arith.mulf %22, %23 : vector<8x128xf32>
    %25 = vector.broadcast %6 : vector<1x128xf32> to vector<8x128xf32>
    %26 = arith.addf %24, %25 : vector<8x128xf32>
    %cst_11 = arith.constant 0.000000e+00 : f32
    %27 = vector.broadcast %cst_11 : f32 to vector<8x128xf32>
    %28 = arith.maximumf %26, %27 : vector<8x128xf32>
    %29 = arith.truncf %28 : vector<8x128xf32> to vector<8x128xbf16>
    %c0_12 = arith.constant 0 : index
    %c0_13 = arith.constant 0 : index
    %c0_14 = arith.constant 0 : index
    %30 = vector.load %arg4[%c0_12, %c0_13, %c0_14] : memref<1x8x128xbf16, #tpu.memory_space<vmem>>, vector<1x8x128xbf16>
    %31 = vector.shape_cast %30 : vector<1x8x128xbf16> to vector<8x128xbf16>
    %32 = vector.shape_cast %29 : vector<8x128xbf16> to vector<1x8x128xbf16>
    tpu.vector_store %arg4[%c0_12, %c0_13, %c0_14], %32 {strides = array<i32>} : memref<1x8x128xbf16, #tpu.memory_space<vmem>>, vector<1x8x128xbf16>,
    return
  }
  func.func @transform_0(%arg0: i32) -> (i32, i32, i32) {
    %c0_i32 = arith.constant 0 : i32
    %c0_i32_0 = arith.constant 0 : i32
    %c0_i32_1 = arith.constant 0 : i32
    return %arg0, %c0_i32, %c0_i32_0 : i32, i32, i32
  }
  func.func @transform_1(%arg0: i32) -> (i32, i32) {
    %c0_i32 = arith.constant 0 : i32
    %c0_i32_0 = arith.constant 0 : i32
    %c0_i32_1 = arith.constant 0 : i32
    return %c0_i32, %c0_i32_0 : i32, i32
  }
  func.func @transform_2(%arg0: i32) -> (i32, i32) {
    %c0_i32 = arith.constant 0 : i32
    %c0_i32_0 = arith.constant 0 : i32
    %c0_i32_1 = arith.constant 0 : i32
    return %c0_i32, %c0_i32_0 : i32, i32
  }
  func.func @transform_3(%arg0: i32) -> (i32, i32, i32) {
    %c0_i32 = arith.constant 0 : i32
    %c0_i32_0 = arith.constant 0 : i32
    %c0_i32_1 = arith.constant 0 : i32
    return %arg0, %c0_i32, %c0_i32_0 : i32, i32, i32
  }
}

module attributes {stable_mosaic.version = 11 : i64} {
  func.func @_conv_bn_kernel(%arg0: i32, %arg1: memref<1x8x1152xbf16, #tpu.memory_space<vmem>>, %arg2: memref<1152x128xbf16, #tpu.memory_space<vmem>>, %arg3: memref<2x128xf32, #tpu.memory_space<vmem>>, %arg4: memref<1x8x128xbf16, #tpu.memory_space<vmem>>) attributes {dimension_semantics = [#tpu.dimension_semantics<parallel>], iteration_bounds = array<i64: 3>, scalar_prefetch = 0 : i64, scratch_operands = 0 : i64, tpu.core_type = #tpu.core_type<tc>, window_params = [{transform_indices = @transform_0, window_bounds = array<i64: 1, 8, 1152>}, {pipeline_mode = #tpu.pipeline_mode<synchronous>, transform_indices = @transform_1, window_bounds = array<i64: 1152, 128>}, {pipeline_mode = #tpu.pipeline_mode<synchronous>, transform_indices = @transform_2, window_bounds = array<i64: 2, 128>}, {transform_indices = @transform_3, window_bounds = array<i64: 1, 8, 128>}]} {
    %c0 = arith.constant 0 : index
    %c0_0 = arith.constant 0 : index
    %c0_1 = arith.constant 0 : index
    %0 = vector.load %arg1[%c0, %c0_0, %c0_1] : memref<1x8x1152xbf16, #tpu.memory_space<vmem>>, vector<1x8x1152xbf16>
    %1 = vector.shape_cast %0 : vector<1x8x1152xbf16> to vector<8x1152xbf16>
    %c0_2 = arith.constant 0 : index
    %c0_3 = arith.constant 0 : index
    %2 = vector.load %arg2[%c0_2, %c0_3] : memref<1152x128xbf16, #tpu.memory_space<vmem>>, vector<1152x128xbf16>
    %cst = arith.constant dense<0.000000e+00> : vector<8x128xf32>
    %3 = tpu.matmul %1, %2, %cst {dimension_numbers = #tpu.dot_dimension_numbers<[1], [0], [0], [1], [0, 0, 1, 1], [], []>} : vector<8x1152xbf16>, vector<1152x128xbf16>, vector<8x128xf32> -> vector<8x128xf32>
    %c0_4 = arith.constant 0 : index
    %c0_5 = arith.constant 0 : index
    %4 = vector.load %arg3[%c0_4, %c0_5] : memref<2x128xf32, #tpu.memory_space<vmem>>, vector<2x128xf32>
    %5 = vector.extract_strided_slice %4 {offsets = [0, 0], sizes = [1, 128], strides = [1, 1]} : vector<2x128xf32> to vector<1x128xf32>
    %6 = vector.extract_strided_slice %4 {offsets = [1, 0], sizes = [1, 128], strides = [1, 1]} : vector<2x128xf32> to vector<1x128xf32>
    %cst_6 = arith.constant dense<0.000000e+00> : vector<128xf32>
    %7 = vector.multi_reduction <add>, %3, %cst_6 [0] : vector<8x128xf32> to vector<128xf32>
    %8 = vector.shape_cast %7 : vector<128xf32> to vector<1x128xf32>
    %cst_7 = arith.constant 1.250000e-01 : f32
    %9 = vector.broadcast %cst_7 : f32 to vector<1x128xf32>
    %10 = arith.mulf %8, %9 : vector<1x128xf32>
    %11 = vector.broadcast %10 : vector<1x128xf32> to vector<8x128xf32>
    %12 = arith.subf %3, %11 : vector<8x128xf32>
    %13 = arith.mulf %12, %12 : vector<8x128xf32>
    %cst_8 = arith.constant dense<0.000000e+00> : vector<128xf32>
    %14 = vector.multi_reduction <add>, %13, %cst_8 [0] : vector<8x128xf32> to vector<128xf32>
    %15 = vector.shape_cast %14 : vector<128xf32> to vector<1x128xf32>
    %cst_9 = arith.constant 1.250000e-01 : f32
    %16 = vector.broadcast %cst_9 : f32 to vector<1x128xf32>
    %17 = arith.mulf %15, %16 : vector<1x128xf32>
    %cst_10 = arith.constant 9.99999974E-6 : f32
    %18 = vector.broadcast %cst_10 : f32 to vector<1x128xf32>
    %19 = arith.addf %17, %18 : vector<1x128xf32>
    %20 = math.rsqrt %19 : vector<1x128xf32>
    %21 = vector.broadcast %20 : vector<1x128xf32> to vector<8x128xf32>
    %22 = arith.mulf %12, %21 : vector<8x128xf32>
    %23 = vector.broadcast %5 : vector<1x128xf32> to vector<8x128xf32>
    %24 = arith.mulf %22, %23 : vector<8x128xf32>
    %25 = vector.broadcast %6 : vector<1x128xf32> to vector<8x128xf32>
    %26 = arith.addf %24, %25 : vector<8x128xf32>
    %cst_11 = arith.constant 0.000000e+00 : f32
    %27 = vector.broadcast %cst_11 : f32 to vector<8x128xf32>
    %28 = arith.maximumf %26, %27 : vector<8x128xf32>
    %29 = arith.truncf %28 : vector<8x128xf32> to vector<8x128xbf16>
    %c0_12 = arith.constant 0 : index
    %c0_13 = arith.constant 0 : index
    %c0_14 = arith.constant 0 : index
    %30 = vector.load %arg4[%c0_12, %c0_13, %c0_14] : memref<1x8x128xbf16, #tpu.memory_space<vmem>>, vector<1x8x128xbf16>
    %31 = vector.shape_cast %30 : vector<1x8x128xbf16> to vector<8x128xbf16>
    %32 = vector.shape_cast %29 : vector<8x128xbf16> to vector<1x8x128xbf16>
    tpu.vector_store %arg4[%c0_12, %c0_13, %c0_14], %32 {strides = array<i32>} : memref<1x8x128xbf16, #tpu.memory_space<vmem>>, vector<1x8x128xbf16>,
    return
  }
  func.func @transform_0(%arg0: i32) -> (i32, i32, i32) {
    %c0_i32 = arith.constant 0 : i32
    %c0_i32_0 = arith.constant 0 : i32
    %c0_i32_1 = arith.constant 0 : i32
    return %arg0, %c0_i32, %c0_i32_0 : i32, i32, i32
  }
  func.func @transform_1(%arg0: i32) -> (i32, i32) {
    %c0_i32 = arith.constant 0 : i32
    %c0_i32_0 = arith.constant 0 : i32
    %c0_i32_1 = arith.constant 0 : i32
    return %c0_i32, %c0_i32_0 : i32, i32
  }
  func.func @transform_2(%arg0: i32) -> (i32, i32) {
    %c0_i32 = arith.constant 0 : i32
    %c0_i32_0 = arith.constant 0 : i32
    %c0_i32_1 = arith.constant 0 : i32
    return %c0_i32, %c0_i32_0 : i32, i32
  }
  func.func @transform_3(%arg0: i32) -> (i32, i32, i32) {
    %c0_i32 = arith.constant 0 : i32
    %c0_i32_0 = arith.constant 0 : i32
    %c0_i32_1 = arith.constant 0 : i32
    return %arg0, %c0_i32, %c0_i32_0 : i32, i32, i32
  }
}

module attributes {stable_mosaic.version = 11 : i64} {
  func.func @_conv_bn_down_add_relu_kernel(%arg0: i32, %arg1: memref<1x8x1152xbf16, #tpu.memory_space<vmem>>, %arg2: memref<1152x128xbf16, #tpu.memory_space<vmem>>, %arg3: memref<2x128xf32, #tpu.memory_space<vmem>>, %arg4: memref<1x8x64xbf16, #tpu.memory_space<vmem>>, %arg5: memref<64x128xbf16, #tpu.memory_space<vmem>>, %arg6: memref<2x128xf32, #tpu.memory_space<vmem>>, %arg7: memref<1x8x128xbf16, #tpu.memory_space<vmem>>) attributes {dimension_semantics = [#tpu.dimension_semantics<parallel>], iteration_bounds = array<i64: 3>, scalar_prefetch = 0 : i64, scratch_operands = 0 : i64, tpu.core_type = #tpu.core_type<tc>, window_params = [{transform_indices = @transform_0, window_bounds = array<i64: 1, 8, 1152>}, {pipeline_mode = #tpu.pipeline_mode<synchronous>, transform_indices = @transform_1, window_bounds = array<i64: 1152, 128>}, {pipeline_mode = #tpu.pipeline_mode<synchronous>, transform_indices = @transform_2, window_bounds = array<i64: 2, 128>}, {transform_indices = @transform_3, window_bounds = array<i64: 1, 8, 64>}, {pipeline_mode = #tpu.pipeline_mode<synchronous>, transform_indices = @transform_4, window_bounds = array<i64: 64, 128>}, {pipeline_mode = #tpu.pipeline_mode<synchronous>, transform_indices = @transform_5, window_bounds = array<i64: 2, 128>}, {transform_indices = @transform_6, window_bounds = array<i64: 1, 8, 128>}]} {
    %c0 = arith.constant 0 : index
    %c0_0 = arith.constant 0 : index
    %c0_1 = arith.constant 0 : index
    %0 = vector.load %arg1[%c0, %c0_0, %c0_1] : memref<1x8x1152xbf16, #tpu.memory_space<vmem>>, vector<1x8x1152xbf16>
    %1 = vector.shape_cast %0 : vector<1x8x1152xbf16> to vector<8x1152xbf16>
    %c0_2 = arith.constant 0 : index
    %c0_3 = arith.constant 0 : index
    %2 = vector.load %arg2[%c0_2, %c0_3] : memref<1152x128xbf16, #tpu.memory_space<vmem>>, vector<1152x128xbf16>
    %cst = arith.constant dense<0.000000e+00> : vector<8x128xf32>
    %3 = tpu.matmul %1, %2, %cst {dimension_numbers = #tpu.dot_dimension_numbers<[1], [0], [0], [1], [0, 0, 1, 1], [], []>} : vector<8x1152xbf16>, vector<1152x128xbf16>, vector<8x128xf32> -> vector<8x128xf32>
    %c0_4 = arith.constant 0 : index
    %c0_5 = arith.constant 0 : index
    %4 = vector.load %arg3[%c0_4, %c0_5] : memref<2x128xf32, #tpu.memory_space<vmem>>, vector<2x128xf32>
    %5 = vector.extract_strided_slice %4 {offsets = [0, 0], sizes = [1, 128], strides = [1, 1]} : vector<2x128xf32> to vector<1x128xf32>
    %6 = vector.extract_strided_slice %4 {offsets = [1, 0], sizes = [1, 128], strides = [1, 1]} : vector<2x128xf32> to vector<1x128xf32>
    %cst_6 = arith.constant dense<0.000000e+00> : vector<128xf32>
    %7 = vector.multi_reduction <add>, %3, %cst_6 [0] : vector<8x128xf32> to vector<128xf32>
    %8 = vector.shape_cast %7 : vector<128xf32> to vector<1x128xf32>
    %cst_7 = arith.constant 1.250000e-01 : f32
    %9 = vector.broadcast %cst_7 : f32 to vector<1x128xf32>
    %10 = arith.mulf %8, %9 : vector<1x128xf32>
    %11 = vector.broadcast %10 : vector<1x128xf32> to vector<8x128xf32>
    %12 = arith.subf %3, %11 : vector<8x128xf32>
    %13 = arith.mulf %12, %12 : vector<8x128xf32>
    %cst_8 = arith.constant dense<0.000000e+00> : vector<128xf32>
    %14 = vector.multi_reduction <add>, %13, %cst_8 [0] : vector<8x128xf32> to vector<128xf32>
    %15 = vector.shape_cast %14 : vector<128xf32> to vector<1x128xf32>
    %cst_9 = arith.constant 1.250000e-01 : f32
    %16 = vector.broadcast %cst_9 : f32 to vector<1x128xf32>
    %17 = arith.mulf %15, %16 : vector<1x128xf32>
    %cst_10 = arith.constant 9.99999974E-6 : f32
    %18 = vector.broadcast %cst_10 : f32 to vector<1x128xf32>
    %19 = arith.addf %17, %18 : vector<1x128xf32>
    %20 = math.rsqrt %19 : vector<1x128xf32>
    %21 = vector.broadcast %20 : vector<1x128xf32> to vector<8x128xf32>
    %22 = arith.mulf %12, %21 : vector<8x128xf32>
    %23 = vector.broadcast %5 : vector<1x128xf32> to vector<8x128xf32>
    %24 = arith.mulf %22, %23 : vector<8x128xf32>
    %25 = vector.broadcast %6 : vector<1x128xf32> to vector<8x128xf32>
    %26 = arith.addf %24, %25 : vector<8x128xf32>
    %c0_11 = arith.constant 0 : index
    %c0_12 = arith.constant 0 : index
    %c0_13 = arith.constant 0 : index
    %27 = vector.load %arg4[%c0_11, %c0_12, %c0_13] : memref<1x8x64xbf16, #tpu.memory_space<vmem>>, vector<1x8x64xbf16>
    %28 = vector.shape_cast %27 : vector<1x8x64xbf16> to vector<8x64xbf16>
    %c0_14 = arith.constant 0 : index
    %c0_15 = arith.constant 0 : index
    %29 = vector.load %arg5[%c0_14, %c0_15] : memref<64x128xbf16, #tpu.memory_space<vmem>>, vector<64x128xbf16>
    %cst_16 = arith.constant dense<0.000000e+00> : vector<8x128xf32>
    %30 = tpu.matmul %28, %29, %cst_16 {dimension_numbers = #tpu.dot_dimension_numbers<[1], [0], [0], [1], [0, 0, 1, 1], [], []>} : vector<8x64xbf16>, vector<64x128xbf16>, vector<8x128xf32> -> vector<8x128xf32>
    %c0_17 = arith.constant 0 : index
    %c0_18 = arith.constant 0 : index
    %31 = vector.load %arg6[%c0_17, %c0_18] : memref<2x128xf32, #tpu.memory_space<vmem>>, vector<2x128xf32>
    %32 = vector.extract_strided_slice %31 {offsets = [0, 0], sizes = [1, 128], strides = [1, 1]} : vector<2x128xf32> to vector<1x128xf32>
    %33 = vector.extract_strided_slice %31 {offsets = [1, 0], sizes = [1, 128], strides = [1, 1]} : vector<2x128xf32> to vector<1x128xf32>
    %cst_19 = arith.constant dense<0.000000e+00> : vector<128xf32>
    %34 = vector.multi_reduction <add>, %30, %cst_19 [0] : vector<8x128xf32> to vector<128xf32>
    %35 = vector.shape_cast %34 : vector<128xf32> to vector<1x128xf32>
    %cst_20 = arith.constant 1.250000e-01 : f32
    %36 = vector.broadcast %cst_20 : f32 to vector<1x128xf32>
    %37 = arith.mulf %35, %36 : vector<1x128xf32>
    %38 = vector.broadcast %37 : vector<1x128xf32> to vector<8x128xf32>
    %39 = arith.subf %30, %38 : vector<8x128xf32>
    %40 = arith.mulf %39, %39 : vector<8x128xf32>
    %cst_21 = arith.constant dense<0.000000e+00> : vector<128xf32>
    %41 = vector.multi_reduction <add>, %40, %cst_21 [0] : vector<8x128xf32> to vector<128xf32>
    %42 = vector.shape_cast %41 : vector<128xf32> to vector<1x128xf32>
    %cst_22 = arith.constant 1.250000e-01 : f32
    %43 = vector.broadcast %cst_22 : f32 to vector<1x128xf32>
    %44 = arith.mulf %42, %43 : vector<1x128xf32>
    %cst_23 = arith.constant 9.99999974E-6 : f32
    %45 = vector.broadcast %cst_23 : f32 to vector<1x128xf32>
    %46 = arith.addf %44, %45 : vector<1x128xf32>
    %47 = math.rsqrt %46 : vector<1x128xf32>
    %48 = vector.broadcast %47 : vector<1x128xf32> to vector<8x128xf32>
    %49 = arith.mulf %39, %48 : vector<8x128xf32>
    %50 = vector.broadcast %32 : vector<1x128xf32> to vector<8x128xf32>
    %51 = arith.mulf %49, %50 : vector<8x128xf32>
    %52 = vector.broadcast %33 : vector<1x128xf32> to vector<8x128xf32>
    %53 = arith.addf %51, %52 : vector<8x128xf32>
    %54 = arith.addf %26, %53 : vector<8x128xf32>
    %cst_24 = arith.constant 0.000000e+00 : f32
    %55 = vector.broadcast %cst_24 : f32 to vector<8x128xf32>
    %56 = arith.maximumf %54, %55 : vector<8x128xf32>
    %57 = arith.truncf %56 : vector<8x128xf32> to vector<8x128xbf16>
    %c0_25 = arith.constant 0 : index
    %c0_26 = arith.constant 0 : index
    %c0_27 = arith.constant 0 : index
    %58 = vector.load %arg7[%c0_25, %c0_26, %c0_27] : memref<1x8x128xbf16, #tpu.memory_space<vmem>>, vector<1x8x128xbf16>
    %59 = vector.shape_cast %58 : vector<1x8x128xbf16> to vector<8x128xbf16>
    %60 = vector.shape_cast %57 : vector<8x128xbf16> to vector<1x8x128xbf16>
    tpu.vector_store %arg7[%c0_25, %c0_26, %c0_27], %60 {strides = array<i32>} : memref<1x8x128xbf16, #tpu.memory_space<vmem>>, vector<1x8x128xbf16>,
    return
  }
  func.func @transform_0(%arg0: i32) -> (i32, i32, i32) {
    %c0_i32 = arith.constant 0 : i32
    %c0_i32_0 = arith.constant 0 : i32
    %c0_i32_1 = arith.constant 0 : i32
    return %arg0, %c0_i32, %c0_i32_0 : i32, i32, i32
  }
  func.func @transform_1(%arg0: i32) -> (i32, i32) {
    %c0_i32 = arith.constant 0 : i32
    %c0_i32_0 = arith.constant 0 : i32
    %c0_i32_1 = arith.constant 0 : i32
    return %c0_i32, %c0_i32_0 : i32, i32
  }
  func.func @transform_2(%arg0: i32) -> (i32, i32) {
    %c0_i32 = arith.constant 0 : i32
    %c0_i32_0 = arith.constant 0 : i32
    %c0_i32_1 = arith.constant 0 : i32
    return %c0_i32, %c0_i32_0 : i32, i32
  }
  func.func @transform_3(%arg0: i32) -> (i32, i32, i32) {
    %c0_i32 = arith.constant 0 : i32
    %c0_i32_0 = arith.constant 0 : i32
    %c0_i32_1 = arith.constant 0 : i32
    return %arg0, %c0_i32, %c0_i32_0 : i32, i32, i32
  }
  func.func @transform_4(%arg0: i32) -> (i32, i32) {
    %c0_i32 = arith.constant 0 : i32
    %c0_i32_0 = arith.constant 0 : i32
    %c0_i32_1 = arith.constant 0 : i32
    return %c0_i32, %c0_i32_0 : i32, i32
  }
  func.func @transform_5(%arg0: i32) -> (i32, i32) {
    %c0_i32 = arith.constant 0 : i32
    %c0_i32_0 = arith.constant 0 : i32
    %c0_i32_1 = arith.constant 0 : i32
    return %c0_i32, %c0_i32_0 : i32, i32
  }
  func.func @transform_6(%arg0: i32) -> (i32, i32, i32) {
    %c0_i32 = arith.constant 0 : i32
    %c0_i32_0 = arith.constant 0 : i32
    %c0_i32_1 = arith.constant 0 : i32
    return %arg0, %c0_i32, %c0_i32_0 : i32, i32, i32
  }
}

module attributes {stable_mosaic.version = 11 : i64} {
  func.func @_conv_bn_add_relu_kernel(%arg0: i32, %arg1: memref<1x8x1152xbf16, #tpu.memory_space<vmem>>, %arg2: memref<1152x128xbf16, #tpu.memory_space<vmem>>, %arg3: memref<2x128xf32, #tpu.memory_space<vmem>>, %arg4: memref<1x8x128xbf16, #tpu.memory_space<vmem>>, %arg5: memref<1x8x128xbf16, #tpu.memory_space<vmem>>) attributes {dimension_semantics = [#tpu.dimension_semantics<parallel>], iteration_bounds = array<i64: 3>, scalar_prefetch = 0 : i64, scratch_operands = 0 : i64, tpu.core_type = #tpu.core_type<tc>, window_params = [{transform_indices = @transform_0, window_bounds = array<i64: 1, 8, 1152>}, {pipeline_mode = #tpu.pipeline_mode<synchronous>, transform_indices = @transform_1, window_bounds = array<i64: 1152, 128>}, {pipeline_mode = #tpu.pipeline_mode<synchronous>, transform_indices = @transform_2, window_bounds = array<i64: 2, 128>}, {transform_indices = @transform_3, window_bounds = array<i64: 1, 8, 128>}, {transform_indices = @transform_4, window_bounds = array<i64: 1, 8, 128>}]} {
    %c0 = arith.constant 0 : index
    %c0_0 = arith.constant 0 : index
    %c0_1 = arith.constant 0 : index
    %0 = vector.load %arg1[%c0, %c0_0, %c0_1] : memref<1x8x1152xbf16, #tpu.memory_space<vmem>>, vector<1x8x1152xbf16>
    %1 = vector.shape_cast %0 : vector<1x8x1152xbf16> to vector<8x1152xbf16>
    %c0_2 = arith.constant 0 : index
    %c0_3 = arith.constant 0 : index
    %2 = vector.load %arg2[%c0_2, %c0_3] : memref<1152x128xbf16, #tpu.memory_space<vmem>>, vector<1152x128xbf16>
    %cst = arith.constant dense<0.000000e+00> : vector<8x128xf32>
    %3 = tpu.matmul %1, %2, %cst {dimension_numbers = #tpu.dot_dimension_numbers<[1], [0], [0], [1], [0, 0, 1, 1], [], []>} : vector<8x1152xbf16>, vector<1152x128xbf16>, vector<8x128xf32> -> vector<8x128xf32>
    %c0_4 = arith.constant 0 : index
    %c0_5 = arith.constant 0 : index
    %4 = vector.load %arg3[%c0_4, %c0_5] : memref<2x128xf32, #tpu.memory_space<vmem>>, vector<2x128xf32>
    %5 = vector.extract_strided_slice %4 {offsets = [0, 0], sizes = [1, 128], strides = [1, 1]} : vector<2x128xf32> to vector<1x128xf32>
    %6 = vector.extract_strided_slice %4 {offsets = [1, 0], sizes = [1, 128], strides = [1, 1]} : vector<2x128xf32> to vector<1x128xf32>
    %cst_6 = arith.constant dense<0.000000e+00> : vector<128xf32>
    %7 = vector.multi_reduction <add>, %3, %cst_6 [0] : vector<8x128xf32> to vector<128xf32>
    %8 = vector.shape_cast %7 : vector<128xf32> to vector<1x128xf32>
    %cst_7 = arith.constant 1.250000e-01 : f32
    %9 = vector.broadcast %cst_7 : f32 to vector<1x128xf32>
    %10 = arith.mulf %8, %9 : vector<1x128xf32>
    %11 = vector.broadcast %10 : vector<1x128xf32> to vector<8x128xf32>
    %12 = arith.subf %3, %11 : vector<8x128xf32>
    %13 = arith.mulf %12, %12 : vector<8x128xf32>
    %cst_8 = arith.constant dense<0.000000e+00> : vector<128xf32>
    %14 = vector.multi_reduction <add>, %13, %cst_8 [0] : vector<8x128xf32> to vector<128xf32>
    %15 = vector.shape_cast %14 : vector<128xf32> to vector<1x128xf32>
    %cst_9 = arith.constant 1.250000e-01 : f32
    %16 = vector.broadcast %cst_9 : f32 to vector<1x128xf32>
    %17 = arith.mulf %15, %16 : vector<1x128xf32>
    %cst_10 = arith.constant 9.99999974E-6 : f32
    %18 = vector.broadcast %cst_10 : f32 to vector<1x128xf32>
    %19 = arith.addf %17, %18 : vector<1x128xf32>
    %20 = math.rsqrt %19 : vector<1x128xf32>
    %21 = vector.broadcast %20 : vector<1x128xf32> to vector<8x128xf32>
    %22 = arith.mulf %12, %21 : vector<8x128xf32>
    %23 = vector.broadcast %5 : vector<1x128xf32> to vector<8x128xf32>
    %24 = arith.mulf %22, %23 : vector<8x128xf32>
    %25 = vector.broadcast %6 : vector<1x128xf32> to vector<8x128xf32>
    %26 = arith.addf %24, %25 : vector<8x128xf32>
    %c0_11 = arith.constant 0 : index
    %c0_12 = arith.constant 0 : index
    %c0_13 = arith.constant 0 : index
    %27 = vector.load %arg4[%c0_11, %c0_12, %c0_13] : memref<1x8x128xbf16, #tpu.memory_space<vmem>>, vector<1x8x128xbf16>
    %28 = vector.shape_cast %27 : vector<1x8x128xbf16> to vector<8x128xbf16>
    %29 = arith.extf %28 : vector<8x128xbf16> to vector<8x128xf32>
    %30 = arith.addf %26, %29 : vector<8x128xf32>
    %cst_14 = arith.constant 0.000000e+00 : f32
    %31 = vector.broadcast %cst_14 : f32 to vector<8x128xf32>
    %32 = arith.maximumf %30, %31 : vector<8x128xf32>
    %33 = arith.truncf %32 : vector<8x128xf32> to vector<8x128xbf16>
    %c0_15 = arith.constant 0 : index
    %c0_16 = arith.constant 0 : index
    %c0_17 = arith.constant 0 : index
    %34 = vector.load %arg5[%c0_15, %c0_16, %c0_17] : memref<1x8x128xbf16, #tpu.memory_space<vmem>>, vector<1x8x128xbf16>
    %35 = vector.shape_cast %34 : vector<1x8x128xbf16> to vector<8x128xbf16>
    %36 = vector.shape_cast %33 : vector<8x128xbf16> to vector<1x8x128xbf16>
    tpu.vector_store %arg5[%c0_15, %c0_16, %c0_17], %36 {strides = array<i32>} : memref<1x8x128xbf16, #tpu.memory_space<vmem>>, vector<1x8x128xbf16>,
    return
  }
  func.func @transform_0(%arg0: i32) -> (i32, i32, i32) {
    %c0_i32 = arith.constant 0 : i32
    %c0_i32_0 = arith.constant 0 : i32
    %c0_i32_1 = arith.constant 0 : i32
    return %arg0, %c0_i32, %c0_i32_0 : i32, i32, i32
  }
  func.func @transform_1(%arg0: i32) -> (i32, i32) {
    %c0_i32 = arith.constant 0 : i32
    %c0_i32_0 = arith.constant 0 : i32
    %c0_i32_1 = arith.constant 0 : i32
    return %c0_i32, %c0_i32_0 : i32, i32
  }
  func.func @transform_2(%arg0: i32) -> (i32, i32) {
    %c0_i32 = arith.constant 0 : i32
    %c0_i32_0 = arith.constant 0 : i32
    %c0_i32_1 = arith.constant 0 : i32
    return %c0_i32, %c0_i32_0 : i32, i32
  }
  func.func @transform_3(%arg0: i32) -> (i32, i32, i32) {
    %c0_i32 = arith.constant 0 : i32
    %c0_i32_0 = arith.constant 0 : i32
    %c0_i32_1 = arith.constant 0 : i32
    return %arg0, %c0_i32, %c0_i32_0 : i32, i32, i32
  }
  func.func @transform_4(%arg0: i32) -> (i32, i32, i32) {
    %c0_i32 = arith.constant 0 : i32
    %c0_i32_0 = arith.constant 0 : i32
    %c0_i32_1 = arith.constant 0 : i32
    return %arg0, %c0_i32, %c0_i32_0 : i32, i32, i32
  }
}

module attributes {stable_mosaic.version = 11 : i64} {
  func.func @_head_kernel(%arg0: i32, %arg1: memref<3x2x128xf32, #tpu.memory_space<vmem>>, %arg2: memref<128x128xbf16, #tpu.memory_space<vmem>>, %arg3: memref<128x128xbf16, #tpu.memory_space<vmem>>, %arg4: memref<128x128xbf16, #tpu.memory_space<vmem>>, %arg5: memref<128x64xbf16, #tpu.memory_space<vmem>>, %arg6: memref<64x128xbf16, #tpu.memory_space<vmem>>, %arg7: memref<4x128xf32, #tpu.memory_space<vmem>>, %arg8: memref<1x128xf32, #tpu.memory_space<vmem>>, %arg9: memref<2x64xf32, #tpu.memory_space<vmem>>, %arg10: memref<1x128xf32, #tpu.memory_space<vmem>>, %arg11: memref<3x2x128xf32, #tpu.memory_space<vmem>>, %arg12: memref<3x2x128xf32, #tpu.memory_space<vmem>>) attributes {dimension_semantics = [#tpu.dimension_semantics<arbitrary>], iteration_bounds = array<i64: 1>, scalar_prefetch = 0 : i64, scratch_operands = 0 : i64, tpu.core_type = #tpu.core_type<tc>, window_params = [{pipeline_mode = #tpu.pipeline_mode<synchronous>, transform_indices = @transform_0, window_bounds = array<i64: 3, 2, 128>}, {pipeline_mode = #tpu.pipeline_mode<synchronous>, transform_indices = @transform_1, window_bounds = array<i64: 128, 128>}, {pipeline_mode = #tpu.pipeline_mode<synchronous>, transform_indices = @transform_2, window_bounds = array<i64: 128, 128>}, {pipeline_mode = #tpu.pipeline_mode<synchronous>, transform_indices = @transform_3, window_bounds = array<i64: 128, 128>}, {pipeline_mode = #tpu.pipeline_mode<synchronous>, transform_indices = @transform_4, window_bounds = array<i64: 128, 64>}, {pipeline_mode = #tpu.pipeline_mode<synchronous>, transform_indices = @transform_5, window_bounds = array<i64: 64, 128>}, {pipeline_mode = #tpu.pipeline_mode<synchronous>, transform_indices = @transform_6, window_bounds = array<i64: 4, 128>}, {pipeline_mode = #tpu.pipeline_mode<synchronous>, transform_indices = @transform_7, window_bounds = array<i64: 1, 128>}, {pipeline_mode = #tpu.pipeline_mode<synchronous>, transform_indices = @transform_8, window_bounds = array<i64: 2, 64>}, {pipeline_mode = #tpu.pipeline_mode<synchronous>, transform_indices = @transform_9, window_bounds = array<i64: 1, 128>}, {pipeline_mode = #tpu.pipeline_mode<synchronous>, transform_indices = @transform_10, window_bounds = array<i64: 3, 2, 128>}, {pipeline_mode = #tpu.pipeline_mode<synchronous>, transform_indices = @transform_11, window_bounds = array<i64: 3, 2, 128>}]} {
    %c0 = arith.constant 0 : index
    %c0_0 = arith.constant 0 : index
    %0 = vector.load %arg7[%c0, %c0_0] : memref<4x128xf32, #tpu.memory_space<vmem>>, vector<4x128xf32>
    %c0_1 = arith.constant 0 : index
    %c0_2 = arith.constant 0 : index
    %1 = vector.load %arg9[%c0_1, %c0_2] : memref<2x64xf32, #tpu.memory_space<vmem>>, vector<2x64xf32>
    %c0_3 = arith.constant 0 : index
    %c0_4 = arith.constant 0 : index
    %2 = vector.load %arg8[%c0_3, %c0_4] : memref<1x128xf32, #tpu.memory_space<vmem>>, vector<1x128xf32>
    %c0_5 = arith.constant 0 : index
    %c0_6 = arith.constant 0 : index
    %3 = vector.load %arg10[%c0_5, %c0_6] : memref<1x128xf32, #tpu.memory_space<vmem>>, vector<1x128xf32>
    %c0_7 = arith.constant 0 : index
    %c0_8 = arith.constant 0 : index
    %c0_9 = arith.constant 0 : index
    %4 = vector.load %arg1[%c0_7, %c0_8, %c0_9] : memref<3x2x128xf32, #tpu.memory_space<vmem>>, vector<1x2x128xf32>
    %5 = vector.shape_cast %4 : vector<1x2x128xf32> to vector<2x128xf32>
    %c0_10 = arith.constant 0 : index
    %c0_11 = arith.constant 0 : index
    %6 = vector.load %arg2[%c0_10, %c0_11] : memref<128x128xbf16, #tpu.memory_space<vmem>>, vector<128x128xbf16>
    %7 = arith.truncf %5 : vector<2x128xf32> to vector<2x128xbf16>
    %cst = arith.constant dense<0.000000e+00> : vector<2x128xf32>
    %8 = tpu.matmul %7, %6, %cst {dimension_numbers = #tpu.dot_dimension_numbers<[1], [0], [0], [1], [0, 0, 1, 1], [], []>} : vector<2x128xbf16>, vector<128x128xbf16>, vector<2x128xf32> -> vector<2x128xf32>
    %9 = vector.extract_strided_slice %0 {offsets = [0, 0], sizes = [1, 128], strides = [1, 1]} : vector<4x128xf32> to vector<1x128xf32>
    %10 = vector.extract_strided_slice %0 {offsets = [1, 0], sizes = [1, 128], strides = [1, 1]} : vector<4x128xf32> to vector<1x128xf32>
    %cst_12 = arith.constant dense<0.000000e+00> : vector<128xf32>
    %11 = vector.multi_reduction <add>, %8, %cst_12 [0] : vector<2x128xf32> to vector<128xf32>
    %12 = vector.shape_cast %11 : vector<128xf32> to vector<1x128xf32>
    %cst_13 = arith.constant 5.000000e-01 : f32
    %13 = vector.broadcast %cst_13 : f32 to vector<1x128xf32>
    %14 = arith.mulf %12, %13 : vector<1x128xf32>
    %15 = vector.broadcast %14 : vector<1x128xf32> to vector<2x128xf32>
    %16 = arith.subf %8, %15 : vector<2x128xf32>
    %17 = arith.mulf %16, %16 : vector<2x128xf32>
    %cst_14 = arith.constant dense<0.000000e+00> : vector<128xf32>
    %18 = vector.multi_reduction <add>, %17, %cst_14 [0] : vector<2x128xf32> to vector<128xf32>
    %19 = vector.shape_cast %18 : vector<128xf32> to vector<1x128xf32>
    %cst_15 = arith.constant 5.000000e-01 : f32
    %20 = vector.broadcast %cst_15 : f32 to vector<1x128xf32>
    %21 = arith.mulf %19, %20 : vector<1x128xf32>
    %cst_16 = arith.constant 9.99999974E-6 : f32
    %22 = vector.broadcast %cst_16 : f32 to vector<1x128xf32>
    %23 = arith.addf %21, %22 : vector<1x128xf32>
    %24 = math.rsqrt %23 : vector<1x128xf32>
    %25 = vector.broadcast %24 : vector<1x128xf32> to vector<2x128xf32>
    %26 = arith.mulf %16, %25 : vector<2x128xf32>
    %27 = vector.broadcast %9 : vector<1x128xf32> to vector<2x128xf32>
    %28 = arith.mulf %26, %27 : vector<2x128xf32>
    %29 = vector.broadcast %10 : vector<1x128xf32> to vector<2x128xf32>
    %30 = arith.addf %28, %29 : vector<2x128xf32>
    %cst_17 = arith.constant 0.000000e+00 : f32
    %31 = vector.broadcast %cst_17 : f32 to vector<2x128xf32>
    %32 = arith.maximumf %30, %31 : vector<2x128xf32>
    %c0_18 = arith.constant 0 : index
    %c0_19 = arith.constant 0 : index
    %33 = vector.load %arg3[%c0_18, %c0_19] : memref<128x128xbf16, #tpu.memory_space<vmem>>, vector<128x128xbf16>
    %34 = arith.truncf %32 : vector<2x128xf32> to vector<2x128xbf16>
    %cst_20 = arith.constant dense<0.000000e+00> : vector<2x128xf32>
    %35 = tpu.matmul %34, %33, %cst_20 {dimension_numbers = #tpu.dot_dimension_numbers<[1], [0], [0], [1], [0, 0, 1, 1], [], []>} : vector<2x128xbf16>, vector<128x128xbf16>, vector<2x128xf32> -> vector<2x128xf32>
    %36 = vector.extract_strided_slice %0 {offsets = [2, 0], sizes = [1, 128], strides = [1, 1]} : vector<4x128xf32> to vector<1x128xf32>
    %37 = vector.extract_strided_slice %0 {offsets = [3, 0], sizes = [1, 128], strides = [1, 1]} : vector<4x128xf32> to vector<1x128xf32>
    %cst_21 = arith.constant dense<0.000000e+00> : vector<128xf32>
    %38 = vector.multi_reduction <add>, %35, %cst_21 [0] : vector<2x128xf32> to vector<128xf32>
    %39 = vector.shape_cast %38 : vector<128xf32> to vector<1x128xf32>
    %cst_22 = arith.constant 5.000000e-01 : f32
    %40 = vector.broadcast %cst_22 : f32 to vector<1x128xf32>
    %41 = arith.mulf %39, %40 : vector<1x128xf32>
    %42 = vector.broadcast %41 : vector<1x128xf32> to vector<2x128xf32>
    %43 = arith.subf %35, %42 : vector<2x128xf32>
    %44 = arith.mulf %43, %43 : vector<2x128xf32>
    %cst_23 = arith.constant dense<0.000000e+00> : vector<128xf32>
    %45 = vector.multi_reduction <add>, %44, %cst_23 [0] : vector<2x128xf32> to vector<128xf32>
    %46 = vector.shape_cast %45 : vector<128xf32> to vector<1x128xf32>
    %cst_24 = arith.constant 5.000000e-01 : f32
    %47 = vector.broadcast %cst_24 : f32 to vector<1x128xf32>
    %48 = arith.mulf %46, %47 : vector<1x128xf32>
    %cst_25 = arith.constant 9.99999974E-6 : f32
    %49 = vector.broadcast %cst_25 : f32 to vector<1x128xf32>
    %50 = arith.addf %48, %49 : vector<1x128xf32>
    %51 = math.rsqrt %50 : vector<1x128xf32>
    %52 = vector.broadcast %51 : vector<1x128xf32> to vector<2x128xf32>
    %53 = arith.mulf %43, %52 : vector<2x128xf32>
    %54 = vector.broadcast %36 : vector<1x128xf32> to vector<2x128xf32>
    %55 = arith.mulf %53, %54 : vector<2x128xf32>
    %56 = vector.broadcast %37 : vector<1x128xf32> to vector<2x128xf32>
    %57 = arith.addf %55, %56 : vector<2x128xf32>
    %cst_26 = arith.constant 0.000000e+00 : f32
    %58 = vector.broadcast %cst_26 : f32 to vector<2x128xf32>
    %59 = arith.maximumf %57, %58 : vector<2x128xf32>
    %c0_27 = arith.constant 0 : index
    %c0_28 = arith.constant 0 : index
    %60 = vector.load %arg4[%c0_27, %c0_28] : memref<128x128xbf16, #tpu.memory_space<vmem>>, vector<128x128xbf16>
    %61 = arith.truncf %59 : vector<2x128xf32> to vector<2x128xbf16>
    %cst_29 = arith.constant dense<0.000000e+00> : vector<2x128xf32>
    %62 = tpu.matmul %61, %60, %cst_29 {dimension_numbers = #tpu.dot_dimension_numbers<[1], [0], [0], [1], [0, 0, 1, 1], [], []>} : vector<2x128xbf16>, vector<128x128xbf16>, vector<2x128xf32> -> vector<2x128xf32>
    %63 = vector.broadcast %2 : vector<1x128xf32> to vector<2x128xf32>
    %64 = arith.addf %62, %63 : vector<2x128xf32>
    %cst_30 = arith.constant dense<0.000000e+00> : vector<128xf32>
    %65 = vector.multi_reduction <add>, %64, %cst_30 [0] : vector<2x128xf32> to vector<128xf32>
    %66 = vector.shape_cast %65 : vector<128xf32> to vector<1x128xf32>
    %cst_31 = arith.constant 5.000000e-01 : f32
    %67 = vector.broadcast %cst_31 : f32 to vector<1x128xf32>
    %68 = arith.mulf %66, %67 : vector<1x128xf32>
    %69 = vector.broadcast %68 : vector<1x128xf32> to vector<2x128xf32>
    %70 = arith.subf %64, %69 : vector<2x128xf32>
    %71 = arith.mulf %70, %70 : vector<2x128xf32>
    %cst_32 = arith.constant dense<0.000000e+00> : vector<128xf32>
    %72 = vector.multi_reduction <add>, %71, %cst_32 [0] : vector<2x128xf32> to vector<128xf32>
    %73 = vector.shape_cast %72 : vector<128xf32> to vector<1x128xf32>
    %cst_33 = arith.constant 5.000000e-01 : f32
    %74 = vector.broadcast %cst_33 : f32 to vector<1x128xf32>
    %75 = arith.mulf %73, %74 : vector<1x128xf32>
    %cst_34 = arith.constant 9.99999974E-6 : f32
    %76 = vector.broadcast %cst_34 : f32 to vector<1x128xf32>
    %77 = arith.addf %75, %76 : vector<1x128xf32>
    %78 = math.rsqrt %77 : vector<1x128xf32>
    %79 = vector.broadcast %78 : vector<1x128xf32> to vector<2x128xf32>
    %80 = arith.mulf %70, %79 : vector<2x128xf32>
    %c0_35 = arith.constant 0 : index
    %c0_36 = arith.constant 0 : index
    %c0_37 = arith.constant 0 : index
    %81 = vector.load %arg11[%c0_35, %c0_36, %c0_37] : memref<3x2x128xf32, #tpu.memory_space<vmem>>, vector<1x2x128xf32>
    %82 = vector.shape_cast %81 : vector<1x2x128xf32> to vector<2x128xf32>
    %83 = vector.shape_cast %80 : vector<2x128xf32> to vector<1x2x128xf32>
    tpu.vector_store %arg11[%c0_35, %c0_36, %c0_37], %83 {strides = array<i32>} : memref<3x2x128xf32, #tpu.memory_space<vmem>>, vector<1x2x128xf32>,
    %c0_38 = arith.constant 0 : index
    %c0_39 = arith.constant 0 : index
    %84 = vector.load %arg5[%c0_38, %c0_39] : memref<128x64xbf16, #tpu.memory_space<vmem>>, vector<128x64xbf16>
    %85 = arith.truncf %80 : vector<2x128xf32> to vector<2x128xbf16>
    %cst_40 = arith.constant dense<0.000000e+00> : vector<2x64xf32>
    %86 = tpu.matmul %85, %84, %cst_40 {dimension_numbers = #tpu.dot_dimension_numbers<[1], [0], [0], [1], [0, 0, 1, 1], [], []>} : vector<2x128xbf16>, vector<128x64xbf16>, vector<2x64xf32> -> vector<2x64xf32>
    %87 = vector.extract_strided_slice %1 {offsets = [0, 0], sizes = [1, 64], strides = [1, 1]} : vector<2x64xf32> to vector<1x64xf32>
    %88 = vector.extract_strided_slice %1 {offsets = [1, 0], sizes = [1, 64], strides = [1, 1]} : vector<2x64xf32> to vector<1x64xf32>
    %cst_41 = arith.constant dense<0.000000e+00> : vector<64xf32>
    %89 = vector.multi_reduction <add>, %86, %cst_41 [0] : vector<2x64xf32> to vector<64xf32>
    %90 = vector.shape_cast %89 : vector<64xf32> to vector<1x64xf32>
    %cst_42 = arith.constant 5.000000e-01 : f32
    %91 = vector.broadcast %cst_42 : f32 to vector<1x64xf32>
    %92 = arith.mulf %90, %91 : vector<1x64xf32>
    %93 = vector.broadcast %92 : vector<1x64xf32> to vector<2x64xf32>
    %94 = arith.subf %86, %93 : vector<2x64xf32>
    %95 = arith.mulf %94, %94 : vector<2x64xf32>
    %cst_43 = arith.constant dense<0.000000e+00> : vector<64xf32>
    %96 = vector.multi_reduction <add>, %95, %cst_43 [0] : vector<2x64xf32> to vector<64xf32>
    %97 = vector.shape_cast %96 : vector<64xf32> to vector<1x64xf32>
    %cst_44 = arith.constant 5.000000e-01 : f32
    %98 = vector.broadcast %cst_44 : f32 to vector<1x64xf32>
    %99 = arith.mulf %97, %98 : vector<1x64xf32>
    %cst_45 = arith.constant 9.99999974E-6 : f32
    %100 = vector.broadcast %cst_45 : f32 to vector<1x64xf32>
    %101 = arith.addf %99, %100 : vector<1x64xf32>
    %102 = math.rsqrt %101 : vector<1x64xf32>
    %103 = vector.broadcast %102 : vector<1x64xf32> to vector<2x64xf32>
    %104 = arith.mulf %94, %103 : vector<2x64xf32>
    %105 = vector.broadcast %87 : vector<1x64xf32> to vector<2x64xf32>
    %106 = arith.mulf %104, %105 : vector<2x64xf32>
    %107 = vector.broadcast %88 : vector<1x64xf32> to vector<2x64xf32>
    %108 = arith.addf %106, %107 : vector<2x64xf32>
    %cst_46 = arith.constant 0.000000e+00 : f32
    %109 = vector.broadcast %cst_46 : f32 to vector<2x64xf32>
    %110 = arith.maximumf %108, %109 : vector<2x64xf32>
    %c0_47 = arith.constant 0 : index
    %c0_48 = arith.constant 0 : index
    %111 = vector.load %arg6[%c0_47, %c0_48] : memref<64x128xbf16, #tpu.memory_space<vmem>>, vector<64x128xbf16>
    %112 = arith.truncf %110 : vector<2x64xf32> to vector<2x64xbf16>
    %cst_49 = arith.constant dense<0.000000e+00> : vector<2x128xf32>
    %113 = tpu.matmul %112, %111, %cst_49 {dimension_numbers = #tpu.dot_dimension_numbers<[1], [0], [0], [1], [0, 0, 1, 1], [], []>} : vector<2x64xbf16>, vector<64x128xbf16>, vector<2x128xf32> -> vector<2x128xf32>
    %114 = vector.broadcast %3 : vector<1x128xf32> to vector<2x128xf32>
    %115 = arith.addf %113, %114 : vector<2x128xf32>
    %c0_50 = arith.constant 0 : index
    %c0_51 = arith.constant 0 : index
    %c0_52 = arith.constant 0 : index
    %116 = vector.load %arg12[%c0_50, %c0_51, %c0_52] : memref<3x2x128xf32, #tpu.memory_space<vmem>>, vector<1x2x128xf32>
    %117 = vector.shape_cast %116 : vector<1x2x128xf32> to vector<2x128xf32>
    %118 = vector.shape_cast %115 : vector<2x128xf32> to vector<1x2x128xf32>
    tpu.vector_store %arg12[%c0_50, %c0_51, %c0_52], %118 {strides = array<i32>} : memref<3x2x128xf32, #tpu.memory_space<vmem>>, vector<1x2x128xf32>,
    %c1 = arith.constant 1 : index
    %c0_53 = arith.constant 0 : index
    %c0_54 = arith.constant 0 : index
    %119 = vector.load %arg1[%c1, %c0_53, %c0_54] : memref<3x2x128xf32, #tpu.memory_space<vmem>>, vector<1x2x128xf32>
    %120 = vector.shape_cast %119 : vector<1x2x128xf32> to vector<2x128xf32>
    %c0_55 = arith.constant 0 : index
    %c0_56 = arith.constant 0 : index
    %121 = vector.load %arg2[%c0_55, %c0_56] : memref<128x128xbf16, #tpu.memory_space<vmem>>, vector<128x128xbf16>
    %122 = arith.truncf %120 : vector<2x128xf32> to vector<2x128xbf16>
    %cst_57 = arith.constant dense<0.000000e+00> : vector<2x128xf32>
    %123 = tpu.matmul %122, %121, %cst_57 {dimension_numbers = #tpu.dot_dimension_numbers<[1], [0], [0], [1], [0, 0, 1, 1], [], []>} : vector<2x128xbf16>, vector<128x128xbf16>, vector<2x128xf32> -> vector<2x128xf32>
    %124 = vector.extract_strided_slice %0 {offsets = [0, 0], sizes = [1, 128], strides = [1, 1]} : vector<4x128xf32> to vector<1x128xf32>
    %125 = vector.extract_strided_slice %0 {offsets = [1, 0], sizes = [1, 128], strides = [1, 1]} : vector<4x128xf32> to vector<1x128xf32>
    %cst_58 = arith.constant dense<0.000000e+00> : vector<128xf32>
    %126 = vector.multi_reduction <add>, %123, %cst_58 [0] : vector<2x128xf32> to vector<128xf32>
    %127 = vector.shape_cast %126 : vector<128xf32> to vector<1x128xf32>
    %cst_59 = arith.constant 5.000000e-01 : f32
    %128 = vector.broadcast %cst_59 : f32 to vector<1x128xf32>
    %129 = arith.mulf %127, %128 : vector<1x128xf32>
    %130 = vector.broadcast %129 : vector<1x128xf32> to vector<2x128xf32>
    %131 = arith.subf %123, %130 : vector<2x128xf32>
    %132 = arith.mulf %131, %131 : vector<2x128xf32>
    %cst_60 = arith.constant dense<0.000000e+00> : vector<128xf32>
    %133 = vector.multi_reduction <add>, %132, %cst_60 [0] : vector<2x128xf32> to vector<128xf32>
    %134 = vector.shape_cast %133 : vector<128xf32> to vector<1x128xf32>
    %cst_61 = arith.constant 5.000000e-01 : f32
    %135 = vector.broadcast %cst_61 : f32 to vector<1x128xf32>
    %136 = arith.mulf %134, %135 : vector<1x128xf32>
    %cst_62 = arith.constant 9.99999974E-6 : f32
    %137 = vector.broadcast %cst_62 : f32 to vector<1x128xf32>
    %138 = arith.addf %136, %137 : vector<1x128xf32>
    %139 = math.rsqrt %138 : vector<1x128xf32>
    %140 = vector.broadcast %139 : vector<1x128xf32> to vector<2x128xf32>
    %141 = arith.mulf %131, %140 : vector<2x128xf32>
    %142 = vector.broadcast %124 : vector<1x128xf32> to vector<2x128xf32>
    %143 = arith.mulf %141, %142 : vector<2x128xf32>
    %144 = vector.broadcast %125 : vector<1x128xf32> to vector<2x128xf32>
    %145 = arith.addf %143, %144 : vector<2x128xf32>
    %cst_63 = arith.constant 0.000000e+00 : f32
    %146 = vector.broadcast %cst_63 : f32 to vector<2x128xf32>
    %147 = arith.maximumf %145, %146 : vector<2x128xf32>
    %c0_64 = arith.constant 0 : index
    %c0_65 = arith.constant 0 : index
    %148 = vector.load %arg3[%c0_64, %c0_65] : memref<128x128xbf16, #tpu.memory_space<vmem>>, vector<128x128xbf16>
    %149 = arith.truncf %147 : vector<2x128xf32> to vector<2x128xbf16>
    %cst_66 = arith.constant dense<0.000000e+00> : vector<2x128xf32>
    %150 = tpu.matmul %149, %148, %cst_66 {dimension_numbers = #tpu.dot_dimension_numbers<[1], [0], [0], [1], [0, 0, 1, 1], [], []>} : vector<2x128xbf16>, vector<128x128xbf16>, vector<2x128xf32> -> vector<2x128xf32>
    %151 = vector.extract_strided_slice %0 {offsets = [2, 0], sizes = [1, 128], strides = [1, 1]} : vector<4x128xf32> to vector<1x128xf32>
    %152 = vector.extract_strided_slice %0 {offsets = [3, 0], sizes = [1, 128], strides = [1, 1]} : vector<4x128xf32> to vector<1x128xf32>
    %cst_67 = arith.constant dense<0.000000e+00> : vector<128xf32>
    %153 = vector.multi_reduction <add>, %150, %cst_67 [0] : vector<2x128xf32> to vector<128xf32>
    %154 = vector.shape_cast %153 : vector<128xf32> to vector<1x128xf32>
    %cst_68 = arith.constant 5.000000e-01 : f32
    %155 = vector.broadcast %cst_68 : f32 to vector<1x128xf32>
    %156 = arith.mulf %154, %155 : vector<1x128xf32>
    %157 = vector.broadcast %156 : vector<1x128xf32> to vector<2x128xf32>
    %158 = arith.subf %150, %157 : vector<2x128xf32>
    %159 = arith.mulf %158, %158 : vector<2x128xf32>
    %cst_69 = arith.constant dense<0.000000e+00> : vector<128xf32>
    %160 = vector.multi_reduction <add>, %159, %cst_69 [0] : vector<2x128xf32> to vector<128xf32>
    %161 = vector.shape_cast %160 : vector<128xf32> to vector<1x128xf32>
    %cst_70 = arith.constant 5.000000e-01 : f32
    %162 = vector.broadcast %cst_70 : f32 to vector<1x128xf32>
    %163 = arith.mulf %161, %162 : vector<1x128xf32>
    %cst_71 = arith.constant 9.99999974E-6 : f32
    %164 = vector.broadcast %cst_71 : f32 to vector<1x128xf32>
    %165 = arith.addf %163, %164 : vector<1x128xf32>
    %166 = math.rsqrt %165 : vector<1x128xf32>
    %167 = vector.broadcast %166 : vector<1x128xf32> to vector<2x128xf32>
    %168 = arith.mulf %158, %167 : vector<2x128xf32>
    %169 = vector.broadcast %151 : vector<1x128xf32> to vector<2x128xf32>
    %170 = arith.mulf %168, %169 : vector<2x128xf32>
    %171 = vector.broadcast %152 : vector<1x128xf32> to vector<2x128xf32>
    %172 = arith.addf %170, %171 : vector<2x128xf32>
    %cst_72 = arith.constant 0.000000e+00 : f32
    %173 = vector.broadcast %cst_72 : f32 to vector<2x128xf32>
    %174 = arith.maximumf %172, %173 : vector<2x128xf32>
    %c0_73 = arith.constant 0 : index
    %c0_74 = arith.constant 0 : index
    %175 = vector.load %arg4[%c0_73, %c0_74] : memref<128x128xbf16, #tpu.memory_space<vmem>>, vector<128x128xbf16>
    %176 = arith.truncf %174 : vector<2x128xf32> to vector<2x128xbf16>
    %cst_75 = arith.constant dense<0.000000e+00> : vector<2x128xf32>
    %177 = tpu.matmul %176, %175, %cst_75 {dimension_numbers = #tpu.dot_dimension_numbers<[1], [0], [0], [1], [0, 0, 1, 1], [], []>} : vector<2x128xbf16>, vector<128x128xbf16>, vector<2x128xf32> -> vector<2x128xf32>
    %178 = vector.broadcast %2 : vector<1x128xf32> to vector<2x128xf32>
    %179 = arith.addf %177, %178 : vector<2x128xf32>
    %cst_76 = arith.constant dense<0.000000e+00> : vector<128xf32>
    %180 = vector.multi_reduction <add>, %179, %cst_76 [0] : vector<2x128xf32> to vector<128xf32>
    %181 = vector.shape_cast %180 : vector<128xf32> to vector<1x128xf32>
    %cst_77 = arith.constant 5.000000e-01 : f32
    %182 = vector.broadcast %cst_77 : f32 to vector<1x128xf32>
    %183 = arith.mulf %181, %182 : vector<1x128xf32>
    %184 = vector.broadcast %183 : vector<1x128xf32> to vector<2x128xf32>
    %185 = arith.subf %179, %184 : vector<2x128xf32>
    %186 = arith.mulf %185, %185 : vector<2x128xf32>
    %cst_78 = arith.constant dense<0.000000e+00> : vector<128xf32>
    %187 = vector.multi_reduction <add>, %186, %cst_78 [0] : vector<2x128xf32> to vector<128xf32>
    %188 = vector.shape_cast %187 : vector<128xf32> to vector<1x128xf32>
    %cst_79 = arith.constant 5.000000e-01 : f32
    %189 = vector.broadcast %cst_79 : f32 to vector<1x128xf32>
    %190 = arith.mulf %188, %189 : vector<1x128xf32>
    %cst_80 = arith.constant 9.99999974E-6 : f32
    %191 = vector.broadcast %cst_80 : f32 to vector<1x128xf32>
    %192 = arith.addf %190, %191 : vector<1x128xf32>
    %193 = math.rsqrt %192 : vector<1x128xf32>
    %194 = vector.broadcast %193 : vector<1x128xf32> to vector<2x128xf32>
    %195 = arith.mulf %185, %194 : vector<2x128xf32>
    %c1_81 = arith.constant 1 : index
    %c0_82 = arith.constant 0 : index
    %c0_83 = arith.constant 0 : index
    %196 = vector.load %arg11[%c1_81, %c0_82, %c0_83] : memref<3x2x128xf32, #tpu.memory_space<vmem>>, vector<1x2x128xf32>
    %197 = vector.shape_cast %196 : vector<1x2x128xf32> to vector<2x128xf32>
    %198 = vector.shape_cast %195 : vector<2x128xf32> to vector<1x2x128xf32>
    tpu.vector_store %arg11[%c1_81, %c0_82, %c0_83], %198 {strides = array<i32>} : memref<3x2x128xf32, #tpu.memory_space<vmem>>, vector<1x2x128xf32>,
    %c0_84 = arith.constant 0 : index
    %c0_85 = arith.constant 0 : index
    %199 = vector.load %arg5[%c0_84, %c0_85] : memref<128x64xbf16, #tpu.memory_space<vmem>>, vector<128x64xbf16>
    %200 = arith.truncf %195 : vector<2x128xf32> to vector<2x128xbf16>
    %cst_86 = arith.constant dense<0.000000e+00> : vector<2x64xf32>
    %201 = tpu.matmul %200, %199, %cst_86 {dimension_numbers = #tpu.dot_dimension_numbers<[1], [0], [0], [1], [0, 0, 1, 1], [], []>} : vector<2x128xbf16>, vector<128x64xbf16>, vector<2x64xf32> -> vector<2x64xf32>
    %202 = vector.extract_strided_slice %1 {offsets = [0, 0], sizes = [1, 64], strides = [1, 1]} : vector<2x64xf32> to vector<1x64xf32>
    %203 = vector.extract_strided_slice %1 {offsets = [1, 0], sizes = [1, 64], strides = [1, 1]} : vector<2x64xf32> to vector<1x64xf32>
    %cst_87 = arith.constant dense<0.000000e+00> : vector<64xf32>
    %204 = vector.multi_reduction <add>, %201, %cst_87 [0] : vector<2x64xf32> to vector<64xf32>
    %205 = vector.shape_cast %204 : vector<64xf32> to vector<1x64xf32>
    %cst_88 = arith.constant 5.000000e-01 : f32
    %206 = vector.broadcast %cst_88 : f32 to vector<1x64xf32>
    %207 = arith.mulf %205, %206 : vector<1x64xf32>
    %208 = vector.broadcast %207 : vector<1x64xf32> to vector<2x64xf32>
    %209 = arith.subf %201, %208 : vector<2x64xf32>
    %210 = arith.mulf %209, %209 : vector<2x64xf32>
    %cst_89 = arith.constant dense<0.000000e+00> : vector<64xf32>
    %211 = vector.multi_reduction <add>, %210, %cst_89 [0] : vector<2x64xf32> to vector<64xf32>
    %212 = vector.shape_cast %211 : vector<64xf32> to vector<1x64xf32>
    %cst_90 = arith.constant 5.000000e-01 : f32
    %213 = vector.broadcast %cst_90 : f32 to vector<1x64xf32>
    %214 = arith.mulf %212, %213 : vector<1x64xf32>
    %cst_91 = arith.constant 9.99999974E-6 : f32
    %215 = vector.broadcast %cst_91 : f32 to vector<1x64xf32>
    %216 = arith.addf %214, %215 : vector<1x64xf32>
    %217 = math.rsqrt %216 : vector<1x64xf32>
    %218 = vector.broadcast %217 : vector<1x64xf32> to vector<2x64xf32>
    %219 = arith.mulf %209, %218 : vector<2x64xf32>
    %220 = vector.broadcast %202 : vector<1x64xf32> to vector<2x64xf32>
    %221 = arith.mulf %219, %220 : vector<2x64xf32>
    %222 = vector.broadcast %203 : vector<1x64xf32> to vector<2x64xf32>
    %223 = arith.addf %221, %222 : vector<2x64xf32>
    %cst_92 = arith.constant 0.000000e+00 : f32
    %224 = vector.broadcast %cst_92 : f32 to vector<2x64xf32>
    %225 = arith.maximumf %223, %224 : vector<2x64xf32>
    %c0_93 = arith.constant 0 : index
    %c0_94 = arith.constant 0 : index
    %226 = vector.load %arg6[%c0_93, %c0_94] : memref<64x128xbf16, #tpu.memory_space<vmem>>, vector<64x128xbf16>
    %227 = arith.truncf %225 : vector<2x64xf32> to vector<2x64xbf16>
    %cst_95 = arith.constant dense<0.000000e+00> : vector<2x128xf32>
    %228 = tpu.matmul %227, %226, %cst_95 {dimension_numbers = #tpu.dot_dimension_numbers<[1], [0], [0], [1], [0, 0, 1, 1], [], []>} : vector<2x64xbf16>, vector<64x128xbf16>, vector<2x128xf32> -> vector<2x128xf32>
    %229 = vector.broadcast %3 : vector<1x128xf32> to vector<2x128xf32>
    %230 = arith.addf %228, %229 : vector<2x128xf32>
    %c1_96 = arith.constant 1 : index
    %c0_97 = arith.constant 0 : index
    %c0_98 = arith.constant 0 : index
    %231 = vector.load %arg12[%c1_96, %c0_97, %c0_98] : memref<3x2x128xf32, #tpu.memory_space<vmem>>, vector<1x2x128xf32>
    %232 = vector.shape_cast %231 : vector<1x2x128xf32> to vector<2x128xf32>
    %233 = vector.shape_cast %230 : vector<2x128xf32> to vector<1x2x128xf32>
    tpu.vector_store %arg12[%c1_96, %c0_97, %c0_98], %233 {strides = array<i32>} : memref<3x2x128xf32, #tpu.memory_space<vmem>>, vector<1x2x128xf32>,
    %c2 = arith.constant 2 : index
    %c0_99 = arith.constant 0 : index
    %c0_100 = arith.constant 0 : index
    %234 = vector.load %arg1[%c2, %c0_99, %c0_100] : memref<3x2x128xf32, #tpu.memory_space<vmem>>, vector<1x2x128xf32>
    %235 = vector.shape_cast %234 : vector<1x2x128xf32> to vector<2x128xf32>
    %c0_101 = arith.constant 0 : index
    %c0_102 = arith.constant 0 : index
    %236 = vector.load %arg2[%c0_101, %c0_102] : memref<128x128xbf16, #tpu.memory_space<vmem>>, vector<128x128xbf16>
    %237 = arith.truncf %235 : vector<2x128xf32> to vector<2x128xbf16>
    %cst_103 = arith.constant dense<0.000000e+00> : vector<2x128xf32>
    %238 = tpu.matmul %237, %236, %cst_103 {dimension_numbers = #tpu.dot_dimension_numbers<[1], [0], [0], [1], [0, 0, 1, 1], [], []>} : vector<2x128xbf16>, vector<128x128xbf16>, vector<2x128xf32> -> vector<2x128xf32>
    %239 = vector.extract_strided_slice %0 {offsets = [0, 0], sizes = [1, 128], strides = [1, 1]} : vector<4x128xf32> to vector<1x128xf32>
    %240 = vector.extract_strided_slice %0 {offsets = [1, 0], sizes = [1, 128], strides = [1, 1]} : vector<4x128xf32> to vector<1x128xf32>
    %cst_104 = arith.constant dense<0.000000e+00> : vector<128xf32>
    %241 = vector.multi_reduction <add>, %238, %cst_104 [0] : vector<2x128xf32> to vector<128xf32>
    %242 = vector.shape_cast %241 : vector<128xf32> to vector<1x128xf32>
    %cst_105 = arith.constant 5.000000e-01 : f32
    %243 = vector.broadcast %cst_105 : f32 to vector<1x128xf32>
    %244 = arith.mulf %242, %243 : vector<1x128xf32>
    %245 = vector.broadcast %244 : vector<1x128xf32> to vector<2x128xf32>
    %246 = arith.subf %238, %245 : vector<2x128xf32>
    %247 = arith.mulf %246, %246 : vector<2x128xf32>
    %cst_106 = arith.constant dense<0.000000e+00> : vector<128xf32>
    %248 = vector.multi_reduction <add>, %247, %cst_106 [0] : vector<2x128xf32> to vector<128xf32>
    %249 = vector.shape_cast %248 : vector<128xf32> to vector<1x128xf32>
    %cst_107 = arith.constant 5.000000e-01 : f32
    %250 = vector.broadcast %cst_107 : f32 to vector<1x128xf32>
    %251 = arith.mulf %249, %250 : vector<1x128xf32>
    %cst_108 = arith.constant 9.99999974E-6 : f32
    %252 = vector.broadcast %cst_108 : f32 to vector<1x128xf32>
    %253 = arith.addf %251, %252 : vector<1x128xf32>
    %254 = math.rsqrt %253 : vector<1x128xf32>
    %255 = vector.broadcast %254 : vector<1x128xf32> to vector<2x128xf32>
    %256 = arith.mulf %246, %255 : vector<2x128xf32>
    %257 = vector.broadcast %239 : vector<1x128xf32> to vector<2x128xf32>
    %258 = arith.mulf %256, %257 : vector<2x128xf32>
    %259 = vector.broadcast %240 : vector<1x128xf32> to vector<2x128xf32>
    %260 = arith.addf %258, %259 : vector<2x128xf32>
    %cst_109 = arith.constant 0.000000e+00 : f32
    %261 = vector.broadcast %cst_109 : f32 to vector<2x128xf32>
    %262 = arith.maximumf %260, %261 : vector<2x128xf32>
    %c0_110 = arith.constant 0 : index
    %c0_111 = arith.constant 0 : index
    %263 = vector.load %arg3[%c0_110, %c0_111] : memref<128x128xbf16, #tpu.memory_space<vmem>>, vector<128x128xbf16>
    %264 = arith.truncf %262 : vector<2x128xf32> to vector<2x128xbf16>
    %cst_112 = arith.constant dense<0.000000e+00> : vector<2x128xf32>
    %265 = tpu.matmul %264, %263, %cst_112 {dimension_numbers = #tpu.dot_dimension_numbers<[1], [0], [0], [1], [0, 0, 1, 1], [], []>} : vector<2x128xbf16>, vector<128x128xbf16>, vector<2x128xf32> -> vector<2x128xf32>
    %266 = vector.extract_strided_slice %0 {offsets = [2, 0], sizes = [1, 128], strides = [1, 1]} : vector<4x128xf32> to vector<1x128xf32>
    %267 = vector.extract_strided_slice %0 {offsets = [3, 0], sizes = [1, 128], strides = [1, 1]} : vector<4x128xf32> to vector<1x128xf32>
    %cst_113 = arith.constant dense<0.000000e+00> : vector<128xf32>
    %268 = vector.multi_reduction <add>, %265, %cst_113 [0] : vector<2x128xf32> to vector<128xf32>
    %269 = vector.shape_cast %268 : vector<128xf32> to vector<1x128xf32>
    %cst_114 = arith.constant 5.000000e-01 : f32
    %270 = vector.broadcast %cst_114 : f32 to vector<1x128xf32>
    %271 = arith.mulf %269, %270 : vector<1x128xf32>
    %272 = vector.broadcast %271 : vector<1x128xf32> to vector<2x128xf32>
    %273 = arith.subf %265, %272 : vector<2x128xf32>
    %274 = arith.mulf %273, %273 : vector<2x128xf32>
    %cst_115 = arith.constant dense<0.000000e+00> : vector<128xf32>
    %275 = vector.multi_reduction <add>, %274, %cst_115 [0] : vector<2x128xf32> to vector<128xf32>
    %276 = vector.shape_cast %275 : vector<128xf32> to vector<1x128xf32>
    %cst_116 = arith.constant 5.000000e-01 : f32
    %277 = vector.broadcast %cst_116 : f32 to vector<1x128xf32>
    %278 = arith.mulf %276, %277 : vector<1x128xf32>
    %cst_117 = arith.constant 9.99999974E-6 : f32
    %279 = vector.broadcast %cst_117 : f32 to vector<1x128xf32>
    %280 = arith.addf %278, %279 : vector<1x128xf32>
    %281 = math.rsqrt %280 : vector<1x128xf32>
    %282 = vector.broadcast %281 : vector<1x128xf32> to vector<2x128xf32>
    %283 = arith.mulf %273, %282 : vector<2x128xf32>
    %284 = vector.broadcast %266 : vector<1x128xf32> to vector<2x128xf32>
    %285 = arith.mulf %283, %284 : vector<2x128xf32>
    %286 = vector.broadcast %267 : vector<1x128xf32> to vector<2x128xf32>
    %287 = arith.addf %285, %286 : vector<2x128xf32>
    %cst_118 = arith.constant 0.000000e+00 : f32
    %288 = vector.broadcast %cst_118 : f32 to vector<2x128xf32>
    %289 = arith.maximumf %287, %288 : vector<2x128xf32>
    %c0_119 = arith.constant 0 : index
    %c0_120 = arith.constant 0 : index
    %290 = vector.load %arg4[%c0_119, %c0_120] : memref<128x128xbf16, #tpu.memory_space<vmem>>, vector<128x128xbf16>
    %291 = arith.truncf %289 : vector<2x128xf32> to vector<2x128xbf16>
    %cst_121 = arith.constant dense<0.000000e+00> : vector<2x128xf32>
    %292 = tpu.matmul %291, %290, %cst_121 {dimension_numbers = #tpu.dot_dimension_numbers<[1], [0], [0], [1], [0, 0, 1, 1], [], []>} : vector<2x128xbf16>, vector<128x128xbf16>, vector<2x128xf32> -> vector<2x128xf32>
    %293 = vector.broadcast %2 : vector<1x128xf32> to vector<2x128xf32>
    %294 = arith.addf %292, %293 : vector<2x128xf32>
    %cst_122 = arith.constant dense<0.000000e+00> : vector<128xf32>
    %295 = vector.multi_reduction <add>, %294, %cst_122 [0] : vector<2x128xf32> to vector<128xf32>
    %296 = vector.shape_cast %295 : vector<128xf32> to vector<1x128xf32>
    %cst_123 = arith.constant 5.000000e-01 : f32
    %297 = vector.broadcast %cst_123 : f32 to vector<1x128xf32>
    %298 = arith.mulf %296, %297 : vector<1x128xf32>
    %299 = vector.broadcast %298 : vector<1x128xf32> to vector<2x128xf32>
    %300 = arith.subf %294, %299 : vector<2x128xf32>
    %301 = arith.mulf %300, %300 : vector<2x128xf32>
    %cst_124 = arith.constant dense<0.000000e+00> : vector<128xf32>
    %302 = vector.multi_reduction <add>, %301, %cst_124 [0] : vector<2x128xf32> to vector<128xf32>
    %303 = vector.shape_cast %302 : vector<128xf32> to vector<1x128xf32>
    %cst_125 = arith.constant 5.000000e-01 : f32
    %304 = vector.broadcast %cst_125 : f32 to vector<1x128xf32>
    %305 = arith.mulf %303, %304 : vector<1x128xf32>
    %cst_126 = arith.constant 9.99999974E-6 : f32
    %306 = vector.broadcast %cst_126 : f32 to vector<1x128xf32>
    %307 = arith.addf %305, %306 : vector<1x128xf32>
    %308 = math.rsqrt %307 : vector<1x128xf32>
    %309 = vector.broadcast %308 : vector<1x128xf32> to vector<2x128xf32>
    %310 = arith.mulf %300, %309 : vector<2x128xf32>
    %c2_127 = arith.constant 2 : index
    %c0_128 = arith.constant 0 : index
    %c0_129 = arith.constant 0 : index
    %311 = vector.load %arg11[%c2_127, %c0_128, %c0_129] : memref<3x2x128xf32, #tpu.memory_space<vmem>>, vector<1x2x128xf32>
    %312 = vector.shape_cast %311 : vector<1x2x128xf32> to vector<2x128xf32>
    %313 = vector.shape_cast %310 : vector<2x128xf32> to vector<1x2x128xf32>
    tpu.vector_store %arg11[%c2_127, %c0_128, %c0_129], %313 {strides = array<i32>} : memref<3x2x128xf32, #tpu.memory_space<vmem>>, vector<1x2x128xf32>,
    %c0_130 = arith.constant 0 : index
    %c0_131 = arith.constant 0 : index
    %314 = vector.load %arg5[%c0_130, %c0_131] : memref<128x64xbf16, #tpu.memory_space<vmem>>, vector<128x64xbf16>
    %315 = arith.truncf %310 : vector<2x128xf32> to vector<2x128xbf16>
    %cst_132 = arith.constant dense<0.000000e+00> : vector<2x64xf32>
    %316 = tpu.matmul %315, %314, %cst_132 {dimension_numbers = #tpu.dot_dimension_numbers<[1], [0], [0], [1], [0, 0, 1, 1], [], []>} : vector<2x128xbf16>, vector<128x64xbf16>, vector<2x64xf32> -> vector<2x64xf32>
    %317 = vector.extract_strided_slice %1 {offsets = [0, 0], sizes = [1, 64], strides = [1, 1]} : vector<2x64xf32> to vector<1x64xf32>
    %318 = vector.extract_strided_slice %1 {offsets = [1, 0], sizes = [1, 64], strides = [1, 1]} : vector<2x64xf32> to vector<1x64xf32>
    %cst_133 = arith.constant dense<0.000000e+00> : vector<64xf32>
    %319 = vector.multi_reduction <add>, %316, %cst_133 [0] : vector<2x64xf32> to vector<64xf32>
    %320 = vector.shape_cast %319 : vector<64xf32> to vector<1x64xf32>
    %cst_134 = arith.constant 5.000000e-01 : f32
    %321 = vector.broadcast %cst_134 : f32 to vector<1x64xf32>
    %322 = arith.mulf %320, %321 : vector<1x64xf32>
    %323 = vector.broadcast %322 : vector<1x64xf32> to vector<2x64xf32>
    %324 = arith.subf %316, %323 : vector<2x64xf32>
    %325 = arith.mulf %324, %324 : vector<2x64xf32>
    %cst_135 = arith.constant dense<0.000000e+00> : vector<64xf32>
    %326 = vector.multi_reduction <add>, %325, %cst_135 [0] : vector<2x64xf32> to vector<64xf32>
    %327 = vector.shape_cast %326 : vector<64xf32> to vector<1x64xf32>
    %cst_136 = arith.constant 5.000000e-01 : f32
    %328 = vector.broadcast %cst_136 : f32 to vector<1x64xf32>
    %329 = arith.mulf %327, %328 : vector<1x64xf32>
    %cst_137 = arith.constant 9.99999974E-6 : f32
    %330 = vector.broadcast %cst_137 : f32 to vector<1x64xf32>
    %331 = arith.addf %329, %330 : vector<1x64xf32>
    %332 = math.rsqrt %331 : vector<1x64xf32>
    %333 = vector.broadcast %332 : vector<1x64xf32> to vector<2x64xf32>
    %334 = arith.mulf %324, %333 : vector<2x64xf32>
    %335 = vector.broadcast %317 : vector<1x64xf32> to vector<2x64xf32>
    %336 = arith.mulf %334, %335 : vector<2x64xf32>
    %337 = vector.broadcast %318 : vector<1x64xf32> to vector<2x64xf32>
    %338 = arith.addf %336, %337 : vector<2x64xf32>
    %cst_138 = arith.constant 0.000000e+00 : f32
    %339 = vector.broadcast %cst_138 : f32 to vector<2x64xf32>
    %340 = arith.maximumf %338, %339 : vector<2x64xf32>
    %c0_139 = arith.constant 0 : index
    %c0_140 = arith.constant 0 : index
    %341 = vector.load %arg6[%c0_139, %c0_140] : memref<64x128xbf16, #tpu.memory_space<vmem>>, vector<64x128xbf16>
    %342 = arith.truncf %340 : vector<2x64xf32> to vector<2x64xbf16>
    %cst_141 = arith.constant dense<0.000000e+00> : vector<2x128xf32>
    %343 = tpu.matmul %342, %341, %cst_141 {dimension_numbers = #tpu.dot_dimension_numbers<[1], [0], [0], [1], [0, 0, 1, 1], [], []>} : vector<2x64xbf16>, vector<64x128xbf16>, vector<2x128xf32> -> vector<2x128xf32>
    %344 = vector.broadcast %3 : vector<1x128xf32> to vector<2x128xf32>
    %345 = arith.addf %343, %344 : vector<2x128xf32>
    %c2_142 = arith.constant 2 : index
    %c0_143 = arith.constant 0 : index
    %c0_144 = arith.constant 0 : index
    %346 = vector.load %arg12[%c2_142, %c0_143, %c0_144] : memref<3x2x128xf32, #tpu.memory_space<vmem>>, vector<1x2x128xf32>
    %347 = vector.shape_cast %346 : vector<1x2x128xf32> to vector<2x128xf32>
    %348 = vector.shape_cast %345 : vector<2x128xf32> to vector<1x2x128xf32>
    tpu.vector_store %arg12[%c2_142, %c0_143, %c0_144], %348 {strides = array<i32>} : memref<3x2x128xf32, #tpu.memory_space<vmem>>, vector<1x2x128xf32>,
    return
  }
  func.func @transform_0(%arg0: i32) -> (i32, i32, i32) {
    %c0_i32 = arith.constant 0 : i32
    %c0_i32_0 = arith.constant 0 : i32
    %c0_i32_1 = arith.constant 0 : i32
    %c0_i32_2 = arith.constant 0 : i32
    return %c0_i32, %c0_i32_0, %c0_i32_1 : i32, i32, i32
  }
  func.func @transform_1(%arg0: i32) -> (i32, i32) {
    %c0_i32 = arith.constant 0 : i32
    %c0_i32_0 = arith.constant 0 : i32
    %c0_i32_1 = arith.constant 0 : i32
    return %c0_i32, %c0_i32_0 : i32, i32
  }
  func.func @transform_2(%arg0: i32) -> (i32, i32) {
    %c0_i32 = arith.constant 0 : i32
    %c0_i32_0 = arith.constant 0 : i32
    %c0_i32_1 = arith.constant 0 : i32
    return %c0_i32, %c0_i32_0 : i32, i32
  }
  func.func @transform_3(%arg0: i32) -> (i32, i32) {
    %c0_i32 = arith.constant 0 : i32
    %c0_i32_0 = arith.constant 0 : i32
    %c0_i32_1 = arith.constant 0 : i32
    return %c0_i32, %c0_i32_0 : i32, i32
  }
  func.func @transform_4(%arg0: i32) -> (i32, i32) {
    %c0_i32 = arith.constant 0 : i32
    %c0_i32_0 = arith.constant 0 : i32
    %c0_i32_1 = arith.constant 0 : i32
    return %c0_i32, %c0_i32_0 : i32, i32
  }
  func.func @transform_5(%arg0: i32) -> (i32, i32) {
    %c0_i32 = arith.constant 0 : i32
    %c0_i32_0 = arith.constant 0 : i32
    %c0_i32_1 = arith.constant 0 : i32
    return %c0_i32, %c0_i32_0 : i32, i32
  }
  func.func @transform_6(%arg0: i32) -> (i32, i32) {
    %c0_i32 = arith.constant 0 : i32
    %c0_i32_0 = arith.constant 0 : i32
    %c0_i32_1 = arith.constant 0 : i32
    return %c0_i32, %c0_i32_0 : i32, i32
  }
  func.func @transform_7(%arg0: i32) -> (i32, i32) {
    %c0_i32 = arith.constant 0 : i32
    %c0_i32_0 = arith.constant 0 : i32
    %c0_i32_1 = arith.constant 0 : i32
    return %c0_i32, %c0_i32_0 : i32, i32
  }
  func.func @transform_8(%arg0: i32) -> (i32, i32) {
    %c0_i32 = arith.constant 0 : i32
    %c0_i32_0 = arith.constant 0 : i32
    %c0_i32_1 = arith.constant 0 : i32
    return %c0_i32, %c0_i32_0 : i32, i32
  }
  func.func @transform_9(%arg0: i32) -> (i32, i32) {
    %c0_i32 = arith.constant 0 : i32
    %c0_i32_0 = arith.constant 0 : i32
    %c0_i32_1 = arith.constant 0 : i32
    return %c0_i32, %c0_i32_0 : i32, i32
  }
  func.func @transform_10(%arg0: i32) -> (i32, i32, i32) {
    %c0_i32 = arith.constant 0 : i32
    %c0_i32_0 = arith.constant 0 : i32
    %c0_i32_1 = arith.constant 0 : i32
    %c0_i32_2 = arith.constant 0 : i32
    return %c0_i32, %c0_i32_0, %c0_i32_1 : i32, i32, i32
  }
  func.func @transform_11(%arg0: i32) -> (i32, i32, i32) {
    %c0_i32 = arith.constant 0 : i32
    %c0_i32_0 = arith.constant 0 : i32
    %c0_i32_1 = arith.constant 0 : i32
    %c0_i32_2 = arith.constant 0 : i32
    return %c0_i32, %c0_i32_0, %c0_i32_1 : i32, i32, i32
  }
}

</mosaic_0001>

<bundles_post_ra>
// kernel: simsiam_forward.10
= control target key start
LH: loop header
LB: loop body
LE: loop exit
PB: predicated region body
PF: predicated region fallthrough
CT: control target
= control target key end

     0   :  { %s860_s12 = smov 0   ;;  %s1057_s0 = inlined_call_operand.vmem [shape: bf16[3,128,64], index: 0, kind: input, shape index: {}]   ;;  %s1058_s1 = inlined_call_operand.vmem [shape: bf16[64,64], index: 1, kind: input, shape index: {}]   ;;  %s1059_s2 = inlined_call_operand.vmem [shape: f32[2,64], index: 2, kind: input, shape index: {}]   ;;  %s1060_s3 = inlined_call_operand.vmem [shape: bf16[3,128,64], index: 3, kind: output, shape index: {}]  }
   0x1 LB: > { %s701_s13 = sadd.s32 4294967295, %s838_s12   ;;  %p705_p0 = scmp.ge.s32.totalorder %s838_s12, 1  ;;  %s838_s12 = sphi %s860_s12, %s13_s12  }
   0x2   : > { %p137_p1 = scmp.lt.s32.totalorder %s838_s12, 4 }
   0x4   : > { %p138_p2 = pnand %p705_p0, %p137_p1 }
   0x5   : > { %v818_v0 = vld [vmem:[%s1058_s1] sm:$0xff] (!%p138_p2)   ;;  %p161_p3 = scmp.lt.s32.totalorder (!%p138_p2), %s701_s13, 2  ;;  %v819_v1 = vld [vmem:[%s1058_s1 + $0x8] sm:$0xff] (!%p138_p2)   ;;  %v820_v2 = vld [vmem:[%s1058_s1 + $0x10] sm:$0xff] (!%p138_p2)   ;;  %vm260_vm0 = vcmask (!%p138_p2), 523264   ;;  %vm629_vm1 = vcmask (!%p138_p2), 519168  }
   0x6   : > { %141 = sbr.rel (%p138_p2) target bundleno = 373 (0x175), region = 32  ;;  %778 = vmatprep.subr.bf16.mxu0 (!%p138_p2), %v818_v0  ;;  %802 = vmatprep.subr.bf16.mxu1 (!%p138_p2), %v818_v0  ;;  %v821_v4 = vld [vmem:[%s1058_s1 + $0x18] sm:$0xff] (!%p138_p2)  }
   0x7   : > { %779 = vmatpush3.bf16.msra.mxu0 (!%p138_p2), %v818_v0  ;;  %806 = vmatpush3.bf16.msra.mxu1 (!%p138_p2), %v818_v0 }
   0x8   : > { %780 = vmatprep.subr.bf16.mxu0 (!%p138_p2), %v819_v1  ;;  %803 = vmatprep.subr.bf16.mxu1 (!%p138_p2), %v819_v1 }
   0xb   : > { %781 = vmatpush3.bf16.msra.mxu0 (!%p138_p2), %v819_v1  ;;  %807 = vmatpush3.bf16.msra.mxu1 (!%p138_p2), %v819_v1 }
   0xc   : > { %782 = vmatprep.subr.bf16.mxu0 (!%p138_p2), %v820_v2  ;;  %804 = vmatprep.subr.bf16.mxu1 (!%p138_p2), %v820_v2 }
   0xd   : > { %s1062_s13 = smov (!%p161_p3, %s701_s13), 2 }
   0xe   : > { %s748_s20 = sshll.u32 %s1062_s13, 6 }
   0xf   : > { %s165_s23 = scalar_lea.vmem %s1057_s0, %s748_s20  ;;  %783 = vmatpush3.bf16.msra.mxu0 %v820_v2  ;;  %808 = vmatpush3.bf16.msra.mxu1 %v820_v2  ;;  %s1020_s30 = scalar_lea.vmem %s1060_s3, %s748_s20 }
  0x10   : > { %v822_v3 = vld [vmem:[%s165_s23] sm:$0xff]   ;;  %784 = vmatprep.subr.bf16.mxu0 %v821_v4  ;;  %805 = vmatprep.subr.bf16.mxu1 %v821_v4  ;;  %v823_v6 = vld [vmem:[%s165_s23 + $0x8] sm:$0xff]   ;;  %v824_v8 = vld [vmem:[%s165_s23 + $0x10] sm:$0xff]  }
  0x11   : > { %786 = vmatprep.mubr.msk.bf16.mxu0 %vm260_vm0, %v822_v3  ;;  %v826_v5 = vld [vmem:[%s165_s23 + $0x20] sm:$0xff]   ;;  %v827_v7 = vld [vmem:[%s165_s23 + $0x28] sm:$0xff]   ;;  %v828_v9 = vld [vmem:[%s165_s23 + $0x30] sm:$0xff]  }
  0x12   : > { %794 = vmatprep.mubr.msk.bf16.mxu1 %vm260_vm0, %v826_v5  ;;  %v825_v10 = vld [vmem:[%s165_s23 + $0x18] sm:$0xff]  }
  0x13   : > { %785 = vmatpush3.bf16.msra.mxu0 %v821_v4  ;;  %809 = vmatpush3.bf16.msra.mxu1 %v821_v4  ;;  %v829_v11 = vld [vmem:[%s165_s23 + $0x38] sm:$0xff]  }
  0x16   : > { %787 = vmatmul.mubr.msk.bf16.vlgmr.msra.gmra.mrb[0].mxu0 %vm260_vm0, %v823_v6  ;;  %795 = vmatmul.mubr.msk.bf16.vlgmr.msra.gmra.mrb[0].mxu1 %vm260_vm0, %v827_v7 }
  0x17   : > { %790 = vmatprep.mubr.msk.bf16.mxu0 %vm260_vm0, %v824_v8  ;;  %798 = vmatprep.mubr.msk.bf16.mxu1 %vm260_vm0, %v828_v9 }
  0x1e   : > { %791 = vmatmul.mubr.msk.bf16.gmra.mrb[4].mxu0 %vm260_vm0, %v825_v10  ;;  %799 = vmatmul.mubr.msk.bf16.gmra.mrb[4].mxu1 %vm260_vm0, %v829_v11 }
  0xe9   : > { %v788_v12 = vpop.f32.mrb[0].mxu0  ;;  %v896_v13 = vpop.f32.mrb[0].mxu1 }
  0xea   : > { %v319_v14 = vpop.f32.mrb[1].mxu0  ;;  %v351_v15 = vpop.f32.mrb[1].mxu1  ;;  %v386_v23 = vsel %vm260_vm0, %v788_v12, 0.0  ;;  %v402_v47 = vsel %vm260_vm0, %v896_v13, 0.0 }
  0xeb   : > { %v789_v16 = vpop.f32.mrb[2].mxu0  ;;  %v797_v17 = vpop.f32.mrb[2].mxu1  ;;  %v383_v20 = vsel %vm260_vm0, %v319_v14, 0.0  ;;  %v398_v42 = vsel %vm260_vm0, %v351_v15, 0.0 }
  0xec   : > { %v322_v18 = vpop.f32.mrb[3].mxu0  ;;  %v354_v19 = vpop.f32.mrb[3].mxu1  ;;  %v388_v25 = vsel %vm260_vm0, %v789_v16, 0.0  ;;  %v404_v49 = vsel %vm260_vm0, %v797_v17, 0.0 }
  0xed   : > { %v384_v21 = vsel %vm260_vm0, %v322_v18, 0.0  ;;  %v400_v45 = vsel %vm260_vm0, %v354_v19, 0.0 }
  0xee   : > { %v385_v22 = vadd.f32 %v384_v21, %v383_v20 }
  0xf0   : > { %v387_v24 = vadd.f32 %v386_v23, %v385_v22 }
  0xf1   : > { %v792_v26 = vpop.f32.mrb[4].mxu0  ;;  %v800_v27 = vpop.f32.mrb[4].mxu1 }
  0xf2   : > { %v335_v28 = vpop.f32.mrb[5].mxu0  ;;  %v389_v29 = vadd.f32 %v388_v25, %v387_v24  ;;  %v367_v30 = vpop.f32.mrb[5].mxu1  ;;  %v394_v39 = vsel %vm260_vm0, %v792_v26, 0.0  ;;  %v410_v55 = vsel %vm260_vm0, %v800_v27, 0.0 }
  0xf3   : > { %v390_v31 = vsel %vm260_vm0, %v335_v28, 0.0  ;;  %v793_v32 = vpop.f32.mrb[6].mxu0  ;;  %v801_v33 = vpop.f32.mrb[6].mxu1  ;;  %v406_v50 = vsel %vm260_vm0, %v367_v30, 0.0 }
  0xf4   : > { %v391_v34 = vadd.f32 %v390_v31, %v389_v29  ;;  %v338_v35 = vpop.f32.mrb[7].mxu0  ;;  %v370_v36 = vpop.f32.mrb[7].mxu1  ;;  %v396_v41 = vsel %vm260_vm0, %v793_v32, 0.0  ;;  %v412_v57 = vsel %vm260_vm0, %v801_v33, 0.0 }
  0xf5   : > { %v392_v37 = vsel %vm260_vm0, %v338_v35, 0.0  ;;  %v408_v53 = vsel %vm260_vm0, %v370_v36, 0.0 }
  0xf6   : > { %v393_v38 = vadd.f32 %v392_v37, %v391_v34 }
  0xf8   : > { %v395_v40 = vadd.f32 %v394_v39, %v393_v38 }
  0xfa   : > { %v397_v43 = vadd.f32 %v396_v41, %v395_v40 }
  0xfc   : > { %v399_v44 = vadd.f32 %v398_v42, %v397_v43 }
  0xfe   : > { %v401_v46 = vadd.f32 %v400_v45, %v399_v44 }
 0x100   : > { %v403_v48 = vadd.f32 %v402_v47, %v401_v46 }
 0x102   : > { %v405_v51 = vadd.f32 %v404_v49, %v403_v48 }
 0x104   : > { %v407_v52 = vadd.f32 %v406_v50, %v405_v51 }
 0x106   : > { %v409_v54 = vadd.f32 %v408_v53, %v407_v52 }
 0x108   : > { %v411_v56 = vadd.f32 %v410_v55, %v409_v54 }
 0x10a   : > { %v413_v58 = vadd.f32 %v412_v57, %v411_v56 }
 0x10c   : > { %v414_v59 = vrot.slane %v413_v58, 4 }
 0x10e   : > { %v415_v60 = vadd.f32 %v414_v59, %v413_v58 }
 0x110   : > { %v416_v61 = vrot.slane %v415_v60, 2 }
 0x112   : > { %v417_v62 = vadd.f32 %v416_v61, %v415_v60 }
 0x114   : > { %v418_v63 = vrot.slane %v417_v62, 1 }
 0x116   : > { %v419_v0 = vadd.f32 %v418_v63, %v417_v62 }
 0x118   : > { %v420_v1 = vmul.f32 0.0078125, %v419_v0 }
 0x11a   : > { %v915_v2 = vsub.f32 %v319_v14, %v420_v1  ;;  %v917_v3 = vsub.f32 %v322_v18, %v420_v1  ;;  %v919_v4 = vsub.f32 %v788_v12, %v420_v1  ;;  %v921_v5 = vsub.f32 %v789_v16, %v420_v1 }
 0x11b   : > { %v923_v6 = vsub.f32 %v335_v28, %v420_v1  ;;  %v925_v7 = vsub.f32 %v338_v35, %v420_v1  ;;  %v927_v8 = vsub.f32 %v792_v26, %v420_v1  ;;  %v929_v9 = vsub.f32 %v793_v32, %v420_v1 }
 0x11c   : > { %v931_v10 = vsub.f32 %v351_v15, %v420_v1  ;;  %v933_v11 = vsub.f32 %v354_v19, %v420_v1  ;;  %v936_v14 = vsub.f32 %v896_v13, %v420_v1  ;;  %v938_v18 = vsub.f32 %v797_v17, %v420_v1 }
 0x11d   : > { %v940_v12 = vsub.f32 %v367_v30, %v420_v1  ;;  %v942_v16 = vsub.f32 %v370_v36, %v420_v1  ;;  %v944_v20 = vsub.f32 %v800_v27, %v420_v1  ;;  %v946_v21 = vsub.f32 %v801_v33, %v420_v1 }
 0x11e   : > { %v437_v22 = vmul.f32 %v915_v2, %v915_v2  ;;  %v438_v15 = vmul.f32 %v917_v3, %v917_v3  ;;  %v439_v13 = vmul.f32 %v919_v4, %v919_v4  ;;  %v440_v17 = vmul.f32 %v921_v5, %v921_v5 }
 0x11f   : > { %v441_v25 = vmul.f32 %v923_v6, %v923_v6  ;;  %v442_v28 = vmul.f32 %v925_v7, %v925_v7  ;;  %v443_v31 = vmul.f32 %v927_v8, %v927_v8  ;;  %v444_v34 = vmul.f32 %v929_v9, %v929_v9 }
 0x120   : > { %v453_v19 = vsel %vm260_vm0, %v437_v22, 0.0  ;;  %v454_v23 = vsel %vm260_vm0, %v438_v15, 0.0  ;;  %v456_v26 = vsel %vm260_vm0, %v439_v13, 0.0  ;;  %v458_v29 = vsel %vm260_vm0, %v440_v17, 0.0 }
 0x121   : > { %v455_v24 = vadd.f32 %v454_v23, %v453_v19  ;;  %v460_v32 = vsel %vm260_vm0, %v441_v25, 0.0  ;;  %v462_v35 = vsel %vm260_vm0, %v442_v28, 0.0  ;;  %v445_v37 = vmul.f32 %v931_v10, %v931_v10 }
 0x122   : > { %v464_v38 = vsel %vm260_vm0, %v443_v31, 0.0  ;;  %v446_v40 = vmul.f32 %v933_v11, %v933_v11  ;;  %v466_v41 = vsel %vm260_vm0, %v444_v34, 0.0  ;;  %v447_v43 = vmul.f32 %v936_v14, %v936_v14 }
 0x123   : > { %v457_v27 = vadd.f32 %v456_v26, %v455_v24  ;;  %v468_v44 = vsel %vm260_vm0, %v445_v37, 0.0  ;;  %v448_v46 = vmul.f32 %v938_v18, %v938_v18  ;;  %v449_v49 = vmul.f32 %v940_v12, %v940_v12 }
 0x124   : > { %v470_v47 = vsel %vm260_vm0, %v446_v40, 0.0  ;;  %v472_v50 = vsel %vm260_vm0, %v447_v43, 0.0  ;;  %v450_v52 = vmul.f32 %v942_v16, %v942_v16  ;;  %v451_v55 = vmul.f32 %v944_v20, %v944_v20 }
 0x125   : > { %v459_v30 = vadd.f32 %v458_v29, %v457_v27  ;;  %v474_v53 = vsel %vm260_vm0, %v448_v46, 0.0  ;;  %v476_v56 = vsel %vm260_vm0, %v449_v49, 0.0  ;;  %v452_v58 = vmul.f32 %v946_v21, %v946_v21  ;;  %v382_v29 = vld [vmem:[%s1059_s2] sm:$0x3] }
 0x126   : > { %v478_v59 = vsel %vm260_vm0, %v450_v52, 0.0  ;;  %v480_v61 = vsel %vm260_vm0, %v451_v55, 0.0  ;;  %v509_v25 = vlaneseq }
 0x127   : > { %v461_v33 = vadd.f32 %v460_v32, %v459_v30  ;;  %v482_v63 = vsel %vm260_vm0, %v452_v58, 0.0 }
 0x128   : > { %v510_v26 = vshrl.u32 %v509_v25, 7 }
 0x129   : > { %v463_v36 = vadd.f32 %v462_v35, %v461_v33 }
 0x12a   : > { %v511_v27 = vsub.s32 0, %v510_v26  ;;  %v531_v28 = vsub.s32 1, %v510_v26 }
 0x12b   : > { %v465_v39 = vadd.f32 %v464_v38, %v463_v36 }
 0x12c   : > { %v512_v31 = vrot.slane %v382_v29, %v511_v27  ;;  %v532_v32 = vrot.slane %v382_v29, %v531_v28 }
 0x12d   : > { %v467_v42 = vadd.f32 %v466_v41, %v465_v39 }
 0x12f   : > { %v469_v45 = vadd.f32 %v468_v44, %v467_v42 }
 0x131   : > { %v471_v48 = vadd.f32 %v470_v47, %v469_v45 }
 0x133   : > { %v473_v51 = vadd.f32 %v472_v50, %v471_v48 }
 0x135   : > { %v475_v54 = vadd.f32 %v474_v53, %v473_v51 }
 0x137   : > { %v477_v57 = vadd.f32 %v476_v56, %v475_v54 }
 0x139   : > { %v479_v60 = vadd.f32 %v478_v59, %v477_v57 }
 0x13b   : > { %v481_v62 = vadd.f32 %v480_v61, %v479_v60 }
 0x13d   : > { %v483_v0 = vadd.f32 %v482_v63, %v481_v62 }
 0x13f   : > { %v484_v1 = vrot.slane %v483_v0, 4 }
 0x141   : > { %v485_v22 = vadd.f32 %v484_v1, %v483_v0 }
 0x143   : > { %v486_v15 = vrot.slane %v485_v22, 2 }
 0x145   : > { %v487_v13 = vadd.f32 %v486_v15, %v485_v22 }
 0x147   : > { %v488_v17 = vrot.slane %v487_v13, 1 }
 0x149   : > { %v489_v19 = vadd.f32 %v488_v17, %v487_v13 }
 0x14b   : > { %v490_v23 = vmul.f32 0.0078125, %v489_v19 }
 0x14d   : > { %v491_v24 = vadd.f32 1e-05, %v490_v23 }
 0x14f   : > { %830 = vrsqrt.f32 %v491_v24 }
 0x159   : > { %v831_v30 = vpop.eup %830 }
 0x15a   : > { %v493_v33 = vmul.f32 %v831_v30, %v915_v2  ;;  %v494_v34 = vmul.f32 %v831_v30, %v917_v3  ;;  %v495_v35 = vmul.f32 %v831_v30, %v919_v4  ;;  %v496_v36 = vmul.f32 %v831_v30, %v921_v5 }
 0x15b   : > { %v497_v37 = vmul.f32 %v831_v30, %v923_v6  ;;  %v498_v38 = vmul.f32 %v831_v30, %v925_v7  ;;  %v499_v39 = vmul.f32 %v831_v30, %v927_v8  ;;  %v500_v40 = vmul.f32 %v831_v30, %v929_v9 }
 0x15c   : > { %v501_v41 = vmul.f32 %v831_v30, %v931_v10  ;;  %v502_v42 = vmul.f32 %v831_v30, %v933_v11  ;;  %v503_v2 = vmul.f32 %v831_v30, %v936_v14  ;;  %v504_v3 = vmul.f32 %v831_v30, %v938_v18 }
 0x15d   : > { %v505_v4 = vmul.f32 %v831_v30, %v940_v12  ;;  %v506_v5 = vmul.f32 %v831_v30, %v942_v16  ;;  %v507_v6 = vmul.f32 %v831_v30, %v944_v20  ;;  %v508_v7 = vmul.f32 %v831_v30, %v946_v21 }
 0x15e   : > { %v513_v43 = vmul.f32 %v512_v31, %v493_v33  ;;  %v514_v8 = vmul.f32 %v512_v31, %v494_v34  ;;  %v515_v44 = vmul.f32 %v512_v31, %v495_v35  ;;  %v516_v9 = vmul.f32 %v512_v31, %v496_v36 }
 0x15f   : > { %v517_v45 = vmul.f32 %v512_v31, %v497_v37  ;;  %v518_v10 = vmul.f32 %v512_v31, %v498_v38  ;;  %v519_v46 = vmul.f32 %v512_v31, %v499_v39  ;;  %v520_v11 = vmul.f32 %v512_v31, %v500_v40 }
 0x160   : > { %v521_v47 = vmul.f32 %v512_v31, %v501_v41  ;;  %v522_v14 = vmul.f32 %v512_v31, %v502_v42  ;;  %v523_v48 = vmul.f32 %v512_v31, %v503_v2  ;;  %v524_v18 = vmul.f32 %v512_v31, %v504_v3 }
 0x161   : > { %v525_v49 = vmul.f32 %v512_v31, %v505_v4  ;;  %v526_v12 = vmul.f32 %v512_v31, %v506_v5  ;;  %v527_v50 = vmul.f32 %v512_v31, %v507_v6  ;;  %v528_v16 = vmul.f32 %v512_v31, %v508_v7 }
 0x162   : > { %v533_v20 = vadd.f32 %v532_v32, %v513_v43  ;;  %v534_v51 = vadd.f32 %v532_v32, %v514_v8  ;;  %v535_v21 = vadd.f32 %v532_v32, %v515_v44  ;;  %v536_v52 = vadd.f32 %v532_v32, %v516_v9 }
 0x163   : > { %v537_v53 = vadd.f32 %v532_v32, %v517_v45  ;;  %v538_v54 = vadd.f32 %v532_v32, %v518_v10  ;;  %v539_v55 = vadd.f32 %v532_v32, %v519_v46  ;;  %v540_v56 = vadd.f32 %v532_v32, %v520_v11 }
 0x164   : > { %v541_v57 = vadd.f32 %v532_v32, %v521_v47  ;;  %v542_v58 = vadd.f32 %v532_v32, %v522_v14  ;;  %v543_v59 = vadd.f32 %v532_v32, %v523_v48  ;;  %v544_v60 = vadd.f32 %v532_v32, %v524_v18 }
 0x165   : > { %v545_v61 = vadd.f32 %v532_v32, %v525_v49  ;;  %v546_v62 = vadd.f32 %v532_v32, %v526_v12  ;;  %v547_v63 = vadd.f32 %v532_v32, %v527_v50  ;;  %v548_v0 = vadd.f32 %v532_v32, %v528_v16 }
 0x166   : > { %v549_v1 = vmax.f32 %v533_v20, 0.0  ;;  %v550_v22 = vmax.f32 %v534_v51, 0.0  ;;  %v551_v15 = vmax.f32 %v535_v21, 0.0  ;;  %v552_v13 = vmax.f32 %v536_v52, 0.0 }
 0x167   : > { %v553_v17 = vmax.f32 %v537_v53, 0.0  ;;  %v554_v19 = vmax.f32 %v538_v54, 0.0  ;;  %v555_v23 = vmax.f32 %v539_v55, 0.0  ;;  %v556_v24 = vmax.f32 %v540_v56, 0.0 }
 0x168   : > { %v557_v25 = vmax.f32 %v541_v57, 0.0  ;;  %v558_v26 = vmax.f32 %v542_v58, 0.0  ;;  %v559_v27 = vmax.f32 %v543_v59, 0.0  ;;  %v560_v28 = vmax.f32 %v544_v60, 0.0 }
 0x169   : > { %v561_v29 = vmax.f32 %v545_v61, 0.0  ;;  %v562_v30 = vmax.f32 %v546_v62, 0.0  ;;  %v563_v31 = vmax.f32 %v547_v63, 0.0  ;;  %v564_v32 = vmax.f32 %v548_v0, 0.0 }
 0x16a   : > { %v750_v33 = vpack.c.bf16 %v549_v1, %v549_v1  ;;  %v751_v34 = vpack.c.bf16 %v550_v22, %v550_v22  ;;  %v752_v35 = vpack.c.bf16 %v551_v15, %v551_v15  ;;  %v753_v36 = vpack.c.bf16 %v552_v13, %v552_v13 }
 0x16b   : > { %v754_v37 = vpack.c.bf16 %v553_v17, %v553_v17  ;;  %v755_v38 = vpack.c.bf16 %v554_v19, %v554_v19  ;;  %v756_v39 = vpack.c.bf16 %v555_v23, %v555_v23  ;;  %v757_v40 = vpack.c.bf16 %v556_v24, %v556_v24 }
 0x16c   : > { %v758_v41 = vpack.c.bf16 %v557_v25, %v557_v25  ;;  %v759_v42 = vpack.c.bf16 %v558_v26, %v558_v26  ;;  %v760_v2 = vpack.c.bf16 %v559_v27, %v559_v27  ;;  %v761_v3 = vpack.c.bf16 %v560_v28, %v560_v28  ;;  %630 = vst.msk [vmem:[%s1020_s30] sm:$0xf] %vm629_vm1, %v750_v33 }
 0x16d   : > { %631 = vst.msk [vmem:[%s1020_s30 + $0x4] sm:$0xf] %vm629_vm1, %v751_v34  ;;  %632 = vst.msk [vmem:[%s1020_s30 + $0x8] sm:$0xf] %vm629_vm1, %v752_v35  ;;  %v762_v4 = vpack.c.bf16 %v561_v29, %v561_v29  ;;  %v763_v5 = vpack.c.bf16 %v562_v30, %v562_v30  ;;  %v764_v6 = vpack.c.bf16 %v563_v31, %v563_v31 }
 0x16e   : > { %633 = vst.msk [vmem:[%s1020_s30 + $0xc] sm:$0xf] %vm629_vm1, %v753_v36  ;;  %v765_v7 = vpack.c.bf16 %v564_v32, %v564_v32  ;;  %634 = vst.msk [vmem:[%s1020_s30 + $0x10] sm:$0xf] %vm629_vm1, %v754_v37 }
 0x16f   : > { %635 = vst.msk [vmem:[%s1020_s30 + $0x14] sm:$0xf] %vm629_vm1, %v755_v38  ;;  %636 = vst.msk [vmem:[%s1020_s30 + $0x18] sm:$0xf] %vm629_vm1, %v756_v39 }
 0x170   : > { %637 = vst.msk [vmem:[%s1020_s30 + $0x1c] sm:$0xf] %vm629_vm1, %v757_v40  ;;  %638 = vst.msk [vmem:[%s1020_s30 + $0x20] sm:$0xf] %vm629_vm1, %v758_v41 }
 0x171   : > { %639 = vst.msk [vmem:[%s1020_s30 + $0x24] sm:$0xf] %vm629_vm1, %v759_v42  ;;  %640 = vst.msk [vmem:[%s1020_s30 + $0x28] sm:$0xf] %vm629_vm1, %v760_v2 }
 0x172   : > { %641 = vst.msk [vmem:[%s1020_s30 + $0x2c] sm:$0xf] %vm629_vm1, %v761_v3  ;;  %642 = vst.msk [vmem:[%s1020_s30 + $0x30] sm:$0xf] %vm629_vm1, %v762_v4 }
 0x173   : > { %643 = vst.msk [vmem:[%s1020_s30 + $0x34] sm:$0xf] %vm629_vm1, %v763_v5  ;;  %644 = vst.msk [vmem:[%s1020_s30 + $0x38] sm:$0xf] %vm629_vm1, %v764_v6 }
 0x174   : > { %645 = vst.msk [vmem:[%s1020_s30 + $0x3c] sm:$0xf] %vm629_vm1, %v765_v7 }
 0x175 PF: > { %s13_s12 = sadd.s32 1, %s838_s12  }
 0x176   : > { %p10_p4 = scmp.ge.s32.totalorder %s13_s12, 5  }
 0x178   :  { %12 = sbr.rel (!%p10_p4) target bundleno = 1 (0x1), region = 62 }

// kernel: simsiam_forward.11
= control target key start
LH: loop header
LB: loop body
LE: loop exit
PB: predicated region body
PF: predicated region fallthrough
CT: control target
= control target key end

     0   :  { %s1045_s12 = smov 0   ;;  %s1203_s0 = inlined_call_operand.vmem [shape: bf16[3,32,576], index: 0, kind: input, shape index: {}]   ;;  %s1204_s1 = inlined_call_operand.vmem [shape: bf16[576,64], index: 1, kind: input, shape index: {}]   ;;  %s1205_s2 = inlined_call_operand.vmem [shape: f32[2,64], index: 2, kind: input, shape index: {}]   ;;  %s1206_s3 = inlined_call_operand.vmem [shape: bf16[3,32,64], index: 3, kind: output, shape index: {}]  }
   0x1 LB: > { %s815_s13 = sadd.s32 4294967295, %s1023_s12   ;;  %p819_p0 = scmp.ge.s32.totalorder %s1023_s12, 1  ;;  %s1023_s12 = sphi %s1045_s12, %s13_s12  }
   0x2   : > { %p137_p1 = scmp.lt.s32.totalorder %s1023_s12, 4 }
   0x4   : > { %p138_p2 = pnand %p819_p0, %p137_p1 }
   0x5   : > { %v965_v0 = vld [vmem:[%s1204_s1 + $0x40] sm:$0xff] (!%p138_p2)   ;;  %v969_v4 = vld [vmem:[%s1204_s1 + $0x48] sm:$0xff] (!%p138_p2)   ;;  %v973_v8 = vld [vmem:[%s1204_s1 + $0x50] sm:$0xff] (!%p138_p2)   ;;  %p161_p3 = scmp.lt.s32.totalorder (!%p138_p2), %s815_s13, 2  ;;  %vm522_vm0 = vcmask (!%p138_p2), 523264   ;;  %vm755_vm1 = vcmask (!%p138_p2), 519168  }
   0x6   : > { %141 = sbr.rel (%p138_p2) target bundleno = 344 (0x158), region = 32  ;;  %v966_v1 = vld [vmem:[%s1204_s1 + $0xc0] sm:$0xff] (!%p138_p2)   ;;  %882 = vmatprep.subr.bf16.mxu0 (!%p138_p2), %v965_v0  ;;  %v970_v5 = vld [vmem:[%s1204_s1 + $0xc8] sm:$0xff] (!%p138_p2)   ;;  %v974_v9 = vld [vmem:[%s1204_s1 + $0xd0] sm:$0xff] (!%p138_p2)  }
   0x7   : > { %v967_v2 = vld [vmem:[%s1204_s1] sm:$0xff] (!%p138_p2)   ;;  %910 = vmatprep.subr.bf16.mxu1 (!%p138_p2), %v966_v1  ;;  %v971_v6 = vld [vmem:[%s1204_s1 + $0x8] sm:$0xff] (!%p138_p2)   ;;  %v975_v10 = vld [vmem:[%s1204_s1 + $0x10] sm:$0xff] (!%p138_p2)  }
   0x8   : > { %v968_v3 = vld [vmem:[%s1204_s1 + $0x80] sm:$0xff] (!%p138_p2)   ;;  %883 = vmatpush3.bf16.msra.mxu0 (!%p138_p2), %v967_v2  ;;  %v972_v7 = vld [vmem:[%s1204_s1 + $0x88] sm:$0xff] (!%p138_p2)   ;;  %v976_v11 = vld [vmem:[%s1204_s1 + $0x90] sm:$0xff] (!%p138_p2)  }
   0x9   : > { %911 = vmatpush3.bf16.msra.mxu1 (!%p138_p2), %v968_v3  ;;  %884 = vmatprep.subr.bf16.mxu0 (!%p138_p2), %v969_v4  ;;  %v977_v12 = vld [vmem:[%s1204_s1 + $0x58] sm:$0xff] (!%p138_p2)   ;;  %v981_v16 = vld [vmem:[%s1204_s1 + $0x60] sm:$0xff] (!%p138_p2)   ;;  %v985_v20 = vld [vmem:[%s1204_s1 + $0x68] sm:$0xff] (!%p138_p2)  }
   0xa   : > { %912 = vmatprep.subr.bf16.mxu1 (!%p138_p2), %v970_v5  ;;  %v978_v13 = vld [vmem:[%s1204_s1 + $0xd8] sm:$0xff] (!%p138_p2)   ;;  %v982_v17 = vld [vmem:[%s1204_s1 + $0xe0] sm:$0xff] (!%p138_p2)   ;;  %v986_v21 = vld [vmem:[%s1204_s1 + $0xe8] sm:$0xff] (!%p138_p2)  }
   0xb   : > { %v979_v14 = vld [vmem:[%s1204_s1 + $0x18] sm:$0xff] (!%p138_p2)   ;;  %v983_v18 = vld [vmem:[%s1204_s1 + $0x20] sm:$0xff] (!%p138_p2)   ;;  %v987_v22 = vld [vmem:[%s1204_s1 + $0x28] sm:$0xff] (!%p138_p2)  }
   0xc   : > { %885 = vmatpush3.bf16.msra.mxu0 (!%p138_p2), %v971_v6  ;;  %v980_v15 = vld [vmem:[%s1204_s1 + $0x98] sm:$0xff] (!%p138_p2)   ;;  %v984_v19 = vld [vmem:[%s1204_s1 + $0xa0] sm:$0xff] (!%p138_p2)   ;;  %v988_v23 = vld [vmem:[%s1204_s1 + $0xa8] sm:$0xff] (!%p138_p2)  }
   0xd   : > { %913 = vmatpush3.bf16.msra.mxu1 %v972_v7  ;;  %886 = vmatprep.subr.bf16.mxu0 %v973_v8  ;;  %s1208_s13 = smov (!%p161_p3, %s815_s13), 2  ;;  %v989_v24 = vld [vmem:[%s1204_s1 + $0x70] sm:$0xff]   ;;  %v993_v28 = vld [vmem:[%s1204_s1 + $0x78] sm:$0xff]   ;;  %v1003_v36 = vld [vmem:[%s1204_s1 + $0x100] sm:$0xff]  }
   0xe   : > { %914 = vmatprep.subr.bf16.mxu1 %v974_v9  ;;  %v990_v25 = vld [vmem:[%s1204_s1 + $0xf0] sm:$0xff]   ;;  %s956_s16 = smul.u32 80, %s1208_s13  ;;  %v994_v29 = vld [vmem:[%s1204_s1 + $0xf8] sm:$0xff]   ;;  %v1004_v37 = vld [vmem:[%s1204_s1 + $0x108] sm:$0xff]   ;;  %s877_s17 = sshll.u32 %s1208_s13, 4 }
   0xf   : > { %v991_v26 = vld [vmem:[%s1204_s1 + $0x30] sm:$0xff]   ;;  %v995_v30 = vld [vmem:[%s1204_s1 + $0x38] sm:$0xff]   ;;  %s170_s20 = scalar_lea.vmem %s1206_s3, %s877_s17 }
  0x10   : > { %887 = vmatpush3.bf16.msra.mxu0 %v975_v10  ;;  %v992_v27 = vld [vmem:[%s1204_s1 + $0xb0] sm:$0xff]   ;;  %s1153_s27 = scalar_lea.vmem %s1203_s0, %s956_s16  ;;  %v996_v31 = vld [vmem:[%s1204_s1 + $0xb8] sm:$0xff]  }
  0x11   : > { %915 = vmatpush3.bf16.msra.mxu1 %v976_v11  ;;  %888 = vmatprep.subr.bf16.mxu0 %v977_v12  ;;  %v997_v32 = vld [vmem:[%s1153_s27] ss:$20 sps:$4 sm:$0xff]   ;;  %v999_v33 = vld [vmem:[%s1153_s27 + $0x4] ss:$20 sps:$4 sm:$0xff]   ;;  %v1000_v34 = vld [vmem:[%s1153_s27 + $0x8] ss:$20 sps:$4 sm:$0xff]  }
  0x12   : > { %916 = vmatprep.subr.bf16.mxu1 %v978_v13  ;;  %v1002_v35 = vld [vmem:[%s1153_s27 + $0xc] ss:$20 sps:$4 sm:$0xff]   ;;  %561 = vmatprep.mubr.bf16.mxu0 %v999_v33  ;;  %v1007_v39 = vld [vmem:[%s1153_s27 + $0x34] ss:$20 sps:$4 sm:$0xff]   ;;  %v1010_v42 = vld [vmem:[%s1153_s27 + $0x30] ss:$20 sps:$4 sm:$0xff]  }
  0x13   : > { %610 = vmatprep.mubr.bf16.mxu1 %v1002_v35  ;;  %v1005_v38 = vld [vmem:[%s1153_s27 + $0x2c] ss:$20 sps:$4 sm:$0xff]   ;;  %v1009_v40 = vld [vmem:[%s1153_s27 + $0x28] ss:$20 sps:$4 sm:$0xff]   ;;  %v1011_v41 = vld [vmem:[%s1204_s1 + $0x110] sm:$0xff]  }
  0x14   : > { %889 = vmatpush3.bf16.msra.mxu0 %v979_v14  ;;  %v1013_v43 = vld [vmem:[%s1153_s27 + $0x10] ss:$20 sps:$4 sm:$0xff]   ;;  %v1012_v44 = vld [vmem:[%s1204_s1 + $0x118] sm:$0xff]  }
  0x15   : > { %917 = vmatpush3.bf16.msra.mxu1 %v980_v15  ;;  %890 = vmatprep.subr.bf16.mxu0 %v981_v16  ;;  %v1014_v45 = vld [vmem:[%s1153_s27 + $0x38] ss:$20 sps:$4 sm:$0xff]  }
  0x16   : > { %918 = vmatprep.subr.bf16.mxu1 %v982_v17 }
  0x18   : > { %891 = vmatpush3.bf16.msra.mxu0 %v983_v18 }
  0x19   : > { %919 = vmatpush3.bf16.msra.mxu1 %v984_v19  ;;  %892 = vmatprep.subr.bf16.mxu0 %v985_v20 }
  0x1a   : > { %920 = vmatprep.subr.bf16.mxu1 %v986_v21 }
  0x1c   : > { %893 = vmatpush3.bf16.msra.mxu0 %v987_v22 }
  0x1d   : > { %921 = vmatpush3.bf16.msra.mxu1 %v988_v23  ;;  %894 = vmatprep.subr.bf16.mxu0 %v989_v24 }
  0x1e   : > { %922 = vmatprep.subr.bf16.mxu1 %v990_v25 }
  0x20   : > { %895 = vmatpush3.bf16.msra.mxu0 %v991_v26 }
  0x21   : > { %923 = vmatpush3.bf16.msra.mxu1 %v992_v27  ;;  %896 = vmatprep.subr.bf16.mxu0 %v993_v28 }
  0x22   : > { %924 = vmatprep.subr.bf16.mxu1 %v994_v29 }
  0x24   : > { %897 = vmatpush3.bf16.msra.mxu0 %v995_v30 }
  0x25   : > { %925 = vmatpush3.bf16.msra.mxu1 %v996_v31  ;;  %944 = vmatprep.subr.bf16.mxu0 %v1003_v36 }
  0x27   : > { %562 = vmatmul.mubr.bf16.vlgmr.msra.gmra.mrb[0].mxu0 %v997_v32 }
  0x28   : > { %611 = vmatmul.mubr.bf16.vlgmr.msra.gmra.mrb[0].mxu1 %v1000_v34  ;;  %945 = vmatpush3.bf16.msra.mxu0 %v1003_v36 }
  0x29   : > { %946 = vmatprep.subr.bf16.mxu0 %v1004_v37  ;;  %569 = vmatprep.mubr.bf16.mxu0 %v1005_v38 }
  0x2a   : > { %618 = vmatprep.mubr.bf16.mxu1 %v1007_v39 }
  0x2c   : > { %947 = vmatpush3.bf16.msra.mxu0 %v1004_v37 }
  0x2d   : > { %948 = vmatprep.subr.bf16.mxu0 %v1011_v41 }
  0x2f   : > { %570 = vmatmul.mubr.bf16.gmra.mrb[4].mxu0 %v1009_v40 }
  0x30   : > { %619 = vmatmul.mubr.bf16.gmra.mrb[4].mxu1 %v1010_v42  ;;  %952 = vmatprep.mubr.msk.bf16.mxu0 %vm522_vm0, %v1013_v43 }
  0x31   : > { %949 = vmatpush3.bf16.msra.mxu0 %v1011_v41 }
  0x32   : > { %950 = vmatprep.subr.bf16.mxu0 %v1012_v44 }
  0x35   : > { %951 = vmatpush3.bf16.msra.mxu0 %v1012_v44 }
  0x38   : > { %953 = vmatmul.mubr.msk.bf16.vlgmr.msra.gmra.mrb[8].mxu0 %vm522_vm0, %v1014_v45 }
  0xfa   : > { %v898_v46 = vpop.f32.mrb[0].mxu0 }
  0xfb   : > { %v926_v47 = vpop.f32.mrb[0].mxu1  ;;  %v899_v48 = vpop.f32.mrb[1].mxu0 }
  0xfc   : > { %v900_v49 = vadd.f32 %v899_v48, %v898_v46  ;;  %v927_v50 = vpop.f32.mrb[1].mxu1  ;;  %v901_v51 = vpop.f32.mrb[2].mxu0 }
  0xfd   : > { %v928_v52 = vadd.f32 %v927_v50, %v926_v47  ;;  %v929_v53 = vpop.f32.mrb[2].mxu1  ;;  %v902_v54 = vpop.f32.mrb[3].mxu0 }
  0xfe   : > { %v903_v55 = vadd.f32 %v902_v54, %v901_v51  ;;  %v930_v56 = vpop.f32.mrb[3].mxu1  ;;  %v719_v54 = vlaneseq }
  0xff   : > { %v931_v57 = vadd.f32 %v930_v56, %v929_v53  ;;  %v613_v58 = vadd.f32 %v928_v52, %v900_v49 }
 0x100   : > { %v720_v56 = vshrl.u32 %v719_v54, 7 }
 0x101   : > { %v616_v59 = vadd.f32 %v931_v57, %v903_v55 }
 0x102   : > { %v904_v60 = vpop.f32.mrb[4].mxu0  ;;  %v721_v57 = vsub.s32 0, %v720_v56 }
 0x103   : > { %v932_v61 = vpop.f32.mrb[4].mxu1  ;;  %v905_v62 = vpop.f32.mrb[5].mxu0 }
 0x104   : > { %v906_v63 = vadd.f32 %v905_v62, %v904_v60  ;;  %v933_v0 = vpop.f32.mrb[5].mxu1  ;;  %v907_v1 = vpop.f32.mrb[6].mxu0 }
 0x105   : > { %v934_v2 = vadd.f32 %v933_v0, %v932_v61  ;;  %v935_v3 = vpop.f32.mrb[6].mxu1  ;;  %v908_v4 = vpop.f32.mrb[7].mxu0 }
 0x106   : > { %v909_v5 = vadd.f32 %v908_v4, %v907_v1  ;;  %v936_v6 = vpop.f32.mrb[7].mxu1 }
 0x107   : > { %v937_v7 = vadd.f32 %v936_v6, %v935_v3  ;;  %v621_v8 = vadd.f32 %v934_v2, %v906_v63 }
 0x109   : > { %v624_v9 = vadd.f32 %v937_v7, %v909_v5 }
 0x10b   : > { %v954_v10 = vpop.f32.mrb[8].mxu0 }
 0x10c   : > { %v670_v11 = vadd.f32 %v954_v10, %v621_v8  ;;  %v661_v12 = vpop.f32.mrb[9].mxu0 }
 0x10d   : > { %v662_v13 = vadd.f32 %v661_v12, %v613_v58  ;;  %v955_v14 = vpop.f32.mrb[10].mxu0  ;;  %v676_v58 = vld [vmem:[%s1205_s2] sm:$0x3] }
 0x10e   : > { %v673_v15 = vadd.f32 %v955_v14, %v624_v9  ;;  %v664_v16 = vpop.f32.mrb[11].mxu0  ;;  %v680_v21 = vsel %vm522_vm0, %v670_v11, 0.0  ;;  %v722_v60 = vrot.slane %v676_v58, %v721_v57 }
 0x10f   : > { %v665_v17 = vadd.f32 %v664_v16, %v616_v59  ;;  %v677_v18 = vsel %vm522_vm0, %v662_v13, 0.0  ;;  %v729_v59 = vsub.s32 1, %v720_v56 }
 0x110   : > { %v682_v23 = vsel %vm522_vm0, %v673_v15, 0.0 }
 0x111   : > { %v678_v19 = vsel %vm522_vm0, %v665_v17, 0.0  ;;  %v730_v62 = vrot.slane %v676_v58, %v729_v59 }
 0x112   : > { %v679_v20 = vadd.f32 %v678_v19, %v677_v18 }
 0x114   : > { %v681_v22 = vadd.f32 %v680_v21, %v679_v20 }
 0x116   : > { %v683_v24 = vadd.f32 %v682_v23, %v681_v22 }
 0x118   : > { %v684_v25 = vrot.slane %v683_v24, 4 }
 0x11a   : > { %v685_v26 = vadd.f32 %v684_v25, %v683_v24 }
 0x11c   : > { %v686_v27 = vrot.slane %v685_v26, 2 }
 0x11e   : > { %v687_v28 = vadd.f32 %v686_v27, %v685_v26 }
 0x120   : > { %v688_v29 = vrot.slane %v687_v28, 1 }
 0x122   : > { %v689_v30 = vadd.f32 %v688_v29, %v687_v28 }
 0x124   : > { %v690_v31 = vmul.f32 0.03125, %v689_v30 }
 0x126   : > { %v691_v32 = vsub.f32 %v662_v13, %v690_v31  ;;  %v692_v33 = vsub.f32 %v665_v17, %v690_v31  ;;  %v693_v34 = vsub.f32 %v670_v11, %v690_v31  ;;  %v694_v35 = vsub.f32 %v673_v15, %v690_v31 }
 0x128   : > { %v695_v36 = vmul.f32 %v691_v32, %v691_v32  ;;  %v696_v37 = vmul.f32 %v692_v33, %v692_v33  ;;  %v697_v38 = vmul.f32 %v693_v34, %v693_v34  ;;  %v698_v39 = vmul.f32 %v694_v35, %v694_v35 }
 0x12a   : > { %v699_v40 = vsel %vm522_vm0, %v695_v36, 0.0  ;;  %v700_v41 = vsel %vm522_vm0, %v696_v37, 0.0  ;;  %v702_v43 = vsel %vm522_vm0, %v697_v38, 0.0  ;;  %v704_v45 = vsel %vm522_vm0, %v698_v39, 0.0 }
 0x12b   : > { %v701_v42 = vadd.f32 %v700_v41, %v699_v40 }
 0x12d   : > { %v703_v44 = vadd.f32 %v702_v43, %v701_v42 }
 0x12f   : > { %v705_v46 = vadd.f32 %v704_v45, %v703_v44 }
 0x131   : > { %v706_v47 = vrot.slane %v705_v46, 4 }
 0x133   : > { %v707_v48 = vadd.f32 %v706_v47, %v705_v46 }
 0x135   : > { %v708_v49 = vrot.slane %v707_v48, 2 }
 0x137   : > { %v709_v50 = vadd.f32 %v708_v49, %v707_v48 }
 0x139   : > { %v710_v51 = vrot.slane %v709_v50, 1 }
 0x13b   : > { %v711_v52 = vadd.f32 %v710_v51, %v709_v50 }
 0x13d   : > { %v712_v53 = vmul.f32 0.03125, %v711_v52 }
 0x13f   : > { %v713_v55 = vadd.f32 1e-05, %v712_v53 }
 0x141   : > { %1015 = vrsqrt.f32 %v713_v55 }
 0x14b   : > { %v1016_v61 = vpop.eup %1015 }
 0x14c   : > { %v715_v63 = vmul.f32 %v1016_v61, %v691_v32  ;;  %v716_v0 = vmul.f32 %v1016_v61, %v692_v33  ;;  %v717_v1 = vmul.f32 %v1016_v61, %v693_v34  ;;  %v718_v2 = vmul.f32 %v1016_v61, %v694_v35 }
 0x14e   : > { %v723_v3 = vmul.f32 %v722_v60, %v715_v63  ;;  %v724_v4 = vmul.f32 %v722_v60, %v716_v0  ;;  %v725_v5 = vmul.f32 %v722_v60, %v717_v1  ;;  %v726_v6 = vmul.f32 %v722_v60, %v718_v2 }
 0x150   : > { %v731_v7 = vadd.f32 %v730_v62, %v723_v3  ;;  %v732_v8 = vadd.f32 %v730_v62, %v724_v4  ;;  %v733_v9 = vadd.f32 %v730_v62, %v725_v5  ;;  %v734_v10 = vadd.f32 %v730_v62, %v726_v6 }
 0x152   : > { %v735_v11 = vmax.f32 %v731_v7, 0.0  ;;  %v736_v12 = vmax.f32 %v732_v8, 0.0  ;;  %v737_v13 = vmax.f32 %v733_v9, 0.0  ;;  %v738_v14 = vmax.f32 %v734_v10, 0.0 }
 0x154   : > { %v878_v15 = vpack.c.bf16 %v735_v11, %v735_v11  ;;  %v879_v16 = vpack.c.bf16 %v736_v12, %v736_v12  ;;  %v880_v17 = vpack.c.bf16 %v737_v13, %v737_v13  ;;  %v881_v18 = vpack.c.bf16 %v738_v14, %v738_v14 }
 0x156   : > { %756 = vst.msk [vmem:[%s170_s20] sm:$0xf] %vm755_vm1, %v878_v15  ;;  %757 = vst.msk [vmem:[%s170_s20 + $0x4] sm:$0xf] %vm755_vm1, %v879_v16 }
 0x157   : > { %758 = vst.msk [vmem:[%s170_s20 + $0x8] sm:$0xf] %vm755_vm1, %v880_v17  ;;  %759 = vst.msk [vmem:[%s170_s20 + $0xc] sm:$0xf] %vm755_vm1, %v881_v18 }
 0x158 PF: > { %s13_s12 = sadd.s32 1, %s1023_s12  }
 0x159   : > { %p10_p4 = scmp.ge.s32.totalorder %s13_s12, 5  }
 0x15b   :  { %12 = sbr.rel (!%p10_p4) target bundleno = 1 (0x1), region = 62 }

// kernel: simsiam_forward.12
= control target key start
LH: loop header
LB: loop body
LE: loop exit
PB: predicated region body
PF: predicated region fallthrough
CT: control target
= control target key end

     0   :  { %s1133_s15 = smov 0   ;;  %s1298_s0 = inlined_call_operand.vmem [shape: bf16[3,32,576], index: 0, kind: input, shape index: {}]   ;;  %s1299_s1 = inlined_call_operand.vmem [shape: bf16[576,64], index: 1, kind: input, shape index: {}]   ;;  %s1300_s2 = inlined_call_operand.vmem [shape: f32[2,64], index: 2, kind: input, shape index: {}]   ;;  %s1301_s3 = inlined_call_operand.vmem [shape: bf16[3,32,64], index: 3, kind: input, shape index: {}]   ;;  %s1302_s4 = inlined_call_operand.vmem [shape: bf16[3,32,64], index: 4, kind: output, shape index: {}]  }
   0x1 LB: > { %s886_s16 = sadd.s32 4294967295, %s1106_s15   ;;  %p890_p0 = scmp.ge.s32.totalorder %s1106_s15, 1  ;;  %s1106_s15 = sphi %s1133_s15, %s14_s15  }
   0x2   : > { %p172_p1 = scmp.lt.s32.totalorder %s1106_s15, 4 }
   0x4   : > { %p173_p2 = pnand %p890_p0, %p172_p1 }
   0x5   : > { %v1048_v0 = vld [vmem:[%s1299_s1 + $0x40] sm:$0xff] (!%p173_p2)   ;;  %v1052_v4 = vld [vmem:[%s1299_s1 + $0x48] sm:$0xff] (!%p173_p2)   ;;  %v1056_v8 = vld [vmem:[%s1299_s1 + $0x50] sm:$0xff] (!%p173_p2)   ;;  %p203_p3 = scmp.lt.s32.totalorder (!%p173_p2), %s886_s16, 2  ;;  %vm569_vm0 = vcmask (!%p173_p2), 523264   ;;  %vm814_vm1 = vcmask (!%p173_p2), 519168  }
   0x6   : > { %176 = sbr.rel (%p173_p2) target bundleno = 346 (0x15a), region = 36  ;;  %v1049_v1 = vld [vmem:[%s1299_s1 + $0xc0] sm:$0xff] (!%p173_p2)   ;;  %965 = vmatprep.subr.bf16.mxu0 (!%p173_p2), %v1048_v0  ;;  %v1053_v5 = vld [vmem:[%s1299_s1 + $0xc8] sm:$0xff] (!%p173_p2)   ;;  %v1057_v9 = vld [vmem:[%s1299_s1 + $0xd0] sm:$0xff] (!%p173_p2)  }
   0x7   : > { %v1050_v2 = vld [vmem:[%s1299_s1] sm:$0xff] (!%p173_p2)   ;;  %993 = vmatprep.subr.bf16.mxu1 (!%p173_p2), %v1049_v1  ;;  %v1054_v6 = vld [vmem:[%s1299_s1 + $0x8] sm:$0xff] (!%p173_p2)   ;;  %v1058_v10 = vld [vmem:[%s1299_s1 + $0x10] sm:$0xff] (!%p173_p2)  }
   0x8   : > { %v1051_v3 = vld [vmem:[%s1299_s1 + $0x80] sm:$0xff] (!%p173_p2)   ;;  %966 = vmatpush3.bf16.msra.mxu0 (!%p173_p2), %v1050_v2  ;;  %v1055_v7 = vld [vmem:[%s1299_s1 + $0x88] sm:$0xff] (!%p173_p2)   ;;  %v1059_v11 = vld [vmem:[%s1299_s1 + $0x90] sm:$0xff] (!%p173_p2)  }
   0x9   : > { %994 = vmatpush3.bf16.msra.mxu1 (!%p173_p2), %v1051_v3  ;;  %967 = vmatprep.subr.bf16.mxu0 (!%p173_p2), %v1052_v4  ;;  %v1060_v12 = vld [vmem:[%s1299_s1 + $0x58] sm:$0xff] (!%p173_p2)   ;;  %v1064_v16 = vld [vmem:[%s1299_s1 + $0x60] sm:$0xff] (!%p173_p2)   ;;  %v1068_v20 = vld [vmem:[%s1299_s1 + $0x68] sm:$0xff] (!%p173_p2)  }
   0xa   : > { %995 = vmatprep.subr.bf16.mxu1 (!%p173_p2), %v1053_v5  ;;  %v1061_v13 = vld [vmem:[%s1299_s1 + $0xd8] sm:$0xff] (!%p173_p2)   ;;  %v1065_v17 = vld [vmem:[%s1299_s1 + $0xe0] sm:$0xff] (!%p173_p2)   ;;  %v1069_v21 = vld [vmem:[%s1299_s1 + $0xe8] sm:$0xff] (!%p173_p2)  }
   0xb   : > { %v1062_v14 = vld [vmem:[%s1299_s1 + $0x18] sm:$0xff] (!%p173_p2)   ;;  %v1066_v18 = vld [vmem:[%s1299_s1 + $0x20] sm:$0xff] (!%p173_p2)   ;;  %v1070_v22 = vld [vmem:[%s1299_s1 + $0x28] sm:$0xff] (!%p173_p2)  }
   0xc   : > { %968 = vmatpush3.bf16.msra.mxu0 (!%p173_p2), %v1054_v6  ;;  %v1063_v15 = vld [vmem:[%s1299_s1 + $0x98] sm:$0xff] (!%p173_p2)   ;;  %v1067_v19 = vld [vmem:[%s1299_s1 + $0xa0] sm:$0xff] (!%p173_p2)   ;;  %v1071_v23 = vld [vmem:[%s1299_s1 + $0xa8] sm:$0xff] (!%p173_p2)  }
   0xd   : > { %996 = vmatpush3.bf16.msra.mxu1 %v1055_v7  ;;  %969 = vmatprep.subr.bf16.mxu0 %v1056_v8  ;;  %s1304_s16 = smov (!%p203_p3, %s886_s16), 2  ;;  %v1072_v24 = vld [vmem:[%s1299_s1 + $0x70] sm:$0xff]   ;;  %v1076_v28 = vld [vmem:[%s1299_s1 + $0x78] sm:$0xff]   ;;  %v1086_v36 = vld [vmem:[%s1299_s1 + $0x100] sm:$0xff]  }
   0xe   : > { %997 = vmatprep.subr.bf16.mxu1 %v1057_v9  ;;  %v1073_v25 = vld [vmem:[%s1299_s1 + $0xf0] sm:$0xff]   ;;  %s1039_s21 = smul.u32 80, %s1304_s16  ;;  %v1077_v29 = vld [vmem:[%s1299_s1 + $0xf8] sm:$0xff]   ;;  %v1087_v37 = vld [vmem:[%s1299_s1 + $0x108] sm:$0xff]  }
   0xf   : > { %v1074_v26 = vld [vmem:[%s1299_s1 + $0x30] sm:$0xff]   ;;  %v1078_v30 = vld [vmem:[%s1299_s1 + $0x38] sm:$0xff]  }
  0x10   : > { %970 = vmatpush3.bf16.msra.mxu0 %v1058_v10  ;;  %v1075_v27 = vld [vmem:[%s1299_s1 + $0xb0] sm:$0xff]   ;;  %s1241_s6 = scalar_lea.vmem %s1298_s0, %s1039_s21  ;;  %v1079_v31 = vld [vmem:[%s1299_s1 + $0xb8] sm:$0xff]   ;;  %s950_s21 = sshll.u32 %s1304_s16, 4 }
  0x11   : > { %998 = vmatpush3.bf16.msra.mxu1 %v1059_v11  ;;  %971 = vmatprep.subr.bf16.mxu0 %v1060_v12  ;;  %v1080_v32 = vld [vmem:[%s1241_s6] ss:$20 sps:$4 sm:$0xff]   ;;  %v1082_v33 = vld [vmem:[%s1241_s6 + $0x4] ss:$20 sps:$4 sm:$0xff]   ;;  %v1083_v34 = vld [vmem:[%s1241_s6 + $0x8] ss:$20 sps:$4 sm:$0xff]   ;;  %s212_s24 = scalar_lea.vmem %s1301_s3, %s950_s21  ;;  %s217_s29 = scalar_lea.vmem %s1302_s4, %s950_s21 }
  0x12   : > { %999 = vmatprep.subr.bf16.mxu1 %v1061_v13  ;;  %v1085_v35 = vld [vmem:[%s1241_s6 + $0xc] ss:$20 sps:$4 sm:$0xff]   ;;  %608 = vmatprep.mubr.bf16.mxu0 %v1082_v33  ;;  %v1090_v39 = vld [vmem:[%s1241_s6 + $0x34] ss:$20 sps:$4 sm:$0xff]   ;;  %v1093_v42 = vld [vmem:[%s1241_s6 + $0x30] ss:$20 sps:$4 sm:$0xff]  }
  0x13   : > { %657 = vmatprep.mubr.bf16.mxu1 %v1085_v35  ;;  %v1088_v38 = vld [vmem:[%s1241_s6 + $0x2c] ss:$20 sps:$4 sm:$0xff]   ;;  %v1092_v40 = vld [vmem:[%s1241_s6 + $0x28] ss:$20 sps:$4 sm:$0xff]   ;;  %v1094_v41 = vld [vmem:[%s1299_s1 + $0x110] sm:$0xff]  }
  0x14   : > { %972 = vmatpush3.bf16.msra.mxu0 %v1062_v14  ;;  %v1096_v43 = vld [vmem:[%s1241_s6 + $0x10] ss:$20 sps:$4 sm:$0xff]   ;;  %v1095_v44 = vld [vmem:[%s1299_s1 + $0x118] sm:$0xff]  }
  0x15   : > { %1000 = vmatpush3.bf16.msra.mxu1 %v1063_v15  ;;  %973 = vmatprep.subr.bf16.mxu0 %v1064_v16  ;;  %v1097_v45 = vld [vmem:[%s1241_s6 + $0x38] ss:$20 sps:$4 sm:$0xff]  }
  0x16   : > { %1001 = vmatprep.subr.bf16.mxu1 %v1065_v17 }
  0x18   : > { %974 = vmatpush3.bf16.msra.mxu0 %v1066_v18 }
  0x19   : > { %1002 = vmatpush3.bf16.msra.mxu1 %v1067_v19  ;;  %975 = vmatprep.subr.bf16.mxu0 %v1068_v20 }
  0x1a   : > { %1003 = vmatprep.subr.bf16.mxu1 %v1069_v21 }
  0x1c   : > { %976 = vmatpush3.bf16.msra.mxu0 %v1070_v22 }
  0x1d   : > { %1004 = vmatpush3.bf16.msra.mxu1 %v1071_v23  ;;  %977 = vmatprep.subr.bf16.mxu0 %v1072_v24 }
  0x1e   : > { %1005 = vmatprep.subr.bf16.mxu1 %v1073_v25 }
  0x20   : > { %978 = vmatpush3.bf16.msra.mxu0 %v1074_v26 }
  0x21   : > { %1006 = vmatpush3.bf16.msra.mxu1 %v1075_v27  ;;  %979 = vmatprep.subr.bf16.mxu0 %v1076_v28 }
  0x22   : > { %1007 = vmatprep.subr.bf16.mxu1 %v1077_v29 }
  0x24   : > { %980 = vmatpush3.bf16.msra.mxu0 %v1078_v30 }
  0x25   : > { %1008 = vmatpush3.bf16.msra.mxu1 %v1079_v31  ;;  %1027 = vmatprep.subr.bf16.mxu0 %v1086_v36 }
  0x27   : > { %609 = vmatmul.mubr.bf16.vlgmr.msra.gmra.mrb[0].mxu0 %v1080_v32 }
  0x28   : > { %658 = vmatmul.mubr.bf16.vlgmr.msra.gmra.mrb[0].mxu1 %v1083_v34  ;;  %1028 = vmatpush3.bf16.msra.mxu0 %v1086_v36 }
  0x29   : > { %1029 = vmatprep.subr.bf16.mxu0 %v1087_v37  ;;  %616 = vmatprep.mubr.bf16.mxu0 %v1088_v38 }
  0x2a   : > { %665 = vmatprep.mubr.bf16.mxu1 %v1090_v39 }
  0x2c   : > { %1030 = vmatpush3.bf16.msra.mxu0 %v1087_v37 }
  0x2d   : > { %1031 = vmatprep.subr.bf16.mxu0 %v1094_v41 }
  0x2f   : > { %617 = vmatmul.mubr.bf16.gmra.mrb[4].mxu0 %v1092_v40 }
  0x30   : > { %666 = vmatmul.mubr.bf16.gmra.mrb[4].mxu1 %v1093_v42  ;;  %1035 = vmatprep.mubr.msk.bf16.mxu0 %vm569_vm0, %v1096_v43 }
  0x31   : > { %1032 = vmatpush3.bf16.msra.mxu0 %v1094_v41 }
  0x32   : > { %1033 = vmatprep.subr.bf16.mxu0 %v1095_v44 }
  0x35   : > { %1034 = vmatpush3.bf16.msra.mxu0 %v1095_v44 }
  0x38   : > { %1036 = vmatmul.mubr.msk.bf16.vlgmr.msra.gmra.mrb[8].mxu0 %vm569_vm0, %v1097_v45 }
  0xfa   : > { %v981_v46 = vpop.f32.mrb[0].mxu0 }
  0xfb   : > { %v1009_v47 = vpop.f32.mrb[0].mxu1  ;;  %v982_v48 = vpop.f32.mrb[1].mxu0 }
  0xfc   : > { %v983_v49 = vadd.f32 %v982_v48, %v981_v46  ;;  %v1010_v50 = vpop.f32.mrb[1].mxu1  ;;  %v984_v51 = vpop.f32.mrb[2].mxu0 }
  0xfd   : > { %v1011_v52 = vadd.f32 %v1010_v50, %v1009_v47  ;;  %v1012_v53 = vpop.f32.mrb[2].mxu1  ;;  %v985_v54 = vpop.f32.mrb[3].mxu0 }
  0xfe   : > { %v986_v55 = vadd.f32 %v985_v54, %v984_v51  ;;  %v1013_v56 = vpop.f32.mrb[3].mxu1  ;;  %v766_v54 = vlaneseq }
  0xff   : > { %v1014_v57 = vadd.f32 %v1013_v56, %v1012_v53  ;;  %v660_v58 = vadd.f32 %v1011_v52, %v983_v49 }
 0x100   : > { %v767_v56 = vshrl.u32 %v766_v54, 7 }
 0x101   : > { %v663_v59 = vadd.f32 %v1014_v57, %v986_v55 }
 0x102   : > { %v987_v60 = vpop.f32.mrb[4].mxu0  ;;  %v768_v57 = vsub.s32 0, %v767_v56 }
 0x103   : > { %v1015_v61 = vpop.f32.mrb[4].mxu1  ;;  %v988_v62 = vpop.f32.mrb[5].mxu0 }
 0x104   : > { %v989_v63 = vadd.f32 %v988_v62, %v987_v60  ;;  %v1016_v0 = vpop.f32.mrb[5].mxu1  ;;  %v990_v1 = vpop.f32.mrb[6].mxu0  ;;  %v964_v62 = vld [vmem:[%s212_s24 + $0x8] sm:$0xff]  }
 0x105   : > { %v1017_v2 = vadd.f32 %v1016_v0, %v1015_v61  ;;  %v1018_v3 = vpop.f32.mrb[6].mxu1  ;;  %v991_v4 = vpop.f32.mrb[7].mxu0  ;;  %v957_v61 = vld [vmem:[%s212_s24] sm:$0xff]  }
 0x106   : > { %v992_v5 = vadd.f32 %v991_v4, %v990_v1  ;;  %v1019_v6 = vpop.f32.mrb[7].mxu1 }
 0x107   : > { %v1020_v7 = vadd.f32 %v1019_v6, %v1018_v3  ;;  %v668_v8 = vadd.f32 %v1017_v2, %v989_v63  ;;  %v959_v6 = vunpack.c.h.bf16 %v957_v61 }
 0x109   : > { %v671_v9 = vadd.f32 %v1020_v7, %v992_v5  ;;  %v958_v5 = vunpack.c.l.bf16 %v957_v61  ;;  %v962_v7 = vunpack.c.l.bf16 %v964_v62 }
 0x10b   : > { %v1037_v10 = vpop.f32.mrb[8].mxu0 }
 0x10c   : > { %v717_v11 = vadd.f32 %v1037_v10, %v668_v8  ;;  %v708_v12 = vpop.f32.mrb[9].mxu0  ;;  %v963_v8 = vunpack.c.h.bf16 %v964_v62 }
 0x10d   : > { %v709_v13 = vadd.f32 %v708_v12, %v660_v58  ;;  %v1038_v14 = vpop.f32.mrb[10].mxu0  ;;  %v723_v58 = vld [vmem:[%s1300_s2] sm:$0x3] }
 0x10e   : > { %v720_v15 = vadd.f32 %v1038_v14, %v671_v9  ;;  %v711_v16 = vpop.f32.mrb[11].mxu0  ;;  %v727_v21 = vsel %vm569_vm0, %v717_v11, 0.0  ;;  %v769_v60 = vrot.slane %v723_v58, %v768_v57 }
 0x10f   : > { %v712_v17 = vadd.f32 %v711_v16, %v663_v59  ;;  %v724_v18 = vsel %vm569_vm0, %v709_v13, 0.0  ;;  %v776_v59 = vsub.s32 1, %v767_v56 }
 0x110   : > { %v729_v23 = vsel %vm569_vm0, %v720_v15, 0.0 }
 0x111   : > { %v725_v19 = vsel %vm569_vm0, %v712_v17, 0.0  ;;  %v777_v0 = vrot.slane %v723_v58, %v776_v59 }
 0x112   : > { %v726_v20 = vadd.f32 %v725_v19, %v724_v18 }
 0x114   : > { %v728_v22 = vadd.f32 %v727_v21, %v726_v20 }
 0x116   : > { %v730_v24 = vadd.f32 %v729_v23, %v728_v22 }
 0x118   : > { %v731_v25 = vrot.slane %v730_v24, 4 }
 0x11a   : > { %v732_v26 = vadd.f32 %v731_v25, %v730_v24 }
 0x11c   : > { %v733_v27 = vrot.slane %v732_v26, 2 }
 0x11e   : > { %v734_v28 = vadd.f32 %v733_v27, %v732_v26 }
 0x120   : > { %v735_v29 = vrot.slane %v734_v28, 1 }
 0x122   : > { %v736_v30 = vadd.f32 %v735_v29, %v734_v28 }
 0x124   : > { %v737_v31 = vmul.f32 0.03125, %v736_v30 }
 0x126   : > { %v738_v32 = vsub.f32 %v709_v13, %v737_v31  ;;  %v739_v33 = vsub.f32 %v712_v17, %v737_v31  ;;  %v740_v34 = vsub.f32 %v717_v11, %v737_v31  ;;  %v741_v35 = vsub.f32 %v720_v15, %v737_v31 }
 0x128   : > { %v742_v36 = vmul.f32 %v738_v32, %v738_v32  ;;  %v743_v37 = vmul.f32 %v739_v33, %v739_v33  ;;  %v744_v38 = vmul.f32 %v740_v34, %v740_v34  ;;  %v745_v39 = vmul.f32 %v741_v35, %v741_v35 }
 0x12a   : > { %v746_v40 = vsel %vm569_vm0, %v742_v36, 0.0  ;;  %v747_v41 = vsel %vm569_vm0, %v743_v37, 0.0  ;;  %v749_v43 = vsel %vm569_vm0, %v744_v38, 0.0  ;;  %v751_v45 = vsel %vm569_vm0, %v745_v39, 0.0 }
 0x12b   : > { %v748_v42 = vadd.f32 %v747_v41, %v746_v40 }
 0x12d   : > { %v750_v44 = vadd.f32 %v749_v43, %v748_v42 }
 0x12f   : > { %v752_v46 = vadd.f32 %v751_v45, %v750_v44 }
 0x131   : > { %v753_v47 = vrot.slane %v752_v46, 4 }
 0x133   : > { %v754_v48 = vadd.f32 %v753_v47, %v752_v46 }
 0x135   : > { %v755_v49 = vrot.slane %v754_v48, 2 }
 0x137   : > { %v756_v50 = vadd.f32 %v755_v49, %v754_v48 }
 0x139   : > { %v757_v51 = vrot.slane %v756_v50, 1 }
 0x13b   : > { %v758_v52 = vadd.f32 %v757_v51, %v756_v50 }
 0x13d   : > { %v759_v53 = vmul.f32 0.03125, %v758_v52 }
 0x13f   : > { %v760_v55 = vadd.f32 1e-05, %v759_v53 }
 0x141   : > { %1098 = vrsqrt.f32 %v760_v55 }
 0x14b   : > { %v1099_v63 = vpop.eup %1098 }
 0x14c   : > { %v762_v1 = vmul.f32 %v1099_v63, %v738_v32  ;;  %v763_v2 = vmul.f32 %v1099_v63, %v739_v33  ;;  %v764_v3 = vmul.f32 %v1099_v63, %v740_v34  ;;  %v765_v4 = vmul.f32 %v1099_v63, %v741_v35 }
 0x14e   : > { %v770_v9 = vmul.f32 %v769_v60, %v762_v1  ;;  %v771_v10 = vmul.f32 %v769_v60, %v763_v2  ;;  %v772_v11 = vmul.f32 %v769_v60, %v764_v3  ;;  %v773_v12 = vmul.f32 %v769_v60, %v765_v4 }
 0x150   : > { %v778_v13 = vadd.f32 %v777_v0, %v770_v9  ;;  %v779_v14 = vadd.f32 %v777_v0, %v771_v10  ;;  %v780_v15 = vadd.f32 %v777_v0, %v772_v11  ;;  %v781_v16 = vadd.f32 %v777_v0, %v773_v12 }
 0x152   : > { %v790_v17 = vadd.f32 %v958_v5, %v778_v13  ;;  %v791_v18 = vadd.f32 %v959_v6, %v779_v14  ;;  %v792_v19 = vadd.f32 %v962_v7, %v780_v15  ;;  %v793_v20 = vadd.f32 %v963_v8, %v781_v16 }
 0x154   : > { %v794_v21 = vmax.f32 %v790_v17, 0.0  ;;  %v795_v22 = vmax.f32 %v791_v18, 0.0  ;;  %v796_v23 = vmax.f32 %v792_v19, 0.0  ;;  %v797_v24 = vmax.f32 %v793_v20, 0.0 }
 0x156   : > { %v952_v25 = vpack.c.bf16 %v794_v21, %v794_v21  ;;  %v953_v26 = vpack.c.bf16 %v795_v22, %v795_v22  ;;  %v954_v27 = vpack.c.bf16 %v796_v23, %v796_v23  ;;  %v955_v28 = vpack.c.bf16 %v797_v24, %v797_v24 }
 0x158   : > { %815 = vst.msk [vmem:[%s217_s29] sm:$0xf] %vm814_vm1, %v952_v25  ;;  %816 = vst.msk [vmem:[%s217_s29 + $0x4] sm:$0xf] %vm814_vm1, %v953_v26 }
 0x159   : > { %817 = vst.msk [vmem:[%s217_s29 + $0x8] sm:$0xf] %vm814_vm1, %v954_v27  ;;  %818 = vst.msk [vmem:[%s217_s29 + $0xc] sm:$0xf] %vm814_vm1, %v955_v28 }
 0x15a PF: > { %s14_s15 = sadd.s32 1, %s1106_s15  }
 0x15b   : > { %p11_p4 = scmp.ge.s32.totalorder %s14_s15, 5  }
 0x15d   :  { %13 = sbr.rel (!%p11_p4) target bundleno = 1 (0x1), region = 69 }

// kernel: simsiam_forward.15
= control target key start
LH: loop header
LB: loop body
LE: loop exit
PB: predicated region body
PF: predicated region fallthrough
CT: control target
= control target key end

     0   :  { %s884_s12 = smov 0   ;;  %s1025_s0 = inlined_call_operand.vmem [shape: bf16[3,8,576], index: 0, kind: input, shape index: {}]   ;;  %s1026_s1 = inlined_call_operand.vmem [shape: bf16[576,128], index: 1, kind: input, shape index: {}]   ;;  %s1027_s2 = inlined_call_operand.vmem [shape: f32[2,128], index: 2, kind: input, shape index: {}]   ;;  %s1028_s3 = inlined_call_operand.vmem [shape: bf16[3,8,128], index: 3, kind: output, shape index: {}]  }
   0x1 LB: > { %s688_s13 = sadd.s32 4294967295, %s860_s12   ;;  %p692_p0 = scmp.ge.s32.totalorder %s860_s12, 1  ;;  %s860_s12 = sphi %s884_s12, %s13_s12  }
   0x2   : > { %p137_p1 = scmp.lt.s32.totalorder %s860_s12, 4 }
   0x4   : > { %p138_p2 = pnand %p692_p0, %p137_p1 }
   0x5   : > { %v811_v0 = vld [vmem:[%s1026_s1 + $0x40] sm:$0xff] (!%p138_p2)   ;;  %v815_v4 = vld [vmem:[%s1026_s1 + $0x48] sm:$0xff] (!%p138_p2)   ;;  %v819_v8 = vld [vmem:[%s1026_s1 + $0x50] sm:$0xff] (!%p138_p2)   ;;  %p160_p3 = scmp.lt.s32.totalorder (!%p138_p2), %s688_s13, 2  ;;  %v862_v36 = vmov (!%p138_p2), 0.0   ;;  %vm863_vm0 = vmmov (!%p138_p2), 0  }
   0x6   : > { %141 = sbr.rel (%p138_p2) target bundleno = 325 (0x145), region = 32  ;;  %v812_v1 = vld [vmem:[%s1026_s1 + $0xc0] sm:$0xff] (!%p138_p2)   ;;  %739 = vmatprep.subr.bf16.mxu0 (!%p138_p2), %v811_v0  ;;  %v816_v5 = vld [vmem:[%s1026_s1 + $0xc8] sm:$0xff] (!%p138_p2)   ;;  %v820_v9 = vld [vmem:[%s1026_s1 + $0xd0] sm:$0xff] (!%p138_p2)   ;;  %vm478_vm1 = vcmask (!%p138_p2), 523264  }
   0x7   : > { %v813_v2 = vld [vmem:[%s1026_s1] sm:$0xff] (!%p138_p2)   ;;  %761 = vmatprep.subr.bf16.mxu1 (!%p138_p2), %v812_v1  ;;  %v817_v6 = vld [vmem:[%s1026_s1 + $0x8] sm:$0xff] (!%p138_p2)   ;;  %v821_v10 = vld [vmem:[%s1026_s1 + $0x10] sm:$0xff] (!%p138_p2)  }
   0x8   : > { %v814_v3 = vld [vmem:[%s1026_s1 + $0x80] sm:$0xff] (!%p138_p2)   ;;  %740 = vmatpush3.bf16.msra.mxu0 (!%p138_p2), %v813_v2  ;;  %v818_v7 = vld [vmem:[%s1026_s1 + $0x88] sm:$0xff] (!%p138_p2)   ;;  %v822_v11 = vld [vmem:[%s1026_s1 + $0x90] sm:$0xff] (!%p138_p2)  }
   0x9   : > { %762 = vmatpush3.bf16.msra.mxu1 (!%p138_p2), %v814_v3  ;;  %741 = vmatprep.subr.bf16.mxu0 (!%p138_p2), %v815_v4  ;;  %v823_v12 = vld [vmem:[%s1026_s1 + $0x58] sm:$0xff] (!%p138_p2)   ;;  %v827_v16 = vld [vmem:[%s1026_s1 + $0x60] sm:$0xff] (!%p138_p2)   ;;  %v831_v20 = vld [vmem:[%s1026_s1 + $0x68] sm:$0xff] (!%p138_p2)  }
   0xa   : > { %763 = vmatprep.subr.bf16.mxu1 (!%p138_p2), %v816_v5  ;;  %v824_v13 = vld [vmem:[%s1026_s1 + $0xd8] sm:$0xff] (!%p138_p2)   ;;  %v828_v17 = vld [vmem:[%s1026_s1 + $0xe0] sm:$0xff] (!%p138_p2)   ;;  %v832_v21 = vld [vmem:[%s1026_s1 + $0xe8] sm:$0xff] (!%p138_p2)  }
   0xb   : > { %v825_v14 = vld [vmem:[%s1026_s1 + $0x18] sm:$0xff] (!%p138_p2)   ;;  %v829_v18 = vld [vmem:[%s1026_s1 + $0x20] sm:$0xff] (!%p138_p2)   ;;  %v833_v22 = vld [vmem:[%s1026_s1 + $0x28] sm:$0xff] (!%p138_p2)  }
   0xc   : > { %742 = vmatpush3.bf16.msra.mxu0 (!%p138_p2), %v817_v6  ;;  %v826_v15 = vld [vmem:[%s1026_s1 + $0x98] sm:$0xff] (!%p138_p2)   ;;  %v830_v19 = vld [vmem:[%s1026_s1 + $0xa0] sm:$0xff] (!%p138_p2)   ;;  %v834_v23 = vld [vmem:[%s1026_s1 + $0xa8] sm:$0xff] (!%p138_p2)  }
   0xd   : > { %764 = vmatpush3.bf16.msra.mxu1 %v818_v7  ;;  %743 = vmatprep.subr.bf16.mxu0 %v819_v8  ;;  %s1030_s13 = smov (!%p160_p3, %s688_s13), 2  ;;  %v835_v24 = vld [vmem:[%s1026_s1 + $0x70] sm:$0xff]   ;;  %v839_v28 = vld [vmem:[%s1026_s1 + $0x78] sm:$0xff]   ;;  %v848_v39 = vld [vmem:[%s1026_s1 + $0x100] sm:$0xff]  }
   0xe   : > { %765 = vmatprep.subr.bf16.mxu1 %v820_v9  ;;  %v836_v25 = vld [vmem:[%s1026_s1 + $0xf0] sm:$0xff]   ;;  %s800_s16 = smul.u32 20, %s1030_s13  ;;  %v840_v29 = vld [vmem:[%s1026_s1 + $0xf8] sm:$0xff]   ;;  %v849_v40 = vld [vmem:[%s1026_s1 + $0x108] sm:$0xff]   ;;  %s694_s17 = sshll.u32 %s1030_s13, 2 }
   0xf   : > { %v837_v26 = vld [vmem:[%s1026_s1 + $0x30] sm:$0xff]   ;;  %v841_v30 = vld [vmem:[%s1026_s1 + $0x38] sm:$0xff]   ;;  %s168_s20 = scalar_lea.vmem %s1028_s3, %s694_s17 }
  0x10   : > { %744 = vmatpush3.bf16.msra.mxu0 %v821_v10  ;;  %v838_v27 = vld [vmem:[%s1026_s1 + $0xb0] sm:$0xff]   ;;  %s992_s27 = scalar_lea.vmem %s1025_s0, %s800_s16  ;;  %v842_v31 = vld [vmem:[%s1026_s1 + $0xb8] sm:$0xff]  }
  0x11   : > { %766 = vmatpush3.bf16.msra.mxu1 %v822_v11  ;;  %745 = vmatprep.subr.bf16.mxu0 %v823_v12  ;;  %v170_v32 = vld [vmem:[%s992_s27] sm:$0xff]  ;;  %v171_v35 = vld [vmem:[%s992_s27 + $0x8] sm:$0xff]  ;;  %v850_v41 = vld [vmem:[%s1026_s1 + $0x110] sm:$0xff]   ;;  %v622_v12 = vlaneseq }
  0x12   : > { %767 = vmatprep.subr.bf16.mxu1 %v824_v13  ;;  %v695_v33 = vcombine.low %v170_v32, %v170_v32  ;;  %v696_v34 = vcombine.high %v170_v32, %v170_v32  ;;  %v697_v37 = vcombine.low %v171_v35, %v171_v35  ;;  %v698_v38 = vcombine.high %v171_v35, %v171_v35  ;;  %v851_v42 = vld [vmem:[%s1026_s1 + $0x118] sm:$0xff]   ;;  %v845_v43 = vld [vmem:[%s992_s27 + $0x10] ss:$0 sps:$4 sm:$0xff]  }
  0x14   : > { %746 = vmatpush3.bf16.msra.mxu0 %v825_v14  ;;  %514 = vmatprep.mubr.bf16.mxu0 %v696_v34  ;;  %v623_v14 = vshrl.u32 %v622_v12, 7 }
  0x15   : > { %768 = vmatpush3.bf16.msra.mxu1 %v826_v15  ;;  %747 = vmatprep.subr.bf16.mxu0 %v827_v16  ;;  %v602_v16 = vld [vmem:[%s1027_s2] sm:$0x3] }
  0x16   : > { %769 = vmatprep.subr.bf16.mxu1 %v828_v17  ;;  %554 = vmatprep.mubr.bf16.mxu1 %v698_v38  ;;  %v624_v15 = vsub.s32 0, %v623_v14  ;;  %v629_v17 = vsub.s32 1, %v623_v14 }
  0x18   : > { %748 = vmatpush3.bf16.msra.mxu0 %v829_v18  ;;  %v625_v18 = vrot.slane %v602_v16, %v624_v15 }
  0x19   : > { %770 = vmatpush3.bf16.msra.mxu1 %v830_v19  ;;  %749 = vmatprep.subr.bf16.mxu0 %v831_v20 }
  0x1a   : > { %771 = vmatprep.subr.bf16.mxu1 %v832_v21  ;;  %v630_v21 = vrot.slane %v602_v16, %v629_v17 }
  0x1c   : > { %750 = vmatpush3.bf16.msra.mxu0 %v833_v22 }
  0x1d   : > { %772 = vmatpush3.bf16.msra.mxu1 %v834_v23  ;;  %751 = vmatprep.subr.bf16.mxu0 %v835_v24 }
  0x1e   : > { %773 = vmatprep.subr.bf16.mxu1 %v836_v25 }
  0x20   : > { %752 = vmatpush3.bf16.msra.mxu0 %v837_v26 }
  0x21   : > { %774 = vmatpush3.bf16.msra.mxu1 %v838_v27  ;;  %753 = vmatprep.subr.bf16.mxu0 %v839_v28 }
  0x22   : > { %775 = vmatprep.subr.bf16.mxu1 %v840_v29 }
  0x24   : > { %754 = vmatpush3.bf16.msra.mxu0 %v841_v30 }
  0x25   : > { %776 = vmatpush3.bf16.msra.mxu1 %v842_v31  ;;  %788 = vmatprep.subr.bf16.mxu0 %v862_v36 }
  0x27   : > { %515 = vmatmul.mubr.bf16.vlgmr.msra.gmra.mrb[0].mxu0 %v695_v33 }
  0x28   : > { %555 = vmatmul.mubr.bf16.vlgmr.msra.gmra.mrb[0].mxu1 %v697_v37  ;;  %789 = vmatpush3.bf16.msra.mxu0 %v848_v39 }
  0x29   : > { %790 = vmatprep.subr.bf16.mxu0 %v862_v36  ;;  %796 = vmatprep.mubr.msk.bf16.mxu0 %vm863_vm0, %v862_v36 }
  0x2c   : > { %791 = vmatpush3.bf16.msra.mxu0 %v849_v40 }
  0x2d   : > { %792 = vmatprep.subr.bf16.mxu0 %v862_v36 }
  0x30   : > { %793 = vmatpush3.bf16.msra.mxu0 %v850_v41 }
  0x31   : > { %794 = vmatprep.subr.bf16.mxu0 %v862_v36 }
  0x34   : > { %795 = vmatpush3.bf16.msra.mxu0 %v851_v42 }
  0x37   : > { %797 = vmatmul.mubr.msk.bf16.vlgmr.msra.gmra.mrb[4].mxu0 %vm478_vm1, %v845_v43 }
  0xfa   : > { %v755_v44 = vpop.f32.mrb[0].mxu0 }
  0xfb   : > { %v777_v45 = vpop.f32.mrb[0].mxu1  ;;  %v756_v46 = vpop.f32.mrb[1].mxu0 }
  0xfc   : > { %v757_v47 = vadd.f32 %v756_v46, %v755_v44  ;;  %v778_v48 = vpop.f32.mrb[1].mxu1  ;;  %v758_v49 = vpop.f32.mrb[2].mxu0 }
  0xfd   : > { %v779_v50 = vadd.f32 %v778_v48, %v777_v45  ;;  %v759_v51 = vpop.f32.mrb[3].mxu0  ;;  %v780_v52 = vpop.f32.mrb[2].mxu1 }
  0xfe   : > { %v781_v53 = vpop.f32.mrb[3].mxu1 }
  0xff   : > { %v557_v54 = vadd.f32 %v779_v50, %v757_v47 }
 0x10a   : > { %v596_v55 = vpop.f32.mrb[4].mxu0 }
 0x10b   : > { %v597_v56 = vadd.f32 %v596_v55, %v557_v54  ;;  %v798_v57 = vpop.f32.mrb[5].mxu0 }
 0x10c   : > { %v599_v58 = vpop.f32.mrb[6].mxu0 }
 0x10d   : > { %v603_v59 = vrot.slane %v597_v56, 4  ;;  %v799_v60 = vpop.f32.mrb[7].mxu0 }
 0x10f   : > { %v604_v61 = vadd.f32 %v603_v59, %v597_v56 }
 0x111   : > { %v605_v62 = vrot.slane %v604_v61, 2 }
 0x113   : > { %v606_v63 = vadd.f32 %v605_v62, %v604_v61 }
 0x115   : > { %v607_v0 = vrot.slane %v606_v63, 1 }
 0x117   : > { %v608_v1 = vadd.f32 %v607_v0, %v606_v63 }
 0x119   : > { %v609_v2 = vmul.f32 0.125, %v608_v1 }
 0x11b   : > { %v610_v3 = vsub.f32 %v597_v56, %v609_v2 }
 0x11d   : > { %v611_v4 = vmul.f32 %v610_v3, %v610_v3 }
 0x11f   : > { %v612_v5 = vrot.slane %v611_v4, 4 }
 0x121   : > { %v613_v6 = vadd.f32 %v612_v5, %v611_v4 }
 0x123   : > { %v614_v7 = vrot.slane %v613_v6, 2 }
 0x125   : > { %v615_v8 = vadd.f32 %v614_v7, %v613_v6 }
 0x127   : > { %v616_v9 = vrot.slane %v615_v8, 1 }
 0x129   : > { %v617_v10 = vadd.f32 %v616_v9, %v615_v8 }
 0x12b   : > { %v618_v11 = vmul.f32 0.125, %v617_v10 }
 0x12d   : > { %v619_v13 = vadd.f32 1e-05, %v618_v11 }
 0x12f   : > { %852 = vrsqrt.f32 %v619_v13 }
 0x139   : > { %v853_v19 = vpop.eup %852 }
 0x13a   : > { %v621_v20 = vmul.f32 %v853_v19, %v610_v3 }
 0x13c   : > { %v626_v22 = vmul.f32 %v625_v18, %v621_v20 }
 0x13e   : > { %v631_v23 = vadd.f32 %v630_v21, %v626_v22 }
 0x140   : > { %v632_v24 = vmax.f32 %v631_v23, 0.0 }
 0x142   : > { %v633_v25 = vpack.c.bf16 %v632_v24, %v632_v24 }
 0x144   : > { %634 = vst [vmem:[%s168_s20] sm:$0xf] %v633_v25 }
 0x145 PF: > { %s13_s12 = sadd.s32 1, %s860_s12  }
 0x146   : > { %p10_p4 = scmp.ge.s32.totalorder %s13_s12, 5  }
 0x148   :  { %12 = sbr.rel (!%p10_p4) target bundleno = 1 (0x1), region = 62 }

// kernel: simsiam_forward.17
= control target key start
LH: loop header
LB: loop body
LE: loop exit
PB: predicated region body
PF: predicated region fallthrough
CT: control target
= control target key end

     0   :  { %s1400_s12 = smov 0   ;;  %s1651_s0 = inlined_call_operand.vmem [shape: bf16[3,8,1152], index: 0, kind: input, shape index: {}]   ;;  %s1652_s1 = inlined_call_operand.vmem [shape: bf16[1152,128], index: 1, kind: input, shape index: {}]   ;;  %s1653_s2 = inlined_call_operand.vmem [shape: f32[2,128], index: 2, kind: input, shape index: {}]   ;;  %s1654_s3 = inlined_call_operand.vmem [shape: bf16[3,8,128], index: 3, kind: output, shape index: {}]  }
   0x1 LB: > { %s1069_s13 = sadd.s32 4294967295, %s1376_s12   ;;  %p1073_p0 = scmp.ge.s32.totalorder %s1376_s12, 1  ;;  %s1376_s12 = sphi %s1400_s12, %s13_s12  }
   0x2   : > { %p137_p1 = scmp.lt.s32.totalorder %s1376_s12, 4 }
   0x4   : > { %p138_p2 = pnand %p1073_p0, %p137_p1 }
   0x5   : > { %v1287_v0 = vld [vmem:[%s1652_s1 + $0x40] sm:$0xff] (!%p138_p2)   ;;  %v1291_v4 = vld [vmem:[%s1652_s1 + $0x48] sm:$0xff] (!%p138_p2)   ;;  %v1295_v8 = vld [vmem:[%s1652_s1 + $0x50] sm:$0xff] (!%p138_p2)   ;;  %p160_p3 = scmp.lt.s32.totalorder (!%p138_p2), %s1069_s13, 2  ;;  %vm1379_vm0 = vmmov (!%p138_p2), 0  }
   0x6   : > { %141 = sbr.rel (%p138_p2) target bundleno = 373 (0x175), region = 32  ;;  %v1288_v1 = vld [vmem:[%s1652_s1 + $0xc0] sm:$0xff] (!%p138_p2)   ;;  %1159 = vmatprep.subr.bf16.mxu0 (!%p138_p2), %v1287_v0  ;;  %v1292_v5 = vld [vmem:[%s1652_s1 + $0xc8] sm:$0xff] (!%p138_p2)   ;;  %v1296_v9 = vld [vmem:[%s1652_s1 + $0xd0] sm:$0xff] (!%p138_p2)  }
   0x7   : > { %v1289_v2 = vld [vmem:[%s1652_s1] sm:$0xff] (!%p138_p2)   ;;  %1181 = vmatprep.subr.bf16.mxu1 (!%p138_p2), %v1288_v1  ;;  %v1293_v6 = vld [vmem:[%s1652_s1 + $0x8] sm:$0xff] (!%p138_p2)   ;;  %v1297_v10 = vld [vmem:[%s1652_s1 + $0x10] sm:$0xff] (!%p138_p2)  }
   0x8   : > { %v1290_v3 = vld [vmem:[%s1652_s1 + $0x80] sm:$0xff] (!%p138_p2)   ;;  %1160 = vmatpush3.bf16.msra.mxu0 (!%p138_p2), %v1289_v2  ;;  %v1294_v7 = vld [vmem:[%s1652_s1 + $0x88] sm:$0xff] (!%p138_p2)   ;;  %v1298_v11 = vld [vmem:[%s1652_s1 + $0x90] sm:$0xff] (!%p138_p2)  }
   0x9   : > { %1182 = vmatpush3.bf16.msra.mxu1 (!%p138_p2), %v1290_v3  ;;  %1161 = vmatprep.subr.bf16.mxu0 (!%p138_p2), %v1291_v4  ;;  %v1299_v12 = vld [vmem:[%s1652_s1 + $0x58] sm:$0xff] (!%p138_p2)   ;;  %v1303_v16 = vld [vmem:[%s1652_s1 + $0x60] sm:$0xff] (!%p138_p2)   ;;  %v1307_v20 = vld [vmem:[%s1652_s1 + $0x68] sm:$0xff] (!%p138_p2)  }
   0xa   : > { %1183 = vmatprep.subr.bf16.mxu1 (!%p138_p2), %v1292_v5  ;;  %v1300_v13 = vld [vmem:[%s1652_s1 + $0xd8] sm:$0xff] (!%p138_p2)   ;;  %v1304_v17 = vld [vmem:[%s1652_s1 + $0xe0] sm:$0xff] (!%p138_p2)   ;;  %v1308_v21 = vld [vmem:[%s1652_s1 + $0xe8] sm:$0xff] (!%p138_p2)  }
   0xb   : > { %v1301_v14 = vld [vmem:[%s1652_s1 + $0x18] sm:$0xff] (!%p138_p2)   ;;  %v1305_v18 = vld [vmem:[%s1652_s1 + $0x20] sm:$0xff] (!%p138_p2)   ;;  %v1309_v22 = vld [vmem:[%s1652_s1 + $0x28] sm:$0xff] (!%p138_p2)  }
   0xc   : > { %1162 = vmatpush3.bf16.msra.mxu0 (!%p138_p2), %v1293_v6  ;;  %v1302_v15 = vld [vmem:[%s1652_s1 + $0x98] sm:$0xff] (!%p138_p2)   ;;  %v1306_v19 = vld [vmem:[%s1652_s1 + $0xa0] sm:$0xff] (!%p138_p2)   ;;  %v1310_v23 = vld [vmem:[%s1652_s1 + $0xa8] sm:$0xff] (!%p138_p2)  }
   0xd   : > { %1184 = vmatpush3.bf16.msra.mxu1 %v1294_v7  ;;  %1163 = vmatprep.subr.bf16.mxu0 %v1295_v8  ;;  %s1656_s13 = smov (!%p160_p3, %s1069_s13), 2  ;;  %v1311_v24 = vld [vmem:[%s1652_s1 + $0x70] sm:$0xff]   ;;  %v1315_v28 = vld [vmem:[%s1652_s1 + $0x78] sm:$0xff]   ;;  %v1323_v38 = vld [vmem:[%s1652_s1 + $0x140] sm:$0xff]  }
   0xe   : > { %1185 = vmatprep.subr.bf16.mxu1 %v1296_v9  ;;  %v1312_v25 = vld [vmem:[%s1652_s1 + $0xf0] sm:$0xff]   ;;  %s1276_s16 = smul.u32 36, %s1656_s13  ;;  %v1316_v29 = vld [vmem:[%s1652_s1 + $0xf8] sm:$0xff]   ;;  %v1324_v39 = vld [vmem:[%s1652_s1 + $0x100] sm:$0xff]  }
   0xf   : > { %v1313_v26 = vld [vmem:[%s1652_s1 + $0x30] sm:$0xff]   ;;  %v1317_v30 = vld [vmem:[%s1652_s1 + $0x38] sm:$0xff]   ;;  %v1325_v40 = vld [vmem:[%s1652_s1 + $0x1c0] sm:$0xff]  }
  0x10   : > { %1164 = vmatpush3.bf16.msra.mxu0 %v1297_v10  ;;  %v1314_v27 = vld [vmem:[%s1652_s1 + $0xb0] sm:$0xff]   ;;  %s1508_s27 = scalar_lea.vmem %s1651_s0, %s1276_s16  ;;  %v1318_v31 = vld [vmem:[%s1652_s1 + $0xb8] sm:$0xff]   ;;  %v1326_v41 = vld [vmem:[%s1652_s1 + $0x180] sm:$0xff]   ;;  %s1075_s16 = sshll.u32 %s1656_s13, 2 }
  0x11   : > { %1186 = vmatpush3.bf16.msra.mxu1 %v1298_v11  ;;  %1165 = vmatprep.subr.bf16.mxu0 %v1299_v12  ;;  %v170_v32 = vld [vmem:[%s1508_s27] sm:$0xff]  ;;  %v171_v33 = vld [vmem:[%s1508_s27 + $0x8] sm:$0xff]  ;;  %v1331_v46 = vld [vmem:[%s1652_s1 + $0x150] sm:$0xff]   ;;  %s168_s19 = scalar_lea.vmem %s1654_s3, %s1075_s16 }
  0x12   : > { %1187 = vmatprep.subr.bf16.mxu1 %v1300_v13  ;;  %v1076_v34 = vcombine.low %v170_v32, %v170_v32  ;;  %v1077_v35 = vcombine.high %v170_v32, %v170_v32  ;;  %v1078_v36 = vcombine.low %v171_v33, %v171_v33  ;;  %v1079_v37 = vcombine.high %v171_v33, %v171_v33  ;;  %v1327_v42 = vld [vmem:[%s1652_s1 + $0x148] sm:$0xff]   ;;  %v1332_v47 = vld [vmem:[%s1652_s1 + $0x110] sm:$0xff]   ;;  %v1335_v50 = vld [vmem:[%s1652_s1 + $0x158] sm:$0xff]  }
  0x13   : > { %v1328_v43 = vld [vmem:[%s1652_s1 + $0x108] sm:$0xff]   ;;  %v1333_v48 = vld [vmem:[%s1652_s1 + $0x1d0] sm:$0xff]   ;;  %v1336_v51 = vld [vmem:[%s1652_s1 + $0x118] sm:$0xff]   ;;  %v1378_v13 = vmov 0.0  }
  0x14   : > { %1166 = vmatpush3.bf16.msra.mxu0 %v1301_v14  ;;  %815 = vmatprep.mubr.bf16.mxu0 %v1077_v35  ;;  %v1329_v44 = vld [vmem:[%s1652_s1 + $0x1c8] sm:$0xff]   ;;  %v1334_v49 = vld [vmem:[%s1652_s1 + $0x190] sm:$0xff]   ;;  %v1337_v52 = vld [vmem:[%s1652_s1 + $0x1d8] sm:$0xff]  }
  0x15   : > { %1188 = vmatpush3.bf16.msra.mxu1 %v1302_v15  ;;  %1167 = vmatprep.subr.bf16.mxu0 %v1303_v16  ;;  %v1330_v45 = vld [vmem:[%s1652_s1 + $0x188] sm:$0xff]   ;;  %v1338_v53 = vld [vmem:[%s1652_s1 + $0x198] sm:$0xff]   ;;  %v1339_v54 = vld [vmem:[%s1652_s1 + $0x160] sm:$0xff]  }
  0x16   : > { %1189 = vmatprep.subr.bf16.mxu1 %v1304_v17  ;;  %855 = vmatprep.mubr.bf16.mxu1 %v1079_v37  ;;  %v1340_v55 = vld [vmem:[%s1652_s1 + $0x120] sm:$0xff]   ;;  %v1343_v58 = vld [vmem:[%s1652_s1 + $0x168] sm:$0xff]   ;;  %v1347_v62 = vld [vmem:[%s1652_s1 + $0x170] sm:$0xff]  }
  0x17   : > { %v1341_v56 = vld [vmem:[%s1652_s1 + $0x1e0] sm:$0xff]   ;;  %v1344_v59 = vld [vmem:[%s1652_s1 + $0x128] sm:$0xff]   ;;  %v1348_v63 = vld [vmem:[%s1652_s1 + $0x130] sm:$0xff]  }
  0x18   : > { %1168 = vmatpush3.bf16.msra.mxu0 %v1305_v18  ;;  %v1342_v57 = vld [vmem:[%s1652_s1 + $0x1a0] sm:$0xff]   ;;  %v1345_v60 = vld [vmem:[%s1652_s1 + $0x1e8] sm:$0xff]   ;;  %v1349_v0 = vld [vmem:[%s1652_s1 + $0x1f0] sm:$0xff]  }
  0x19   : > { %1190 = vmatpush3.bf16.msra.mxu1 %v1306_v19  ;;  %1169 = vmatprep.subr.bf16.mxu0 %v1307_v20  ;;  %v1346_v61 = vld [vmem:[%s1652_s1 + $0x1a8] sm:$0xff]   ;;  %v1350_v1 = vld [vmem:[%s1652_s1 + $0x1b0] sm:$0xff]   ;;  %v1351_v2 = vld [vmem:[%s1652_s1 + $0x178] sm:$0xff]  }
  0x1a   : > { %1191 = vmatprep.subr.bf16.mxu1 %v1308_v21  ;;  %v1352_v3 = vld [vmem:[%s1652_s1 + $0x138] sm:$0xff]   ;;  %v172_v5 = vld [vmem:[%s1508_s27 + $0x10] sm:$0xff]  ;;  %v1359_v12 = vld [vmem:[%s1652_s1 + $0x200] sm:$0xff]  }
  0x1b   : > { %v1353_v4 = vld [vmem:[%s1652_s1 + $0x1f8] sm:$0xff]   ;;  %v1081_v6 = vcombine.high %v172_v5, %v172_v5  ;;  %v1080_v8 = vcombine.low %v172_v5, %v172_v5  ;;  %v1360_v14 = vld [vmem:[%s1652_s1 + $0x208] sm:$0xff]   ;;  %v1361_v15 = vld [vmem:[%s1652_s1 + $0x210] sm:$0xff]  }
  0x1c   : > { %1170 = vmatpush3.bf16.msra.mxu0 %v1309_v22  ;;  %v1356_v7 = vld [vmem:[%s1652_s1 + $0x1b8] sm:$0xff]   ;;  %v1363_v17 = vld [vmem:[%s1652_s1 + $0x220] sm:$0xff]   ;;  %v1364_v18 = vld [vmem:[%s1652_s1 + $0x228] sm:$0xff]  }
  0x1d   : > { %1192 = vmatpush3.bf16.msra.mxu1 %v1310_v23  ;;  %1171 = vmatprep.subr.bf16.mxu0 %v1311_v24  ;;  %v173_v9 = vld [vmem:[%s1508_s27 + $0x18] sm:$0xff]  ;;  %v1365_v19 = vld [vmem:[%s1652_s1 + $0x230] sm:$0xff]   ;;  %v1367_v21 = vld [vmem:[%s1508_s27 + $0x20] ss:$0 sps:$4 sm:$0xff]  }
  0x1e   : > { %1193 = vmatprep.subr.bf16.mxu1 %v1312_v25  ;;  %v1082_v10 = vcombine.low %v173_v9, %v173_v9  ;;  %v1083_v11 = vcombine.high %v173_v9, %v173_v9  ;;  %v1362_v16 = vld [vmem:[%s1652_s1 + $0x218] sm:$0xff]  }
  0x1f   : > { %v1366_v20 = vld [vmem:[%s1652_s1 + $0x238] sm:$0xff]  }
  0x20   : > { %1172 = vmatpush3.bf16.msra.mxu0 %v1313_v26 }
  0x21   : > { %1194 = vmatpush3.bf16.msra.mxu1 %v1314_v27  ;;  %1173 = vmatprep.subr.bf16.mxu0 %v1315_v28 }
  0x22   : > { %1195 = vmatprep.subr.bf16.mxu1 %v1316_v29 }
  0x24   : > { %1174 = vmatpush3.bf16.msra.mxu0 %v1317_v30 }
  0x25   : > { %1196 = vmatpush3.bf16.msra.mxu1 %v1318_v31  ;;  %1203 = vmatprep.subr.bf16.mxu0 %v1323_v38 }
  0x26   : > { %1225 = vmatprep.subr.bf16.mxu1 %v1325_v40 }
  0x27   : > { %816 = vmatmul.mubr.bf16.vlgmr.msra.gmra.mrb[0].mxu0 %v1076_v34 }
  0x28   : > { %856 = vmatmul.mubr.bf16.vlgmr.msra.gmra.mrb[0].mxu1 %v1078_v36  ;;  %1204 = vmatpush3.bf16.msra.mxu0 %v1324_v39 }
  0x29   : > { %1226 = vmatpush3.bf16.msra.mxu1 %v1326_v41  ;;  %1205 = vmatprep.subr.bf16.mxu0 %v1327_v42 }
  0x2a   : > { %1227 = vmatprep.subr.bf16.mxu1 %v1329_v44  ;;  %895 = vmatprep.mubr.bf16.mxu0 %v1081_v6  ;;  %v983_v6 = vld [vmem:[%s1653_s2] sm:$0x3] }
  0x2b   : > { %935 = vmatprep.mubr.bf16.mxu1 %v1083_v11 }
  0x2c   : > { %1206 = vmatpush3.bf16.msra.mxu0 %v1328_v43 }
  0x2d   : > { %1228 = vmatpush3.bf16.msra.mxu1 %v1330_v45  ;;  %1207 = vmatprep.subr.bf16.mxu0 %v1331_v46 }
  0x2e   : > { %1229 = vmatprep.subr.bf16.mxu1 %v1333_v48 }
  0x30   : > { %1208 = vmatpush3.bf16.msra.mxu0 %v1332_v47 }
  0x31   : > { %1230 = vmatpush3.bf16.msra.mxu1 %v1334_v49  ;;  %1209 = vmatprep.subr.bf16.mxu0 %v1335_v50 }
  0x32   : > { %1231 = vmatprep.subr.bf16.mxu1 %v1337_v52 }
  0x34   : > { %1210 = vmatpush3.bf16.msra.mxu0 %v1336_v51 }
  0x35   : > { %1232 = vmatpush3.bf16.msra.mxu1 %v1338_v53  ;;  %1211 = vmatprep.subr.bf16.mxu0 %v1339_v54 }
  0x36   : > { %1233 = vmatprep.subr.bf16.mxu1 %v1341_v56 }
  0x38   : > { %1212 = vmatpush3.bf16.msra.mxu0 %v1340_v55 }
  0x39   : > { %1234 = vmatpush3.bf16.msra.mxu1 %v1342_v57  ;;  %1213 = vmatprep.subr.bf16.mxu0 %v1343_v58 }
  0x3a   : > { %1235 = vmatprep.subr.bf16.mxu1 %v1345_v60 }
  0x3c   : > { %1214 = vmatpush3.bf16.msra.mxu0 %v1344_v59 }
  0x3d   : > { %1236 = vmatpush3.bf16.msra.mxu1 %v1346_v61  ;;  %1215 = vmatprep.subr.bf16.mxu0 %v1347_v62 }
  0x3e   : > { %1237 = vmatprep.subr.bf16.mxu1 %v1349_v0 }
  0x40   : > { %1216 = vmatpush3.bf16.msra.mxu0 %v1348_v63 }
  0x41   : > { %1238 = vmatpush3.bf16.msra.mxu1 %v1350_v1  ;;  %1217 = vmatprep.subr.bf16.mxu0 %v1351_v2  ;;  %v1003_v2 = vlaneseq }
  0x42   : > { %1239 = vmatprep.subr.bf16.mxu1 %v1353_v4 }
  0x43   : > { %v1004_v4 = vshrl.u32 %v1003_v2, 7 }
  0x44   : > { %1218 = vmatpush3.bf16.msra.mxu0 %v1352_v3 }
  0x45   : > { %1240 = vmatpush3.bf16.msra.mxu1 %v1356_v7  ;;  %1256 = vmatprep.subr.bf16.mxu0 %v1378_v13  ;;  %v1005_v5 = vsub.s32 0, %v1004_v4  ;;  %v1010_v7 = vsub.s32 1, %v1004_v4 }
  0x47   : > { %896 = vmatmul.mubr.bf16.vlgmr.msra.gmra.mrb[4].mxu0 %v1080_v8  ;;  %v1006_v8 = vrot.slane %v983_v6, %v1005_v5  ;;  %v1011_v11 = vrot.slane %v983_v6, %v1010_v7 }
  0x48   : > { %1257 = vmatpush3.bf16.msra.mxu0 %v1359_v12  ;;  %936 = vmatmul.mubr.bf16.vlgmr.msra.gmra.mrb[4].mxu1 %v1082_v10 }
  0x49   : > { %1258 = vmatprep.subr.bf16.mxu0 %v1378_v13  ;;  %1272 = vmatprep.mubr.msk.bf16.mxu0 %vm1379_vm0, %v1378_v13 }
  0x4c   : > { %1259 = vmatpush3.bf16.msra.mxu0 %v1360_v14 }
  0x4d   : > { %1260 = vmatprep.subr.bf16.mxu0 %v1378_v13 }
  0x50   : > { %1261 = vmatpush3.bf16.msra.mxu0 %v1361_v15 }
  0x51   : > { %1262 = vmatprep.subr.bf16.mxu0 %v1378_v13 }
  0x54   : > { %1263 = vmatpush3.bf16.msra.mxu0 %v1362_v16 }
  0x55   : > { %1264 = vmatprep.subr.bf16.mxu0 %v1378_v13 }
  0x58   : > { %1265 = vmatpush3.bf16.msra.mxu0 %v1363_v17 }
  0x59   : > { %1266 = vmatprep.subr.bf16.mxu0 %v1378_v13 }
  0x5c   : > { %1267 = vmatpush3.bf16.msra.mxu0 %v1364_v18 }
  0x5d   : > { %1268 = vmatprep.subr.bf16.mxu0 %v1378_v13 }
  0x60   : > { %1269 = vmatpush3.bf16.msra.mxu0 %v1365_v19 }
  0x61   : > { %1270 = vmatprep.subr.bf16.mxu0 %v1378_v13 }
  0x64   : > { %1271 = vmatpush3.bf16.msra.mxu0 %v1366_v20 }
  0x67   : > { %1273 = vmatmul.mubr.bf16.vlgmr.msra.gmra.mrb[8].mxu0 %v1367_v21 }
  0xfa   : > { %v1175_v22 = vpop.f32.mrb[0].mxu0 }
  0xfb   : > { %v1197_v23 = vpop.f32.mrb[0].mxu1  ;;  %v1176_v24 = vpop.f32.mrb[1].mxu0 }
  0xfc   : > { %v1198_v25 = vpop.f32.mrb[1].mxu1  ;;  %v1177_v26 = vadd.f32 %v1176_v24, %v1175_v22  ;;  %v1178_v28 = vpop.f32.mrb[2].mxu0 }
  0xfd   : > { %v1199_v27 = vadd.f32 %v1198_v25, %v1197_v23  ;;  %v1200_v29 = vpop.f32.mrb[2].mxu1  ;;  %v1179_v30 = vpop.f32.mrb[3].mxu0 }
  0xfe   : > { %v1201_v31 = vpop.f32.mrb[3].mxu1 }
  0xff   : > { %v858_v32 = vadd.f32 %v1199_v27, %v1177_v26 }
 0x11a   : > { %v1219_v33 = vpop.f32.mrb[4].mxu0 }
 0x11b   : > { %v1220_v34 = vpop.f32.mrb[5].mxu0  ;;  %v1241_v35 = vpop.f32.mrb[4].mxu1 }
 0x11c   : > { %v1221_v36 = vadd.f32 %v1220_v34, %v1219_v33  ;;  %v1222_v37 = vpop.f32.mrb[6].mxu0  ;;  %v1242_v38 = vpop.f32.mrb[5].mxu1 }
 0x11d   : > { %v1223_v39 = vpop.f32.mrb[7].mxu0  ;;  %v1243_v40 = vadd.f32 %v1242_v38, %v1241_v35  ;;  %v1244_v41 = vpop.f32.mrb[6].mxu1 }
 0x11e   : > { %v898_v42 = vadd.f32 %v1221_v36, %v858_v32  ;;  %v1245_v43 = vpop.f32.mrb[7].mxu1 }
 0x120   : > { %v938_v44 = vadd.f32 %v1243_v40, %v898_v42 }
 0x13a   : > { %v977_v45 = vpop.f32.mrb[8].mxu0 }
 0x13b   : > { %v978_v46 = vadd.f32 %v977_v45, %v938_v44  ;;  %v1274_v47 = vpop.f32.mrb[9].mxu0 }
 0x13c   : > { %v980_v48 = vpop.f32.mrb[10].mxu0 }
 0x13d   : > { %v984_v49 = vrot.slane %v978_v46, 4  ;;  %v1275_v50 = vpop.f32.mrb[11].mxu0 }
 0x13f   : > { %v985_v51 = vadd.f32 %v984_v49, %v978_v46 }
 0x141   : > { %v986_v52 = vrot.slane %v985_v51, 2 }
 0x143   : > { %v987_v53 = vadd.f32 %v986_v52, %v985_v51 }
 0x145   : > { %v988_v54 = vrot.slane %v987_v53, 1 }
 0x147   : > { %v989_v55 = vadd.f32 %v988_v54, %v987_v53 }
 0x149   : > { %v990_v56 = vmul.f32 0.125, %v989_v55 }
 0x14b   : > { %v991_v57 = vsub.f32 %v978_v46, %v990_v56 }
 0x14d   : > { %v992_v58 = vmul.f32 %v991_v57, %v991_v57 }
 0x14f   : > { %v993_v59 = vrot.slane %v992_v58, 4 }
 0x151   : > { %v994_v60 = vadd.f32 %v993_v59, %v992_v58 }
 0x153   : > { %v995_v61 = vrot.slane %v994_v60, 2 }
 0x155   : > { %v996_v62 = vadd.f32 %v995_v61, %v994_v60 }
 0x157   : > { %v997_v63 = vrot.slane %v996_v62, 1 }
 0x159   : > { %v998_v0 = vadd.f32 %v997_v63, %v996_v62 }
 0x15b   : > { %v999_v1 = vmul.f32 0.125, %v998_v0 }
 0x15d   : > { %v1000_v3 = vadd.f32 1e-05, %v999_v1 }
 0x15f   : > { %1368 = vrsqrt.f32 %v1000_v3 }
 0x169   : > { %v1369_v9 = vpop.eup %1368 }
 0x16a   : > { %v1002_v10 = vmul.f32 %v1369_v9, %v991_v57 }
 0x16c   : > { %v1007_v12 = vmul.f32 %v1006_v8, %v1002_v10 }
 0x16e   : > { %v1012_v13 = vadd.f32 %v1011_v11, %v1007_v12 }
 0x170   : > { %v1013_v14 = vmax.f32 %v1012_v13, 0.0 }
 0x172   : > { %v1014_v15 = vpack.c.bf16 %v1013_v14, %v1013_v14 }
 0x174   : > { %1015 = vst [vmem:[%s168_s19] sm:$0xf] %v1014_v15 }
 0x175 PF: > { %s13_s12 = sadd.s32 1, %s1376_s12  }
 0x176   : > { %p10_p4 = scmp.ge.s32.totalorder %s13_s12, 5  }
 0x178   :  { %12 = sbr.rel (!%p10_p4) target bundleno = 1 (0x1), region = 62 }

// kernel: simsiam_forward.16
= control target key start
LH: loop header
LB: loop body
LE: loop exit
PB: predicated region body
PF: predicated region fallthrough
CT: control target
= control target key end

     0   :  { %s1662_s21 = smov 0   ;;  %s1935_s0 = inlined_call_operand.vmem [shape: bf16[3,8,1152], index: 0, kind: input, shape index: {}]   ;;  %s1936_s1 = inlined_call_operand.vmem [shape: bf16[1152,128], index: 1, kind: input, shape index: {}]   ;;  %s1937_s2 = inlined_call_operand.vmem [shape: f32[2,128], index: 2, kind: input, shape index: {}]   ;;  %s1938_s3 = inlined_call_operand.vmem [shape: bf16[3,8,64], index: 3, kind: input, shape index: {}]   ;;  %s1939_s4 = inlined_call_operand.vmem [shape: bf16[64,128], index: 4, kind: input, shape index: {}]   ;;  %s1940_s5 = inlined_call_operand.vmem [shape: f32[2,128], index: 5, kind: input, shape index: {}]   ;;  %s1941_s6 = inlined_call_operand.vmem [shape: bf16[3,8,128], index: 6, kind: output, shape index: {}]  }
   0x1 LB: > { %s1287_s22 = sadd.s32 4294967295, %s1623_s21   ;;  %p1291_p0 = scmp.ge.s32.totalorder %s1623_s21, 1  ;;  %s1623_s21 = sphi %s1662_s21, %s16_s21  }
   0x2   : > { %p221_p1 = scmp.lt.s32.totalorder %s1623_s21, 4 }
   0x4   : > { %p222_p2 = pnand %p1291_p0, %p221_p1 }
   0x5   : > { %v1528_v0 = vld [vmem:[%s1936_s1 + $0x40] sm:$0xff] (!%p222_p2)   ;;  %v1532_v4 = vld [vmem:[%s1936_s1 + $0x48] sm:$0xff] (!%p222_p2)   ;;  %v1536_v8 = vld [vmem:[%s1936_s1 + $0x50] sm:$0xff] (!%p222_p2)   ;;  %p254_p3 = scmp.lt.s32.totalorder (!%p222_p2), %s1287_s22, 2  ;;  %vm1626_vm0 = vmmov (!%p222_p2), 0   ;;  %vm1144_vm1 = vcmask (!%p222_p2), 523264  }
   0x6   : > { %225 = sbr.rel (%p222_p2) target bundleno = 375 (0x177), region = 44  ;;  %v1529_v1 = vld [vmem:[%s1936_s1 + $0xc0] sm:$0xff] (!%p222_p2)   ;;  %1383 = vmatprep.subr.bf16.mxu0 (!%p222_p2), %v1528_v0  ;;  %v1533_v5 = vld [vmem:[%s1936_s1 + $0xc8] sm:$0xff] (!%p222_p2)   ;;  %v1537_v9 = vld [vmem:[%s1936_s1 + $0xd0] sm:$0xff] (!%p222_p2)  }
   0x7   : > { %v1530_v2 = vld [vmem:[%s1936_s1] sm:$0xff] (!%p222_p2)   ;;  %1405 = vmatprep.subr.bf16.mxu1 (!%p222_p2), %v1529_v1  ;;  %v1534_v6 = vld [vmem:[%s1936_s1 + $0x8] sm:$0xff] (!%p222_p2)   ;;  %v1538_v10 = vld [vmem:[%s1936_s1 + $0x10] sm:$0xff] (!%p222_p2)  }
   0x8   : > { %v1531_v3 = vld [vmem:[%s1936_s1 + $0x80] sm:$0xff] (!%p222_p2)   ;;  %1384 = vmatpush3.bf16.msra.mxu0 (!%p222_p2), %v1530_v2  ;;  %v1535_v7 = vld [vmem:[%s1936_s1 + $0x88] sm:$0xff] (!%p222_p2)   ;;  %v1539_v11 = vld [vmem:[%s1936_s1 + $0x90] sm:$0xff] (!%p222_p2)  }
   0x9   : > { %1406 = vmatpush3.bf16.msra.mxu1 (!%p222_p2), %v1531_v3  ;;  %1385 = vmatprep.subr.bf16.mxu0 (!%p222_p2), %v1532_v4  ;;  %v1540_v12 = vld [vmem:[%s1936_s1 + $0x58] sm:$0xff] (!%p222_p2)   ;;  %v1544_v16 = vld [vmem:[%s1936_s1 + $0x60] sm:$0xff] (!%p222_p2)   ;;  %v1548_v20 = vld [vmem:[%s1936_s1 + $0x68] sm:$0xff] (!%p222_p2)  }
   0xa   : > { %1407 = vmatprep.subr.bf16.mxu1 (!%p222_p2), %v1533_v5  ;;  %v1541_v13 = vld [vmem:[%s1936_s1 + $0xd8] sm:$0xff] (!%p222_p2)   ;;  %v1545_v17 = vld [vmem:[%s1936_s1 + $0xe0] sm:$0xff] (!%p222_p2)   ;;  %v1549_v21 = vld [vmem:[%s1936_s1 + $0xe8] sm:$0xff] (!%p222_p2)  }
   0xb   : > { %v1542_v14 = vld [vmem:[%s1936_s1 + $0x18] sm:$0xff] (!%p222_p2)   ;;  %v1546_v18 = vld [vmem:[%s1936_s1 + $0x20] sm:$0xff] (!%p222_p2)   ;;  %v1550_v22 = vld [vmem:[%s1936_s1 + $0x28] sm:$0xff] (!%p222_p2)  }
   0xc   : > { %1386 = vmatpush3.bf16.msra.mxu0 (!%p222_p2), %v1534_v6  ;;  %v1543_v15 = vld [vmem:[%s1936_s1 + $0x98] sm:$0xff] (!%p222_p2)   ;;  %v1547_v19 = vld [vmem:[%s1936_s1 + $0xa0] sm:$0xff] (!%p222_p2)   ;;  %v1551_v23 = vld [vmem:[%s1936_s1 + $0xa8] sm:$0xff] (!%p222_p2)  }
   0xd   : > { %1408 = vmatpush3.bf16.msra.mxu1 %v1535_v7  ;;  %1387 = vmatprep.subr.bf16.mxu0 %v1536_v8  ;;  %s1943_s22 = smov (!%p254_p3, %s1287_s22), 2  ;;  %v1552_v24 = vld [vmem:[%s1936_s1 + $0x70] sm:$0xff]   ;;  %v1556_v28 = vld [vmem:[%s1936_s1 + $0x78] sm:$0xff]   ;;  %v1564_v38 = vld [vmem:[%s1936_s1 + $0x140] sm:$0xff]  }
   0xe   : > { %1409 = vmatprep.subr.bf16.mxu1 %v1537_v9  ;;  %v1553_v25 = vld [vmem:[%s1936_s1 + $0xf0] sm:$0xff]   ;;  %s1517_s7 = smul.u32 36, %s1943_s22  ;;  %v1557_v29 = vld [vmem:[%s1936_s1 + $0xf8] sm:$0xff]   ;;  %v1565_v39 = vld [vmem:[%s1936_s1 + $0x1c0] sm:$0xff]   ;;  %s1293_s14 = sshll.u32 %s1943_s22, 2 }
   0xf   : > { %v1554_v26 = vld [vmem:[%s1936_s1 + $0x30] sm:$0xff]   ;;  %v1558_v30 = vld [vmem:[%s1936_s1 + $0x38] sm:$0xff]   ;;  %v1566_v40 = vld [vmem:[%s1936_s1 + $0x100] sm:$0xff]   ;;  %s262_s24 = scalar_lea.vmem %s1938_s3, %s1293_s14  ;;  %s266_s15 = scalar_lea.vmem %s1941_s6, %s1293_s14 }
  0x10   : > { %1388 = vmatpush3.bf16.msra.mxu0 %v1538_v10  ;;  %v1555_v27 = vld [vmem:[%s1936_s1 + $0xb0] sm:$0xff]   ;;  %s1770_s18 = scalar_lea.vmem %s1935_s0, %s1517_s7  ;;  %v1559_v31 = vld [vmem:[%s1936_s1 + $0xb8] sm:$0xff]   ;;  %v1567_v41 = vld [vmem:[%s1936_s1 + $0x180] sm:$0xff]  }
  0x11   : > { %1410 = vmatpush3.bf16.msra.mxu1 %v1539_v11  ;;  %1389 = vmatprep.subr.bf16.mxu0 %v1540_v12  ;;  %v268_v32 = vld [vmem:[%s1770_s18] sm:$0xff]  ;;  %v269_v33 = vld [vmem:[%s1770_s18 + $0x8] sm:$0xff]  ;;  %v1572_v46 = vld [vmem:[%s1936_s1 + $0x150] sm:$0xff]  }
  0x12   : > { %1411 = vmatprep.subr.bf16.mxu1 %v1541_v13  ;;  %v1295_v34 = vcombine.low %v268_v32, %v268_v32  ;;  %v1296_v35 = vcombine.high %v268_v32, %v268_v32  ;;  %v1297_v36 = vcombine.low %v269_v33, %v269_v33  ;;  %v1298_v37 = vcombine.high %v269_v33, %v269_v33  ;;  %v1568_v42 = vld [vmem:[%s1936_s1 + $0x148] sm:$0xff]   ;;  %v1573_v47 = vld [vmem:[%s1936_s1 + $0x1d0] sm:$0xff]   ;;  %v1576_v50 = vld [vmem:[%s1936_s1 + $0x158] sm:$0xff]  }
  0x13   : > { %v1569_v43 = vld [vmem:[%s1936_s1 + $0x1c8] sm:$0xff]   ;;  %v1574_v48 = vld [vmem:[%s1936_s1 + $0x110] sm:$0xff]   ;;  %v1577_v51 = vld [vmem:[%s1936_s1 + $0x1d8] sm:$0xff]   ;;  %v1625_v13 = vmov 0.0  }
  0x14   : > { %1390 = vmatpush3.bf16.msra.mxu0 %v1542_v14  ;;  %913 = vmatprep.mubr.bf16.mxu0 %v1296_v35  ;;  %v1570_v44 = vld [vmem:[%s1936_s1 + $0x108] sm:$0xff]   ;;  %v1575_v49 = vld [vmem:[%s1936_s1 + $0x190] sm:$0xff]   ;;  %v1578_v52 = vld [vmem:[%s1936_s1 + $0x118] sm:$0xff]  }
  0x15   : > { %1412 = vmatpush3.bf16.msra.mxu1 %v1543_v15  ;;  %1391 = vmatprep.subr.bf16.mxu0 %v1544_v16  ;;  %v1571_v45 = vld [vmem:[%s1936_s1 + $0x188] sm:$0xff]   ;;  %v1579_v53 = vld [vmem:[%s1936_s1 + $0x198] sm:$0xff]   ;;  %v1580_v54 = vld [vmem:[%s1936_s1 + $0x160] sm:$0xff]  }
  0x16   : > { %1413 = vmatprep.subr.bf16.mxu1 %v1545_v17  ;;  %953 = vmatprep.mubr.bf16.mxu1 %v1298_v37  ;;  %v1581_v55 = vld [vmem:[%s1936_s1 + $0x1e0] sm:$0xff]   ;;  %v1584_v58 = vld [vmem:[%s1936_s1 + $0x168] sm:$0xff]   ;;  %v1588_v62 = vld [vmem:[%s1936_s1 + $0x170] sm:$0xff]  }
  0x17   : > { %v1582_v56 = vld [vmem:[%s1936_s1 + $0x120] sm:$0xff]   ;;  %v1585_v59 = vld [vmem:[%s1936_s1 + $0x1e8] sm:$0xff]   ;;  %v1589_v63 = vld [vmem:[%s1936_s1 + $0x1f0] sm:$0xff]  }
  0x18   : > { %1392 = vmatpush3.bf16.msra.mxu0 %v1546_v18  ;;  %v1583_v57 = vld [vmem:[%s1936_s1 + $0x1a0] sm:$0xff]   ;;  %v1586_v60 = vld [vmem:[%s1936_s1 + $0x128] sm:$0xff]   ;;  %v1590_v0 = vld [vmem:[%s1936_s1 + $0x130] sm:$0xff]  }
  0x19   : > { %1414 = vmatpush3.bf16.msra.mxu1 %v1547_v19  ;;  %1393 = vmatprep.subr.bf16.mxu0 %v1548_v20  ;;  %v1587_v61 = vld [vmem:[%s1936_s1 + $0x1a8] sm:$0xff]   ;;  %v1591_v1 = vld [vmem:[%s1936_s1 + $0x1b0] sm:$0xff]   ;;  %v1592_v2 = vld [vmem:[%s1936_s1 + $0x178] sm:$0xff]  }
  0x1a   : > { %1415 = vmatprep.subr.bf16.mxu1 %v1549_v21  ;;  %v1593_v3 = vld [vmem:[%s1936_s1 + $0x1f8] sm:$0xff]   ;;  %v270_v6 = vld [vmem:[%s1770_s18 + $0x10] sm:$0xff]  ;;  %v1600_v12 = vld [vmem:[%s1936_s1 + $0x200] sm:$0xff]  }
  0x1b   : > { %v1594_v4 = vld [vmem:[%s1936_s1 + $0x138] sm:$0xff]   ;;  %v1299_v7 = vcombine.low %v270_v6, %v270_v6  ;;  %v1300_v8 = vcombine.high %v270_v6, %v270_v6  ;;  %v1601_v14 = vld [vmem:[%s1939_s4] sm:$0xff]   ;;  %v1602_v15 = vld [vmem:[%s1936_s1 + $0x208] sm:$0xff]  }
  0x1c   : > { %1394 = vmatpush3.bf16.msra.mxu0 %v1550_v22  ;;  %v1595_v5 = vld [vmem:[%s1936_s1 + $0x1b8] sm:$0xff]   ;;  %v1603_v16 = vld [vmem:[%s1939_s4 + $0x8] sm:$0xff]   ;;  %v1604_v17 = vld [vmem:[%s1936_s1 + $0x210] sm:$0xff]  }
  0x1d   : > { %1416 = vmatpush3.bf16.msra.mxu1 %v1551_v23  ;;  %1395 = vmatprep.subr.bf16.mxu0 %v1552_v24  ;;  %v271_v9 = vld [vmem:[%s1770_s18 + $0x18] sm:$0xff]  ;;  %v1605_v18 = vld [vmem:[%s1939_s4 + $0x10] sm:$0xff]   ;;  %v1111_v21 = vld [vmem:[%s262_s24] sm:$0xf] }
  0x1e   : > { %1417 = vmatprep.subr.bf16.mxu1 %v1553_v25  ;;  %v1301_v10 = vcombine.low %v271_v9, %v271_v9  ;;  %v1302_v11 = vcombine.high %v271_v9, %v271_v9  ;;  %v1606_v19 = vld [vmem:[%s1936_s1 + $0x218] sm:$0xff]   ;;  %v1608_v22 = vld [vmem:[%s1936_s1 + $0x220] sm:$0xff]   ;;  %v1609_v23 = vld [vmem:[%s1936_s1 + $0x228] sm:$0xff]  }
  0x1f   : > { %v1607_v20 = vld [vmem:[%s1939_s4 + $0x18] sm:$0xff]   ;;  %v1610_v24 = vld [vmem:[%s1936_s1 + $0x230] sm:$0xff]  }
  0x20   : > { %1396 = vmatpush3.bf16.msra.mxu0 %v1554_v26  ;;  %v1611_v25 = vld [vmem:[%s1936_s1 + $0x238] sm:$0xff]   ;;  %v1612_v26 = vld [vmem:[%s1770_s18 + $0x20] ss:$0 sps:$4 sm:$0xff]  }
  0x21   : > { %1418 = vmatpush3.bf16.msra.mxu1 %v1555_v27  ;;  %1397 = vmatprep.subr.bf16.mxu0 %v1556_v28 }
  0x22   : > { %1419 = vmatprep.subr.bf16.mxu1 %v1557_v29 }
  0x24   : > { %1398 = vmatpush3.bf16.msra.mxu0 %v1558_v30 }
  0x25   : > { %1420 = vmatpush3.bf16.msra.mxu1 %v1559_v31  ;;  %1427 = vmatprep.subr.bf16.mxu0 %v1564_v38 }
  0x26   : > { %1449 = vmatprep.subr.bf16.mxu1 %v1565_v39 }
  0x27   : > { %914 = vmatmul.mubr.bf16.vlgmr.msra.gmra.mrb[0].mxu0 %v1295_v34 }
  0x28   : > { %954 = vmatmul.mubr.bf16.vlgmr.msra.gmra.mrb[0].mxu1 %v1297_v36  ;;  %1428 = vmatpush3.bf16.msra.mxu0 %v1566_v40 }
  0x29   : > { %1450 = vmatpush3.bf16.msra.mxu1 %v1567_v41  ;;  %1429 = vmatprep.subr.bf16.mxu0 %v1568_v42 }
  0x2a   : > { %1451 = vmatprep.subr.bf16.mxu1 %v1569_v43  ;;  %993 = vmatprep.mubr.bf16.mxu0 %v1300_v8 }
  0x2b   : > { %1033 = vmatprep.mubr.bf16.mxu1 %v1302_v11 }
  0x2c   : > { %1430 = vmatpush3.bf16.msra.mxu0 %v1570_v44 }
  0x2d   : > { %1452 = vmatpush3.bf16.msra.mxu1 %v1571_v45  ;;  %1431 = vmatprep.subr.bf16.mxu0 %v1572_v46 }
  0x2e   : > { %1453 = vmatprep.subr.bf16.mxu1 %v1573_v47 }
  0x30   : > { %1432 = vmatpush3.bf16.msra.mxu0 %v1574_v48 }
  0x31   : > { %1454 = vmatpush3.bf16.msra.mxu1 %v1575_v49  ;;  %1433 = vmatprep.subr.bf16.mxu0 %v1576_v50 }
  0x32   : > { %1455 = vmatprep.subr.bf16.mxu1 %v1577_v51 }
  0x34   : > { %1434 = vmatpush3.bf16.msra.mxu0 %v1578_v52 }
  0x35   : > { %1456 = vmatpush3.bf16.msra.mxu1 %v1579_v53  ;;  %1435 = vmatprep.subr.bf16.mxu0 %v1580_v54 }
  0x36   : > { %1457 = vmatprep.subr.bf16.mxu1 %v1581_v55 }
  0x38   : > { %1436 = vmatpush3.bf16.msra.mxu0 %v1582_v56 }
  0x39   : > { %1458 = vmatpush3.bf16.msra.mxu1 %v1583_v57  ;;  %1437 = vmatprep.subr.bf16.mxu0 %v1584_v58 }
  0x3a   : > { %1459 = vmatprep.subr.bf16.mxu1 %v1585_v59 }
  0x3c   : > { %1438 = vmatpush3.bf16.msra.mxu0 %v1586_v60 }
  0x3d   : > { %1460 = vmatpush3.bf16.msra.mxu1 %v1587_v61  ;;  %1439 = vmatprep.subr.bf16.mxu0 %v1588_v62 }
  0x3e   : > { %1461 = vmatprep.subr.bf16.mxu1 %v1589_v63 }
  0x40   : > { %1440 = vmatpush3.bf16.msra.mxu0 %v1590_v0 }
  0x41   : > { %1462 = vmatpush3.bf16.msra.mxu1 %v1591_v1  ;;  %1441 = vmatprep.subr.bf16.mxu0 %v1592_v2 }
  0x42   : > { %1463 = vmatprep.subr.bf16.mxu1 %v1593_v3 }
  0x44   : > { %1442 = vmatpush3.bf16.msra.mxu0 %v1594_v4 }
  0x45   : > { %1464 = vmatpush3.bf16.msra.mxu1 %v1595_v5  ;;  %1485 = vmatprep.subr.bf16.mxu0 %v1625_v13 }
  0x46   : > { %1505 = vmatprep.subr.bf16.mxu1 %v1625_v13 }
  0x47   : > { %994 = vmatmul.mubr.bf16.vlgmr.msra.gmra.mrb[4].mxu0 %v1299_v7 }
  0x48   : > { %1034 = vmatmul.mubr.bf16.vlgmr.msra.gmra.mrb[4].mxu1 %v1301_v10  ;;  %1486 = vmatpush3.bf16.msra.mxu0 %v1600_v12 }
  0x49   : > { %1506 = vmatpush3.bf16.msra.mxu1 %v1601_v14  ;;  %1487 = vmatprep.subr.bf16.mxu0 %v1625_v13 }
  0x4a   : > { %1507 = vmatprep.subr.bf16.mxu1 %v1625_v13  ;;  %1513 = vmatprep.mubr.msk.bf16.mxu1 %vm1626_vm0, %v1625_v13 }
  0x4b   : > { %1501 = vmatprep.mubr.msk.bf16.mxu0 %vm1626_vm0, %v1625_v13 }
  0x4c   : > { %1488 = vmatpush3.bf16.msra.mxu0 %v1602_v15 }
  0x4d   : > { %1508 = vmatpush3.bf16.msra.mxu1 %v1603_v16  ;;  %1489 = vmatprep.subr.bf16.mxu0 %v1625_v13 }
  0x4e   : > { %1509 = vmatprep.subr.bf16.mxu1 %v1625_v13 }
  0x50   : > { %1490 = vmatpush3.bf16.msra.mxu0 %v1604_v17 }
  0x51   : > { %1510 = vmatpush3.bf16.msra.mxu1 %v1605_v18  ;;  %1491 = vmatprep.subr.bf16.mxu0 %v1625_v13 }
  0x52   : > { %1511 = vmatprep.subr.bf16.mxu1 %v1625_v13 }
  0x54   : > { %1492 = vmatpush3.bf16.msra.mxu0 %v1606_v19 }
  0x55   : > { %1512 = vmatpush3.bf16.msra.mxu1 %v1607_v20  ;;  %1493 = vmatprep.subr.bf16.mxu0 %v1625_v13 }
  0x58   : > { %1514 = vmatmul.mubr.msk.bf16.vlgmr.msra.gmra.mrb[8].mxu1 %vm1144_vm1, %v1111_v21  ;;  %1494 = vmatpush3.bf16.msra.mxu0 %v1608_v22 }
  0x59   : > { %1495 = vmatprep.subr.bf16.mxu0 %v1625_v13 }
  0x5c   : > { %1496 = vmatpush3.bf16.msra.mxu0 %v1609_v23 }
  0x5d   : > { %1497 = vmatprep.subr.bf16.mxu0 %v1625_v13 }
  0x60   : > { %1498 = vmatpush3.bf16.msra.mxu0 %v1610_v24 }
  0x61   : > { %1499 = vmatprep.subr.bf16.mxu0 %v1625_v13 }
  0x64   : > { %1500 = vmatpush3.bf16.msra.mxu0 %v1611_v25 }
  0x67   : > { %1502 = vmatmul.mubr.bf16.vlgmr.msra.gmra.mrb[8].mxu0 %v1612_v26 }
  0xfa   : > { %v1399_v27 = vpop.f32.mrb[0].mxu0 }
  0xfb   : > { %v1421_v28 = vpop.f32.mrb[0].mxu1  ;;  %v1400_v29 = vpop.f32.mrb[1].mxu0 }
  0xfc   : > { %v1422_v30 = vpop.f32.mrb[1].mxu1  ;;  %v1401_v31 = vadd.f32 %v1400_v29, %v1399_v27  ;;  %v1402_v33 = vpop.f32.mrb[2].mxu0  ;;  %v1101_v27 = vlaneseq }
  0xfd   : > { %v1423_v32 = vadd.f32 %v1422_v30, %v1421_v28  ;;  %v1424_v34 = vpop.f32.mrb[2].mxu1  ;;  %v1403_v35 = vpop.f32.mrb[3].mxu0  ;;  %v1188_v33 = vld [vmem:[%s1940_s5] sm:$0x3] }
  0xfe   : > { %v1425_v36 = vpop.f32.mrb[3].mxu1  ;;  %v1102_v30 = vshrl.u32 %v1101_v27, 7  ;;  %v1081_v34 = vld [vmem:[%s1937_s2] sm:$0x3] }
  0xff   : > { %v956_v37 = vadd.f32 %v1423_v32, %v1401_v31 }
 0x100   : > { %v1103_v31 = vsub.s32 0, %v1102_v30  ;;  %v1108_v35 = vsub.s32 1, %v1102_v30 }
 0x11a   : > { %v1443_v38 = vpop.f32.mrb[4].mxu0 }
 0x11b   : > { %v1465_v39 = vpop.f32.mrb[4].mxu1  ;;  %v1444_v40 = vpop.f32.mrb[5].mxu0 }
 0x11c   : > { %v1466_v41 = vpop.f32.mrb[5].mxu1  ;;  %v1445_v42 = vadd.f32 %v1444_v40, %v1443_v38  ;;  %v1446_v43 = vpop.f32.mrb[6].mxu0  ;;  %v1104_v38 = vrot.slane %v1081_v34, %v1103_v31 }
 0x11d   : > { %v1467_v44 = vadd.f32 %v1466_v41, %v1465_v39  ;;  %v1468_v45 = vpop.f32.mrb[6].mxu1  ;;  %v1447_v46 = vpop.f32.mrb[7].mxu0  ;;  %v1216_v41 = vrot.slane %v1188_v33, %v1108_v35  ;;  %v1109_v43 = vrot.slane %v1081_v34, %v1108_v35 }
 0x11e   : > { %v1469_v47 = vpop.f32.mrb[7].mxu1  ;;  %v996_v48 = vadd.f32 %v1445_v42, %v956_v37  ;;  %v1211_v37 = vrot.slane %v1188_v33, %v1103_v31 }
 0x120   : > { %v1036_v49 = vadd.f32 %v1467_v44, %v996_v48 }
 0x12b   : > { %v1182_v50 = vpop.f32.mrb[8].mxu1 }
 0x12c   : > { %v1189_v51 = vrot.slane %v1182_v50, 4  ;;  %v1515_v52 = vpop.f32.mrb[9].mxu1 }
 0x12d   : > { %v1185_v53 = vpop.f32.mrb[10].mxu1 }
 0x12e   : > { %v1190_v54 = vadd.f32 %v1189_v51, %v1182_v50  ;;  %v1516_v55 = vpop.f32.mrb[11].mxu1 }
 0x130   : > { %v1191_v56 = vrot.slane %v1190_v54, 2 }
 0x132   : > { %v1192_v57 = vadd.f32 %v1191_v56, %v1190_v54 }
 0x134   : > { %v1193_v58 = vrot.slane %v1192_v57, 1 }
 0x136   : > { %v1194_v59 = vadd.f32 %v1193_v58, %v1192_v57 }
 0x138   : > { %v1195_v60 = vmul.f32 0.125, %v1194_v59 }
 0x13a   : > { %v1196_v61 = vsub.f32 %v1182_v50, %v1195_v60  ;;  %v1075_v62 = vpop.f32.mrb[8].mxu0 }
 0x13b   : > { %v1076_v0 = vadd.f32 %v1075_v62, %v1036_v49  ;;  %v1503_v1 = vpop.f32.mrb[9].mxu0 }
 0x13c   : > { %v1197_v63 = vmul.f32 %v1196_v61, %v1196_v61  ;;  %v1078_v2 = vpop.f32.mrb[10].mxu0 }
 0x13d   : > { %v1082_v4 = vrot.slane %v1076_v0, 4  ;;  %v1504_v5 = vpop.f32.mrb[11].mxu0 }
 0x13e   : > { %v1198_v3 = vrot.slane %v1197_v63, 4 }
 0x13f   : > { %v1083_v7 = vadd.f32 %v1082_v4, %v1076_v0 }
 0x140   : > { %v1199_v6 = vadd.f32 %v1198_v3, %v1197_v63 }
 0x141   : > { %v1084_v9 = vrot.slane %v1083_v7, 2 }
 0x142   : > { %v1200_v8 = vrot.slane %v1199_v6, 2 }
 0x143   : > { %v1085_v10 = vadd.f32 %v1084_v9, %v1083_v7 }
 0x144   : > { %v1201_v11 = vadd.f32 %v1200_v8, %v1199_v6 }
 0x145   : > { %v1086_v12 = vrot.slane %v1085_v10, 1 }
 0x146   : > { %v1202_v14 = vrot.slane %v1201_v11, 1 }
 0x147   : > { %v1087_v13 = vadd.f32 %v1086_v12, %v1085_v10 }
 0x148   : > { %v1203_v17 = vadd.f32 %v1202_v14, %v1201_v11 }
 0x149   : > { %v1088_v15 = vmul.f32 0.125, %v1087_v13 }
 0x14a   : > { %v1204_v20 = vmul.f32 0.125, %v1203_v17 }
 0x14b   : > { %v1089_v16 = vsub.f32 %v1076_v0, %v1088_v15 }
 0x14c   : > { %v1205_v23 = vadd.f32 1e-05, %v1204_v20 }
 0x14d   : > { %v1090_v18 = vmul.f32 %v1089_v16, %v1089_v16 }
 0x14e   : > { %1613 = vrsqrt.f32 %v1205_v23 }
 0x14f   : > { %v1091_v19 = vrot.slane %v1090_v18, 4 }
 0x151   : > { %v1092_v21 = vadd.f32 %v1091_v19, %v1090_v18 }
 0x153   : > { %v1093_v22 = vrot.slane %v1092_v21, 2 }
 0x155   : > { %v1094_v24 = vadd.f32 %v1093_v22, %v1092_v21 }
 0x157   : > { %v1095_v25 = vrot.slane %v1094_v24, 1 }
 0x158   : > { %v1614_v32 = vpop.eup %1613 }
 0x159   : > { %v1096_v26 = vadd.f32 %v1095_v25, %v1094_v24  ;;  %v1207_v36 = vmul.f32 %v1614_v32, %v1196_v61 }
 0x15b   : > { %v1097_v28 = vmul.f32 0.125, %v1096_v26  ;;  %v1212_v40 = vmul.f32 %v1211_v37, %v1207_v36 }
 0x15d   : > { %v1098_v29 = vadd.f32 1e-05, %v1097_v28  ;;  %v1217_v45 = vadd.f32 %v1216_v41, %v1212_v40 }
 0x15f   : > { %1615 = vrsqrt.f32 %v1098_v29 }
 0x169   : > { %v1616_v39 = vpop.eup %1615 }
 0x16a   : > { %v1100_v42 = vmul.f32 %v1616_v39, %v1089_v16 }
 0x16c   : > { %v1105_v44 = vmul.f32 %v1104_v38, %v1100_v42 }
 0x16e   : > { %v1110_v46 = vadd.f32 %v1109_v43, %v1105_v44 }
 0x170   : > { %v1218_v47 = vadd.f32 %v1217_v45, %v1110_v46 }
 0x172   : > { %v1219_v48 = vmax.f32 %v1218_v47, 0.0 }
 0x174   : > { %v1220_v49 = vpack.c.bf16 %v1219_v48, %v1219_v48 }
 0x176   : > { %1221 = vst [vmem:[%s266_s15] sm:$0xf] %v1220_v49 }
 0x177 PF: > { %s16_s21 = sadd.s32 1, %s1623_s21  }
 0x178   : > { %p13_p4 = scmp.ge.s32.totalorder %s16_s21, 5  }
 0x17a   :  { %15 = sbr.rel (!%p13_p4) target bundleno = 1 (0x1), region = 77 }

// kernel: simsiam_forward.18
= control target key start
LH: loop header
LB: loop body
LE: loop exit
PB: predicated region body
PF: predicated region fallthrough
CT: control target
= control target key end

     0   :  { %s1465_s15 = smov 0   ;;  %s1719_s0 = inlined_call_operand.vmem [shape: bf16[3,8,1152], index: 0, kind: input, shape index: {}]   ;;  %s1720_s1 = inlined_call_operand.vmem [shape: bf16[1152,128], index: 1, kind: input, shape index: {}]   ;;  %s1721_s2 = inlined_call_operand.vmem [shape: f32[2,128], index: 2, kind: input, shape index: {}]   ;;  %s1722_s3 = inlined_call_operand.vmem [shape: bf16[3,8,128], index: 3, kind: input, shape index: {}]   ;;  %s1723_s4 = inlined_call_operand.vmem [shape: bf16[3,8,128], index: 4, kind: output, shape index: {}]  }
   0x1 LB: > { %s1128_s16 = sadd.s32 4294967295, %s1436_s15   ;;  %p1132_p0 = scmp.ge.s32.totalorder %s1436_s15, 1  ;;  %s1436_s15 = sphi %s1465_s15, %s14_s15  }
   0x2   : > { %p171_p1 = scmp.lt.s32.totalorder %s1436_s15, 4 }
   0x4   : > { %p172_p2 = pnand %p1132_p0, %p171_p1 }
   0x5   : > { %v1347_v0 = vld [vmem:[%s1720_s1 + $0x40] sm:$0xff] (!%p172_p2)   ;;  %v1351_v4 = vld [vmem:[%s1720_s1 + $0x48] sm:$0xff] (!%p172_p2)   ;;  %v1355_v8 = vld [vmem:[%s1720_s1 + $0x50] sm:$0xff] (!%p172_p2)   ;;  %p200_p3 = scmp.lt.s32.totalorder (!%p172_p2), %s1128_s16, 2  ;;  %vm1439_vm0 = vmmov (!%p172_p2), 0  }
   0x6   : > { %175 = sbr.rel (%p172_p2) target bundleno = 375 (0x177), region = 36  ;;  %v1348_v1 = vld [vmem:[%s1720_s1 + $0xc0] sm:$0xff] (!%p172_p2)   ;;  %1219 = vmatprep.subr.bf16.mxu0 (!%p172_p2), %v1347_v0  ;;  %v1352_v5 = vld [vmem:[%s1720_s1 + $0xc8] sm:$0xff] (!%p172_p2)   ;;  %v1356_v9 = vld [vmem:[%s1720_s1 + $0xd0] sm:$0xff] (!%p172_p2)  }
   0x7   : > { %v1349_v2 = vld [vmem:[%s1720_s1] sm:$0xff] (!%p172_p2)   ;;  %1241 = vmatprep.subr.bf16.mxu1 (!%p172_p2), %v1348_v1  ;;  %v1353_v6 = vld [vmem:[%s1720_s1 + $0x8] sm:$0xff] (!%p172_p2)   ;;  %v1357_v10 = vld [vmem:[%s1720_s1 + $0x10] sm:$0xff] (!%p172_p2)  }
   0x8   : > { %v1350_v3 = vld [vmem:[%s1720_s1 + $0x80] sm:$0xff] (!%p172_p2)   ;;  %1220 = vmatpush3.bf16.msra.mxu0 (!%p172_p2), %v1349_v2  ;;  %v1354_v7 = vld [vmem:[%s1720_s1 + $0x88] sm:$0xff] (!%p172_p2)   ;;  %v1358_v11 = vld [vmem:[%s1720_s1 + $0x90] sm:$0xff] (!%p172_p2)  }
   0x9   : > { %1242 = vmatpush3.bf16.msra.mxu1 (!%p172_p2), %v1350_v3  ;;  %1221 = vmatprep.subr.bf16.mxu0 (!%p172_p2), %v1351_v4  ;;  %v1359_v12 = vld [vmem:[%s1720_s1 + $0x58] sm:$0xff] (!%p172_p2)   ;;  %v1363_v16 = vld [vmem:[%s1720_s1 + $0x60] sm:$0xff] (!%p172_p2)   ;;  %v1367_v20 = vld [vmem:[%s1720_s1 + $0x68] sm:$0xff] (!%p172_p2)  }
   0xa   : > { %1243 = vmatprep.subr.bf16.mxu1 (!%p172_p2), %v1352_v5  ;;  %v1360_v13 = vld [vmem:[%s1720_s1 + $0xd8] sm:$0xff] (!%p172_p2)   ;;  %v1364_v17 = vld [vmem:[%s1720_s1 + $0xe0] sm:$0xff] (!%p172_p2)   ;;  %v1368_v21 = vld [vmem:[%s1720_s1 + $0xe8] sm:$0xff] (!%p172_p2)  }
   0xb   : > { %v1361_v14 = vld [vmem:[%s1720_s1 + $0x18] sm:$0xff] (!%p172_p2)   ;;  %v1365_v18 = vld [vmem:[%s1720_s1 + $0x20] sm:$0xff] (!%p172_p2)   ;;  %v1369_v22 = vld [vmem:[%s1720_s1 + $0x28] sm:$0xff] (!%p172_p2)  }
   0xc   : > { %1222 = vmatpush3.bf16.msra.mxu0 (!%p172_p2), %v1353_v6  ;;  %v1362_v15 = vld [vmem:[%s1720_s1 + $0x98] sm:$0xff] (!%p172_p2)   ;;  %v1366_v19 = vld [vmem:[%s1720_s1 + $0xa0] sm:$0xff] (!%p172_p2)   ;;  %v1370_v23 = vld [vmem:[%s1720_s1 + $0xa8] sm:$0xff] (!%p172_p2)  }
   0xd   : > { %1244 = vmatpush3.bf16.msra.mxu1 %v1354_v7  ;;  %1223 = vmatprep.subr.bf16.mxu0 %v1355_v8  ;;  %s1725_s16 = smov (!%p200_p3, %s1128_s16), 2  ;;  %v1371_v24 = vld [vmem:[%s1720_s1 + $0x70] sm:$0xff]   ;;  %v1375_v28 = vld [vmem:[%s1720_s1 + $0x78] sm:$0xff]   ;;  %v1383_v37 = vld [vmem:[%s1720_s1 + $0x140] sm:$0xff]  }
   0xe   : > { %1245 = vmatprep.subr.bf16.mxu1 %v1356_v9  ;;  %v1372_v25 = vld [vmem:[%s1720_s1 + $0xf0] sm:$0xff]   ;;  %s1336_s21 = smul.u32 36, %s1725_s16  ;;  %v1376_v29 = vld [vmem:[%s1720_s1 + $0xf8] sm:$0xff]   ;;  %v1384_v39 = vld [vmem:[%s1720_s1 + $0x100] sm:$0xff]  }
   0xf   : > { %v1373_v26 = vld [vmem:[%s1720_s1 + $0x30] sm:$0xff]   ;;  %v1377_v30 = vld [vmem:[%s1720_s1 + $0x38] sm:$0xff]   ;;  %v1385_v40 = vld [vmem:[%s1720_s1 + $0x1c0] sm:$0xff]  }
  0x10   : > { %1224 = vmatpush3.bf16.msra.mxu0 %v1357_v10  ;;  %v1374_v27 = vld [vmem:[%s1720_s1 + $0xb0] sm:$0xff]   ;;  %s1573_s6 = scalar_lea.vmem %s1719_s0, %s1336_s21  ;;  %v1378_v31 = vld [vmem:[%s1720_s1 + $0xb8] sm:$0xff]   ;;  %v1386_v41 = vld [vmem:[%s1720_s1 + $0x180] sm:$0xff]   ;;  %v1438_v10 = vmov 0.0  }
  0x11   : > { %1246 = vmatpush3.bf16.msra.mxu1 %v1358_v11  ;;  %1225 = vmatprep.subr.bf16.mxu0 %v1359_v12  ;;  %v214_v32 = vld [vmem:[%s1573_s6] sm:$0xff]  ;;  %v215_v33 = vld [vmem:[%s1573_s6 + $0x8] sm:$0xff]  ;;  %v1391_v46 = vld [vmem:[%s1720_s1 + $0x150] sm:$0xff]  }
  0x12   : > { %1247 = vmatprep.subr.bf16.mxu1 %v1360_v13  ;;  %v1136_v34 = vcombine.low %v214_v32, %v214_v32  ;;  %v1137_v35 = vcombine.high %v214_v32, %v214_v32  ;;  %v1138_v36 = vcombine.low %v215_v33, %v215_v33  ;;  %v1139_v38 = vcombine.high %v215_v33, %v215_v33  ;;  %v1387_v42 = vld [vmem:[%s1720_s1 + $0x148] sm:$0xff]   ;;  %v1392_v47 = vld [vmem:[%s1720_s1 + $0x110] sm:$0xff]   ;;  %v1395_v50 = vld [vmem:[%s1720_s1 + $0x158] sm:$0xff]  }
  0x13   : > { %v1388_v43 = vld [vmem:[%s1720_s1 + $0x108] sm:$0xff]   ;;  %v1393_v48 = vld [vmem:[%s1720_s1 + $0x1d0] sm:$0xff]   ;;  %v1396_v51 = vld [vmem:[%s1720_s1 + $0x118] sm:$0xff]  }
  0x14   : > { %1226 = vmatpush3.bf16.msra.mxu0 %v1361_v14  ;;  %859 = vmatprep.mubr.bf16.mxu0 %v1137_v35  ;;  %v1389_v44 = vld [vmem:[%s1720_s1 + $0x1c8] sm:$0xff]   ;;  %v1394_v49 = vld [vmem:[%s1720_s1 + $0x190] sm:$0xff]   ;;  %v1397_v52 = vld [vmem:[%s1720_s1 + $0x1d8] sm:$0xff]  }
  0x15   : > { %1248 = vmatpush3.bf16.msra.mxu1 %v1362_v15  ;;  %1227 = vmatprep.subr.bf16.mxu0 %v1363_v16  ;;  %v1390_v45 = vld [vmem:[%s1720_s1 + $0x188] sm:$0xff]   ;;  %v1398_v53 = vld [vmem:[%s1720_s1 + $0x198] sm:$0xff]   ;;  %v1399_v54 = vld [vmem:[%s1720_s1 + $0x160] sm:$0xff]  }
  0x16   : > { %1249 = vmatprep.subr.bf16.mxu1 %v1364_v17  ;;  %899 = vmatprep.mubr.bf16.mxu1 %v1139_v38  ;;  %v1400_v55 = vld [vmem:[%s1720_s1 + $0x120] sm:$0xff]   ;;  %v1403_v58 = vld [vmem:[%s1720_s1 + $0x168] sm:$0xff]   ;;  %v1407_v62 = vld [vmem:[%s1720_s1 + $0x170] sm:$0xff]  }
  0x17   : > { %v1401_v56 = vld [vmem:[%s1720_s1 + $0x1e0] sm:$0xff]   ;;  %v1404_v59 = vld [vmem:[%s1720_s1 + $0x128] sm:$0xff]   ;;  %v1408_v63 = vld [vmem:[%s1720_s1 + $0x130] sm:$0xff]  }
  0x18   : > { %1228 = vmatpush3.bf16.msra.mxu0 %v1365_v18  ;;  %v1402_v57 = vld [vmem:[%s1720_s1 + $0x1a0] sm:$0xff]   ;;  %v1405_v60 = vld [vmem:[%s1720_s1 + $0x1e8] sm:$0xff]   ;;  %v1409_v0 = vld [vmem:[%s1720_s1 + $0x1f0] sm:$0xff]  }
  0x19   : > { %1250 = vmatpush3.bf16.msra.mxu1 %v1366_v19  ;;  %1229 = vmatprep.subr.bf16.mxu0 %v1367_v20  ;;  %v1406_v61 = vld [vmem:[%s1720_s1 + $0x1a8] sm:$0xff]   ;;  %v1410_v1 = vld [vmem:[%s1720_s1 + $0x1b0] sm:$0xff]   ;;  %v1411_v2 = vld [vmem:[%s1720_s1 + $0x178] sm:$0xff]  }
  0x1a   : > { %1251 = vmatprep.subr.bf16.mxu1 %v1368_v21  ;;  %v1412_v3 = vld [vmem:[%s1720_s1 + $0x138] sm:$0xff]   ;;  %v216_v5 = vld [vmem:[%s1573_s6 + $0x10] sm:$0xff]  ;;  %v1419_v13 = vld [vmem:[%s1720_s1 + $0x200] sm:$0xff]  }
  0x1b   : > { %v1413_v4 = vld [vmem:[%s1720_s1 + $0x1f8] sm:$0xff]   ;;  %v1140_v6 = vcombine.low %v216_v5, %v216_v5  ;;  %v1141_v7 = vcombine.high %v216_v5, %v216_v5  ;;  %v1420_v14 = vld [vmem:[%s1720_s1 + $0x208] sm:$0xff]   ;;  %v1421_v15 = vld [vmem:[%s1720_s1 + $0x210] sm:$0xff]  }
  0x1c   : > { %1230 = vmatpush3.bf16.msra.mxu0 %v1369_v22  ;;  %v1416_v8 = vld [vmem:[%s1720_s1 + $0x1b8] sm:$0xff]   ;;  %v1423_v17 = vld [vmem:[%s1720_s1 + $0x220] sm:$0xff]   ;;  %v1424_v18 = vld [vmem:[%s1720_s1 + $0x228] sm:$0xff]  }
  0x1d   : > { %1252 = vmatpush3.bf16.msra.mxu1 %v1370_v23  ;;  %1231 = vmatprep.subr.bf16.mxu0 %v1371_v24  ;;  %v217_v9 = vld [vmem:[%s1573_s6 + $0x18] sm:$0xff]  ;;  %v1425_v19 = vld [vmem:[%s1720_s1 + $0x230] sm:$0xff]   ;;  %v1427_v21 = vld [vmem:[%s1573_s6 + $0x20] ss:$0 sps:$4 sm:$0xff]   ;;  %s1134_s6 = sshll.u32 %s1725_s16, 2 }
  0x1e   : > { %1253 = vmatprep.subr.bf16.mxu1 %v1372_v25  ;;  %v1142_v11 = vcombine.low %v217_v9, %v217_v9  ;;  %v1143_v12 = vcombine.high %v217_v9, %v217_v9  ;;  %v1422_v16 = vld [vmem:[%s1720_s1 + $0x218] sm:$0xff]   ;;  %s208_s28 = scalar_lea.vmem %s1722_s3, %s1134_s6  ;;  %s212_s30 = scalar_lea.vmem %s1723_s4, %s1134_s6 }
  0x1f   : > { %v1426_v20 = vld [vmem:[%s1720_s1 + $0x238] sm:$0xff]  }
  0x20   : > { %1232 = vmatpush3.bf16.msra.mxu0 %v1373_v26 }
  0x21   : > { %1254 = vmatpush3.bf16.msra.mxu1 %v1374_v27  ;;  %1233 = vmatprep.subr.bf16.mxu0 %v1375_v28 }
  0x22   : > { %1255 = vmatprep.subr.bf16.mxu1 %v1376_v29 }
  0x24   : > { %1234 = vmatpush3.bf16.msra.mxu0 %v1377_v30 }
  0x25   : > { %1256 = vmatpush3.bf16.msra.mxu1 %v1378_v31  ;;  %1263 = vmatprep.subr.bf16.mxu0 %v1383_v37 }
  0x26   : > { %1285 = vmatprep.subr.bf16.mxu1 %v1385_v40 }
  0x27   : > { %860 = vmatmul.mubr.bf16.vlgmr.msra.gmra.mrb[0].mxu0 %v1136_v34 }
  0x28   : > { %900 = vmatmul.mubr.bf16.vlgmr.msra.gmra.mrb[0].mxu1 %v1138_v36  ;;  %1264 = vmatpush3.bf16.msra.mxu0 %v1384_v39 }
  0x29   : > { %1286 = vmatpush3.bf16.msra.mxu1 %v1386_v41  ;;  %1265 = vmatprep.subr.bf16.mxu0 %v1387_v42 }
  0x2a   : > { %1287 = vmatprep.subr.bf16.mxu1 %v1389_v44  ;;  %939 = vmatprep.mubr.bf16.mxu0 %v1141_v7 }
  0x2b   : > { %979 = vmatprep.mubr.bf16.mxu1 %v1143_v12 }
  0x2c   : > { %1266 = vmatpush3.bf16.msra.mxu0 %v1388_v43 }
  0x2d   : > { %1288 = vmatpush3.bf16.msra.mxu1 %v1390_v45  ;;  %1267 = vmatprep.subr.bf16.mxu0 %v1391_v46 }
  0x2e   : > { %1289 = vmatprep.subr.bf16.mxu1 %v1393_v48 }
  0x30   : > { %1268 = vmatpush3.bf16.msra.mxu0 %v1392_v47 }
  0x31   : > { %1290 = vmatpush3.bf16.msra.mxu1 %v1394_v49  ;;  %1269 = vmatprep.subr.bf16.mxu0 %v1395_v50 }
  0x32   : > { %1291 = vmatprep.subr.bf16.mxu1 %v1397_v52 }
  0x34   : > { %1270 = vmatpush3.bf16.msra.mxu0 %v1396_v51 }
  0x35   : > { %1292 = vmatpush3.bf16.msra.mxu1 %v1398_v53  ;;  %1271 = vmatprep.subr.bf16.mxu0 %v1399_v54 }
  0x36   : > { %1293 = vmatprep.subr.bf16.mxu1 %v1401_v56 }
  0x38   : > { %1272 = vmatpush3.bf16.msra.mxu0 %v1400_v55 }
  0x39   : > { %1294 = vmatpush3.bf16.msra.mxu1 %v1402_v57  ;;  %1273 = vmatprep.subr.bf16.mxu0 %v1403_v58 }
  0x3a   : > { %1295 = vmatprep.subr.bf16.mxu1 %v1405_v60 }
  0x3c   : > { %1274 = vmatpush3.bf16.msra.mxu0 %v1404_v59 }
  0x3d   : > { %1296 = vmatpush3.bf16.msra.mxu1 %v1406_v61  ;;  %1275 = vmatprep.subr.bf16.mxu0 %v1407_v62 }
  0x3e   : > { %1297 = vmatprep.subr.bf16.mxu1 %v1409_v0 }
  0x40   : > { %1276 = vmatpush3.bf16.msra.mxu0 %v1408_v63 }
  0x41   : > { %1298 = vmatpush3.bf16.msra.mxu1 %v1410_v1  ;;  %1277 = vmatprep.subr.bf16.mxu0 %v1411_v2  ;;  %v1047_v2 = vlaneseq }
  0x42   : > { %1299 = vmatprep.subr.bf16.mxu1 %v1413_v4 }
  0x43   : > { %v1048_v4 = vshrl.u32 %v1047_v2, 7 }
  0x44   : > { %1278 = vmatpush3.bf16.msra.mxu0 %v1412_v3 }
  0x45   : > { %1316 = vmatprep.subr.bf16.mxu0 %v1438_v10  ;;  %1300 = vmatpush3.bf16.msra.mxu1 %v1416_v8  ;;  %v1049_v5 = vsub.s32 0, %v1048_v4  ;;  %v1054_v7 = vsub.s32 1, %v1048_v4 }
  0x47   : > { %940 = vmatmul.mubr.bf16.vlgmr.msra.gmra.mrb[4].mxu0 %v1140_v6  ;;  %v1027_v6 = vld [vmem:[%s1721_s2] sm:$0x3] }
  0x48   : > { %1317 = vmatpush3.bf16.msra.mxu0 %v1419_v13  ;;  %1332 = vmatprep.mubr.msk.bf16.mxu0 %vm1439_vm0, %v1438_v10  ;;  %v1050_v8 = vrot.slane %v1027_v6, %v1049_v5  ;;  %v1055_v12 = vrot.slane %v1027_v6, %v1054_v7 }
  0x49   : > { %980 = vmatmul.mubr.bf16.vlgmr.msra.gmra.mrb[4].mxu1 %v1142_v11  ;;  %1318 = vmatprep.subr.bf16.mxu0 %v1438_v10 }
  0x4c   : > { %1319 = vmatpush3.bf16.msra.mxu0 %v1420_v14 }
  0x4d   : > { %1320 = vmatprep.subr.bf16.mxu0 %v1438_v10 }
  0x50   : > { %1321 = vmatpush3.bf16.msra.mxu0 %v1421_v15 }
  0x51   : > { %1322 = vmatprep.subr.bf16.mxu0 %v1438_v10 }
  0x54   : > { %1323 = vmatpush3.bf16.msra.mxu0 %v1422_v16 }
  0x55   : > { %1324 = vmatprep.subr.bf16.mxu0 %v1438_v10 }
  0x58   : > { %1325 = vmatpush3.bf16.msra.mxu0 %v1423_v17 }
  0x59   : > { %1326 = vmatprep.subr.bf16.mxu0 %v1438_v10 }
  0x5c   : > { %1327 = vmatpush3.bf16.msra.mxu0 %v1424_v18 }
  0x5d   : > { %1328 = vmatprep.subr.bf16.mxu0 %v1438_v10 }
  0x60   : > { %1329 = vmatpush3.bf16.msra.mxu0 %v1425_v19 }
  0x61   : > { %1330 = vmatprep.subr.bf16.mxu0 %v1438_v10  ;;  %v1057_v10 = vld [vmem:[%s208_s28] sm:$0xf] }
  0x62   : > { %v1058_v13 = vunpack.c.l.bf16 %v1057_v10 }
  0x64   : > { %1331 = vmatpush3.bf16.msra.mxu0 %v1426_v20 }
  0x67   : > { %1333 = vmatmul.mubr.bf16.vlgmr.msra.gmra.mrb[8].mxu0 %v1427_v21 }
  0xfa   : > { %v1235_v22 = vpop.f32.mrb[0].mxu0 }
  0xfb   : > { %v1257_v23 = vpop.f32.mrb[0].mxu1  ;;  %v1236_v24 = vpop.f32.mrb[1].mxu0 }
  0xfc   : > { %v1237_v25 = vadd.f32 %v1236_v24, %v1235_v22  ;;  %v1258_v26 = vpop.f32.mrb[1].mxu1  ;;  %v1238_v27 = vpop.f32.mrb[2].mxu0 }
  0xfd   : > { %v1259_v28 = vadd.f32 %v1258_v26, %v1257_v23  ;;  %v1239_v29 = vpop.f32.mrb[3].mxu0  ;;  %v1260_v30 = vpop.f32.mrb[2].mxu1 }
  0xfe   : > { %v1261_v31 = vpop.f32.mrb[3].mxu1 }
  0xff   : > { %v902_v32 = vadd.f32 %v1259_v28, %v1237_v25 }
 0x11a   : > { %v1279_v33 = vpop.f32.mrb[4].mxu0 }
 0x11b   : > { %v1280_v34 = vpop.f32.mrb[5].mxu0 }
 0x11c   : > { %v1281_v35 = vadd.f32 %v1280_v34, %v1279_v33  ;;  %v1282_v36 = vpop.f32.mrb[6].mxu0  ;;  %v1301_v37 = vpop.f32.mrb[4].mxu1 }
 0x11d   : > { %v1283_v38 = vpop.f32.mrb[7].mxu0  ;;  %v1302_v39 = vpop.f32.mrb[5].mxu1 }
 0x11e   : > { %v942_v40 = vadd.f32 %v1281_v35, %v902_v32  ;;  %v1303_v41 = vadd.f32 %v1302_v39, %v1301_v37  ;;  %v1304_v42 = vpop.f32.mrb[6].mxu1 }
 0x11f   : > { %v1305_v43 = vpop.f32.mrb[7].mxu1 }
 0x120   : > { %v982_v44 = vadd.f32 %v1303_v41, %v942_v40 }
 0x13a   : > { %v1021_v45 = vpop.f32.mrb[8].mxu0 }
 0x13b   : > { %v1022_v46 = vadd.f32 %v1021_v45, %v982_v44  ;;  %v1334_v47 = vpop.f32.mrb[9].mxu0 }
 0x13c   : > { %v1024_v48 = vpop.f32.mrb[10].mxu0 }
 0x13d   : > { %v1028_v49 = vrot.slane %v1022_v46, 4  ;;  %v1335_v50 = vpop.f32.mrb[11].mxu0 }
 0x13f   : > { %v1029_v51 = vadd.f32 %v1028_v49, %v1022_v46 }
 0x141   : > { %v1030_v52 = vrot.slane %v1029_v51, 2 }
 0x143   : > { %v1031_v53 = vadd.f32 %v1030_v52, %v1029_v51 }
 0x145   : > { %v1032_v54 = vrot.slane %v1031_v53, 1 }
 0x147   : > { %v1033_v55 = vadd.f32 %v1032_v54, %v1031_v53 }
 0x149   : > { %v1034_v56 = vmul.f32 0.125, %v1033_v55 }
 0x14b   : > { %v1035_v57 = vsub.f32 %v1022_v46, %v1034_v56 }
 0x14d   : > { %v1036_v58 = vmul.f32 %v1035_v57, %v1035_v57 }
 0x14f   : > { %v1037_v59 = vrot.slane %v1036_v58, 4 }
 0x151   : > { %v1038_v60 = vadd.f32 %v1037_v59, %v1036_v58 }
 0x153   : > { %v1039_v61 = vrot.slane %v1038_v60, 2 }
 0x155   : > { %v1040_v62 = vadd.f32 %v1039_v61, %v1038_v60 }
 0x157   : > { %v1041_v63 = vrot.slane %v1040_v62, 1 }
 0x159   : > { %v1042_v0 = vadd.f32 %v1041_v63, %v1040_v62 }
 0x15b   : > { %v1043_v1 = vmul.f32 0.125, %v1042_v0 }
 0x15d   : > { %v1044_v3 = vadd.f32 1e-05, %v1043_v1 }
 0x15f   : > { %1428 = vrsqrt.f32 %v1044_v3 }
 0x169   : > { %v1429_v9 = vpop.eup %1428 }
 0x16a   : > { %v1046_v11 = vmul.f32 %v1429_v9, %v1035_v57 }
 0x16c   : > { %v1051_v14 = vmul.f32 %v1050_v8, %v1046_v11 }
 0x16e   : > { %v1056_v15 = vadd.f32 %v1055_v12, %v1051_v14 }
 0x170   : > { %v1059_v16 = vadd.f32 %v1058_v13, %v1056_v15 }
 0x172   : > { %v1060_v17 = vmax.f32 %v1059_v16, 0.0 }
 0x174   : > { %v1061_v18 = vpack.c.bf16 %v1060_v17, %v1060_v17 }
 0x176   : > { %1062 = vst [vmem:[%s212_s30] sm:$0xf] %v1061_v18 }
 0x177 PF: > { %s14_s15 = sadd.s32 1, %s1436_s15  }
 0x178   : > { %p11_p4 = scmp.ge.s32.totalorder %s14_s15, 5  }
 0x17a   :  { %13 = sbr.rel (!%p11_p4) target bundleno = 1 (0x1), region = 69 }

// kernel: simsiam_forward.19
= control target key start
LH: loop header
LB: loop body
LE: loop exit
PB: predicated region body
PF: predicated region fallthrough
CT: control target
= control target key end

     0   :  { %v2524_v0 = vmov 0.0   ;;  %vm2525_vm0 = vmmov 0   ;;  %vm148_vm1 = vcmask 1041408   ;;  %v170_v41 = vlaneseq  ;;  %s3176_s1 = inlined_call_operand.vmem [shape: bf16[128,128], index: 1, kind: input, shape index: {}]   ;;  %s3177_s0 = inlined_call_operand.vmem [shape: f32[3,2,128], index: 0, kind: input, shape index: {}]   ;;  %s3178_s2 = inlined_call_operand.vmem [shape: bf16[128,128], index: 2, kind: input, shape index: {}]   ;;  %s3179_s6 = inlined_call_operand.vmem [shape: f32[4,128], index: 6, kind: input, shape index: {}]   ;;  %s3180_s3 = inlined_call_operand.vmem [shape: bf16[128,128], index: 3, kind: input, shape index: {}]   ;;  %s3181_s4 = inlined_call_operand.vmem [shape: bf16[128,64], index: 4, kind: input, shape index: {}]   ;;  %s3182_s7 = inlined_call_operand.vmem [shape: f32[1,128], index: 7, kind: input, shape index: {}]   ;;  %s3183_s10 = inlined_call_operand.vmem [shape: f32[3,2,128], index: 10, kind: output, shape index: {0}]   ;;  %s3184_s5 = inlined_call_operand.vmem [shape: bf16[64,128], index: 5, kind: input, shape index: {}]   ;;  %s3185_s8 = inlined_call_operand.vmem [shape: f32[2,64], index: 8, kind: input, shape index: {}]   ;;  %s3186_s9 = inlined_call_operand.vmem [shape: f32[1,128], index: 9, kind: input, shape index: {}]   ;;  %s3187_s11 = inlined_call_operand.vmem [shape: f32[3,2,128], index: 11, kind: output, shape index: {1}]  }
   0x1   :  { %2113 = vmatprep.subr.bf16.mxu0 %v2524_v0  ;;  %v2391_v1 = vld [vmem:[%s3176_s1] sm:$0xff]   ;;  %2129 = vmatprep.mubr.msk.bf16.mxu0 %vm2525_vm0, %v2524_v0  ;;  %v2392_v2 = vld [vmem:[%s3176_s1 + $0x8] sm:$0xff]   ;;  %v2393_v3 = vld [vmem:[%s3176_s1 + $0x10] sm:$0xff]   ;;  %vm556_vm2 = vcmask 517120   ;;  %vm628_vm3 = vcmask 523264  }
   0x2   :  { %2133 = vmatprep.subr.bf16.mxu1 %v2524_v0  ;;  %2149 = vmatprep.mubr.msk.bf16.mxu1 %vm2525_vm0, %v2524_v0  ;;  %v2394_v4 = vld [vmem:[%s3176_s1 + $0x18] sm:$0xff]   ;;  %v2395_v5 = vld [vmem:[%s3176_s1 + $0x20] sm:$0xff]   ;;  %v2396_v6 = vld [vmem:[%s3176_s1 + $0x28] sm:$0xff]   ;;  %v2663_v43 = vshrl.u32 %v170_v41, 7 }
   0x3   :  { %2114 = vmatpush3.bf16.msra.mxu0 %v2391_v1  ;;  %v2397_v7 = vld [vmem:[%s3176_s1 + $0x30] sm:$0xff]   ;;  %v2398_v8 = vld [vmem:[%s3176_s1 + $0x38] sm:$0xff]   ;;  %v42_v9 = vld [vmem:[%s3177_s0] sm:$0x3] }
   0x4   :  { %2115 = vmatprep.subr.bf16.mxu0 %v2524_v0  ;;  %v59_v10 = vpack.c.bf16 %v42_v9, %v42_v9  ;;  %v2399_v11 = vld [vmem:[%s3178_s2] sm:$0xff]   ;;  %v2400_v12 = vld [vmem:[%s3178_s2 + $0x8] sm:$0xff]   ;;  %v2401_v13 = vld [vmem:[%s3178_s2 + $0x10] sm:$0xff]   ;;  %v172_v44 = vsub.s32 0, %v2663_v43  ;;  %v177_v46 = vsub.s32 1, %v2663_v43 }
   0x5   :  { %2134 = vmatpush3.bf16.msra.mxu1 %v2399_v11  ;;  %v2402_v14 = vld [vmem:[%s3178_s2 + $0x18] sm:$0xff]   ;;  %v2403_v15 = vld [vmem:[%s3178_s2 + $0x20] sm:$0xff]   ;;  %v2404_v16 = vld [vmem:[%s3178_s2 + $0x28] sm:$0xff]  }
   0x6   :  { %2135 = vmatprep.subr.bf16.mxu1 %v2524_v0  ;;  %v2405_v17 = vld [vmem:[%s3178_s2 + $0x30] sm:$0xff]   ;;  %v2406_v18 = vld [vmem:[%s3178_s2 + $0x38] sm:$0xff]   ;;  %v2669_v45 = vld [vmem:[%s3179_s6] sm:$0xf] }
   0x7   :  { %2116 = vmatpush3.bf16.msra.mxu0 %v2392_v2  ;;  %v2675_v47 = vrot.slane %v2669_v45, %v172_v44  ;;  %v2680_v50 = vrot.slane %v2669_v45, %v177_v46  ;;  %v2407_v55 = vld [vmem:[%s3180_s3] sm:$0xff]   ;;  %v2408_v56 = vld [vmem:[%s3180_s3 + $0x8] sm:$0xff]   ;;  %v2409_v57 = vld [vmem:[%s3180_s3 + $0x10] sm:$0xff]  }
   0x8   :  { %2117 = vmatprep.subr.bf16.mxu0 %v2524_v0  ;;  %v2410_v58 = vld [vmem:[%s3180_s3 + $0x18] sm:$0xff]   ;;  %v2411_v59 = vld [vmem:[%s3180_s3 + $0x20] sm:$0xff]   ;;  %v2412_v60 = vld [vmem:[%s3180_s3 + $0x28] sm:$0xff]  }
   0x9   :  { %2136 = vmatpush3.bf16.msra.mxu1 %v2400_v12  ;;  %v2413_v61 = vld [vmem:[%s3180_s3 + $0x30] sm:$0xff]   ;;  %v2414_v62 = vld [vmem:[%s3180_s3 + $0x38] sm:$0xff]   ;;  %v2767_v41 = vld [vmem:[%s3182_s7] ss:$0 sm:$0xff] }
   0xa   :  { %2137 = vmatprep.subr.bf16.mxu1 %v2524_v0 }
   0xb   :  { %2118 = vmatpush3.bf16.msra.mxu0 %v2393_v3 }
   0xc   :  { %2119 = vmatprep.subr.bf16.mxu0 %v2524_v0 }
   0xd   :  { %2138 = vmatpush3.bf16.msra.mxu1 %v2401_v13 }
   0xe   :  { %2139 = vmatprep.subr.bf16.mxu1 %v2524_v0 }
   0xf   :  { %2120 = vmatpush3.bf16.msra.mxu0 %v2394_v4 }
  0x10   :  { %2121 = vmatprep.subr.bf16.mxu0 %v2524_v0 }
  0x11   :  { %2140 = vmatpush3.bf16.msra.mxu1 %v2402_v14 }
  0x12   :  { %2141 = vmatprep.subr.bf16.mxu1 %v2524_v0 }
  0x13   :  { %2122 = vmatpush3.bf16.msra.mxu0 %v2395_v5 }
  0x14   :  { %2123 = vmatprep.subr.bf16.mxu0 %v2524_v0 }
  0x15   :  { %2142 = vmatpush3.bf16.msra.mxu1 %v2403_v15 }
  0x16   :  { %2143 = vmatprep.subr.bf16.mxu1 %v2524_v0 }
  0x17   :  { %2124 = vmatpush3.bf16.msra.mxu0 %v2396_v6 }
  0x18   :  { %2125 = vmatprep.subr.bf16.mxu0 %v2524_v0 }
  0x19   :  { %2144 = vmatpush3.bf16.msra.mxu1 %v2404_v16 }
  0x1a   :  { %2145 = vmatprep.subr.bf16.mxu1 %v2524_v0 }
  0x1b   :  { %2126 = vmatpush3.bf16.msra.mxu0 %v2397_v7 }
  0x1c   :  { %2127 = vmatprep.subr.bf16.mxu0 %v2524_v0 }
  0x1d   :  { %2146 = vmatpush3.bf16.msra.mxu1 %v2405_v17 }
  0x1e   :  { %2147 = vmatprep.subr.bf16.mxu1 %v2524_v0 }
  0x1f   :  { %2128 = vmatpush3.bf16.msra.mxu0 %v2398_v8 }
  0x20   :  { %2153 = vmatprep.subr.bf16.mxu0 %v2524_v0 }
  0x21   :  { %2148 = vmatpush3.bf16.msra.mxu1 %v2406_v18 }
  0x22   :  { %2130 = vmatmul.mubr.bf16.vlgmr.msra.gmra.mrb[0].mxu0 %v59_v10  ;;  %2173 = vmatprep.subr.bf16.mxu1 %v2524_v0 }
  0x23   :  { %2169 = vmatprep.mubr.msk.bf16.mxu0 %vm2525_vm0, %v2524_v0  ;;  %2154 = vmatpush3.bf16.msra.mxu0 %v2407_v55 }
  0x24   :  { %2155 = vmatprep.subr.bf16.mxu0 %v2524_v0 }
  0x27   :  { %2156 = vmatpush3.bf16.msra.mxu0 %v2408_v56 }
  0x28   :  { %2157 = vmatprep.subr.bf16.mxu0 %v2524_v0 }
  0x2b   :  { %2158 = vmatpush3.bf16.msra.mxu0 %v2409_v57 }
  0x2c   :  { %2159 = vmatprep.subr.bf16.mxu0 %v2524_v0 }
  0x2f   :  { %2160 = vmatpush3.bf16.msra.mxu0 %v2410_v58 }
  0x30   :  { %2161 = vmatprep.subr.bf16.mxu0 %v2524_v0 }
  0x33   :  { %2162 = vmatpush3.bf16.msra.mxu0 %v2411_v59 }
  0x34   :  { %2163 = vmatprep.subr.bf16.mxu0 %v2524_v0 }
  0x37   :  { %2164 = vmatpush3.bf16.msra.mxu0 %v2412_v60 }
  0x38   :  { %2165 = vmatprep.subr.bf16.mxu0 %v2524_v0 }
  0x3b   :  { %2166 = vmatpush3.bf16.msra.mxu0 %v2413_v61 }
  0x3c   :  { %2167 = vmatprep.subr.bf16.mxu0 %v2524_v0 }
  0x3f   :  { %2168 = vmatpush3.bf16.msra.mxu0 %v2414_v62 }
  0x40   :  { %2193 = vmatprep.subr.bf16.mxu0 %v2524_v0 }
  0xf5   :  { %v142_v19 = vpop.f32.mrb[0].mxu0 }
  0xf6   :  { %v149_v20 = vsel %vm148_vm1, %v142_v19, 0.0  ;;  %v2131_v21 = vpop.f32.mrb[1].mxu0 }
  0xf7   :  { %v150_v22 = vrot.slane %v149_v20, 4  ;;  %v145_v23 = vpop.f32.mrb[2].mxu0 }
  0xf8   :  { %v2132_v24 = vpop.f32.mrb[3].mxu0  ;;  %v309_v23 = vsub.s32 2, %v2663_v43 }
  0xf9   :  { %v151_v25 = vadd.f32 %v150_v22, %v149_v20  ;;  %v314_v24 = vsub.s32 3, %v2663_v43 }
  0xfb   :  { %v152_v26 = vrot.slane %v151_v25, 2 }
  0xfd   :  { %v153_v27 = vadd.f32 %v152_v26, %v151_v25  ;;  %v2723_v25 = vrot.slane %v2669_v45, %v309_v23  ;;  %v2433_v23 = vld [vmem:[%s3184_s5 + $0x10] sm:$0xff]  }
  0xff   :  { %v154_v28 = vrot.slane %v153_v27, 1 }
 0x101   :  { %v155_v29 = vadd.f32 %v154_v28, %v153_v27  ;;  %v2726_v28 = vrot.slane %v2669_v45, %v314_v24  ;;  %v2434_v24 = vld [vmem:[%s3184_s5 + $0x18] sm:$0xff]  }
 0x103   :  { %v156_v30 = vmul.f32 0.5, %v155_v29 }
 0x105   :  { %v157_v31 = vsub.f32 %v142_v19, %v156_v30 }
 0x107   :  { %v158_v32 = vmul.f32 %v157_v31, %v157_v31 }
 0x109   :  { %v159_v33 = vsel %vm148_vm1, %v158_v32, 0.0 }
 0x10a   :  { %v160_v34 = vrot.slane %v159_v33, 4 }
 0x10c   :  { %v161_v35 = vadd.f32 %v160_v34, %v159_v33  ;;  %v2415_v33 = vld [vmem:[%s3181_s4] sm:$0xff]   ;;  %v2416_v34 = vld [vmem:[%s3181_s4 + $0x8] sm:$0xff]  }
 0x10e   :  { %v162_v36 = vrot.slane %v161_v35, 2 }
 0x110   :  { %v163_v37 = vadd.f32 %v162_v36, %v161_v35  ;;  %v2417_v35 = vld [vmem:[%s3181_s4 + $0x10] sm:$0xff]   ;;  %v2418_v36 = vld [vmem:[%s3181_s4 + $0x18] sm:$0xff]  }
 0x112   :  { %v164_v38 = vrot.slane %v163_v37, 1 }
 0x114   :  { %v165_v39 = vadd.f32 %v164_v38, %v163_v37  ;;  %v2419_v37 = vld [vmem:[%s3181_s4 + $0x20] sm:$0xff]   ;;  %v2420_v38 = vld [vmem:[%s3181_s4 + $0x28] sm:$0xff]  }
 0x116   :  { %v166_v40 = vmul.f32 0.5, %v165_v39  ;;  %v2421_v39 = vld [vmem:[%s3181_s4 + $0x30] sm:$0xff]  }
 0x118   :  { %v167_v42 = vadd.f32 1e-05, %v166_v40  ;;  %v2422_v40 = vld [vmem:[%s3181_s4 + $0x38] sm:$0xff]  }
 0x11a   :  { %2499 = vrsqrt.f32 %v167_v42 }
 0x124   :  { %v2500_v48 = vpop.eup %2499 }
 0x125   :  { %v169_v49 = vmul.f32 %v2500_v48, %v157_v31 }
 0x127   :  { %v174_v51 = vmul.f32 %v2675_v47, %v169_v49 }
 0x129   :  { %v179_v52 = vadd.f32 %v2680_v50, %v174_v51 }
 0x12b   :  { %v180_v53 = vmax.f32 %v179_v52, 0.0 }
 0x12d   :  { %v197_v54 = vpack.c.bf16 %v180_v53, %v180_v53 }
 0x12f   :  { %2150 = vmatmul.mubr.bf16.vlgmr.msra.gmra.mrb[0].mxu1 %v197_v54 }
 0x130   :  { %2189 = vmatprep.mubr.msk.bf16.mxu1 %vm2525_vm0, %v2524_v0  ;;  %2174 = vmatpush3.bf16.msra.mxu1 %v2415_v33 }
 0x131   :  { %2175 = vmatprep.subr.bf16.mxu1 %v2524_v0 }
 0x134   :  { %2176 = vmatpush3.bf16.msra.mxu1 %v2416_v34 }
 0x135   :  { %2177 = vmatprep.subr.bf16.mxu1 %v2524_v0 }
 0x138   :  { %2178 = vmatpush3.bf16.msra.mxu1 %v2417_v35 }
 0x139   :  { %2179 = vmatprep.subr.bf16.mxu1 %v2524_v0 }
 0x13c   :  { %2180 = vmatpush3.bf16.msra.mxu1 %v2418_v36 }
 0x13d   :  { %2181 = vmatprep.subr.bf16.mxu1 %v2524_v0 }
 0x140   :  { %2182 = vmatpush3.bf16.msra.mxu1 %v2419_v37 }
 0x141   :  { %2183 = vmatprep.subr.bf16.mxu1 %v2524_v0 }
 0x144   :  { %2184 = vmatpush3.bf16.msra.mxu1 %v2420_v38 }
 0x145   :  { %2185 = vmatprep.subr.bf16.mxu1 %v2524_v0 }
 0x148   :  { %2186 = vmatpush3.bf16.msra.mxu1 %v2421_v39 }
 0x149   :  { %2187 = vmatprep.subr.bf16.mxu1 %v2524_v0 }
 0x14c   :  { %2188 = vmatpush3.bf16.msra.mxu1 %v2422_v40 }
 0x14d   :  { %2205 = vmatprep.subr.bf16.mxu1 %v2524_v0 }
 0x202   :  { %v280_v63 = vpop.f32.mrb[0].mxu1 }
 0x203   :  { %v286_v1 = vsel %vm148_vm1, %v280_v63, 0.0  ;;  %v2151_v2 = vpop.f32.mrb[1].mxu1 }
 0x204   :  { %v287_v3 = vrot.slane %v286_v1, 4  ;;  %v283_v4 = vpop.f32.mrb[2].mxu1 }
 0x205   :  { %v2152_v5 = vpop.f32.mrb[3].mxu1 }
 0x206   :  { %v288_v6 = vadd.f32 %v287_v3, %v286_v1 }
 0x208   :  { %v289_v7 = vrot.slane %v288_v6, 2 }
 0x20a   :  { %v290_v8 = vadd.f32 %v289_v7, %v288_v6 }
 0x20c   :  { %v291_v9 = vrot.slane %v290_v8, 1 }
 0x20e   :  { %v292_v10 = vadd.f32 %v291_v9, %v290_v8 }
 0x210   :  { %v293_v11 = vmul.f32 0.5, %v292_v10  ;;  %v2423_v10 = vld [vmem:[%s3176_s1] sm:$0xff]  }
 0x212   :  { %v294_v12 = vsub.f32 %v280_v63, %v293_v11 }
 0x214   :  { %v295_v13 = vmul.f32 %v294_v12, %v294_v12 }
 0x216   :  { %v296_v14 = vsel %vm148_vm1, %v295_v13, 0.0  ;;  %v2425_v13 = vld [vmem:[%s3176_s1 + $0x10] sm:$0xff]  }
 0x217   :  { %v297_v15 = vrot.slane %v296_v14, 4 }
 0x219   :  { %v298_v16 = vadd.f32 %v297_v15, %v296_v14  ;;  %v2426_v14 = vld [vmem:[%s3176_s1 + $0x18] sm:$0xff]   ;;  %v2427_v15 = vld [vmem:[%s3176_s1 + $0x20] sm:$0xff]  }
 0x21b   :  { %v299_v17 = vrot.slane %v298_v16, 2 }
 0x21d   :  { %v300_v18 = vadd.f32 %v299_v17, %v298_v16  ;;  %v2428_v16 = vld [vmem:[%s3176_s1 + $0x28] sm:$0xff]   ;;  %v2429_v17 = vld [vmem:[%s3176_s1 + $0x30] sm:$0xff]  }
 0x21f   :  { %v301_v19 = vrot.slane %v300_v18, 1 }
 0x221   :  { %v302_v20 = vadd.f32 %v301_v19, %v300_v18  ;;  %v2430_v18 = vld [vmem:[%s3176_s1 + $0x38] sm:$0xff]   ;;  %v1910_v19 = vld [vmem:[%s3177_s0 + $0x2] sm:$0x3] }
 0x223   :  { %v303_v21 = vmul.f32 0.5, %v302_v20  ;;  %v691_v20 = vpack.c.bf16 %v1910_v19, %v1910_v19  ;;  %v2436_v19 = vld [vmem:[%s3178_s2 + $0x8] sm:$0xff]  }
 0x225   :  { %v304_v22 = vadd.f32 1e-05, %v303_v21  ;;  %v2431_v21 = vld [vmem:[%s3184_s5] sm:$0xff]  }
 0x227   :  { %2501 = vrsqrt.f32 %v304_v22  ;;  %v2432_v22 = vld [vmem:[%s3184_s5 + $0x8] sm:$0xff]  }
 0x231   :  { %v2502_v26 = vpop.eup %2501 }
 0x232   :  { %v306_v27 = vmul.f32 %v2502_v26, %v294_v12  ;;  %v2424_v12 = vld [vmem:[%s3176_s1 + $0x8] sm:$0xff]  }
 0x234   :  { %v311_v29 = vmul.f32 %v2723_v25, %v306_v27 }
 0x236   :  { %v316_v30 = vadd.f32 %v2726_v28, %v311_v29 }
 0x238   :  { %v317_v31 = vmax.f32 %v316_v30, 0.0 }
 0x23a   :  { %v334_v32 = vpack.c.bf16 %v317_v31, %v317_v31 }
 0x23c   :  { %2170 = vmatmul.mubr.bf16.vlgmr.msra.gmra.mrb[4].mxu0 %v334_v32 }
 0x23d   :  { %2201 = vmatprep.mubr.msk.bf16.mxu0 %vm2525_vm0, %v2524_v0  ;;  %2194 = vmatpush3.bf16.msra.mxu0 %v2431_v21 }
 0x23e   :  { %2195 = vmatprep.subr.bf16.mxu0 %v2524_v0 }
 0x241   :  { %2196 = vmatpush3.bf16.msra.mxu0 %v2432_v22  ;;  %v2437_v22 = vld [vmem:[%s3178_s2 + $0x10] sm:$0xff]  }
 0x242   :  { %2197 = vmatprep.subr.bf16.mxu0 %v2524_v0 }
 0x245   :  { %2198 = vmatpush3.bf16.msra.mxu0 %v2433_v23 }
 0x246   :  { %2199 = vmatprep.subr.bf16.mxu0 %v2524_v0 }
 0x249   :  { %2200 = vmatpush3.bf16.msra.mxu0 %v2434_v24 }
 0x24a   :  { %2225 = vmatprep.subr.bf16.mxu0 %v2524_v0 }
 0x30f   :  { %v423_v42 = vpop.f32.mrb[4].mxu0 }
 0x310   :  { %v424_v45 = vadd.f32 %v2767_v41, %v423_v42  ;;  %v2171_v48 = vpop.f32.mrb[5].mxu0 }
 0x311   :  { %v426_v49 = vpop.f32.mrb[6].mxu0 }
 0x312   :  { %v429_v51 = vsel %vm148_vm1, %v424_v45, 0.0  ;;  %v2172_v52 = vpop.f32.mrb[7].mxu0 }
 0x313   :  { %v430_v53 = vrot.slane %v429_v51, 4 }
 0x315   :  { %v431_v54 = vadd.f32 %v430_v53, %v429_v51 }
 0x317   :  { %v432_v55 = vrot.slane %v431_v54, 2 }
 0x319   :  { %v433_v56 = vadd.f32 %v432_v55, %v431_v54 }
 0x31b   :  { %v434_v57 = vrot.slane %v433_v56, 1 }
 0x31d   :  { %v435_v58 = vadd.f32 %v434_v57, %v433_v56 }
 0x31f   :  { %v436_v59 = vmul.f32 0.5, %v435_v58 }
 0x321   :  { %v437_v60 = vsub.f32 %v424_v45, %v436_v59 }
 0x323   :  { %v438_v61 = vmul.f32 %v437_v60, %v437_v60 }
 0x325   :  { %v439_v62 = vsel %vm148_vm1, %v438_v61, 0.0 }
 0x326   :  { %v440_v63 = vrot.slane %v439_v62, 4 }
 0x328   :  { %v441_v1 = vadd.f32 %v440_v63, %v439_v62 }
 0x32a   :  { %v442_v2 = vrot.slane %v441_v1, 2 }
 0x32c   :  { %v443_v3 = vadd.f32 %v442_v2, %v441_v1 }
 0x32e   :  { %v444_v4 = vrot.slane %v443_v3, 1 }
 0x330   :  { %v445_v5 = vadd.f32 %v444_v4, %v443_v3  ;;  %v39_v3 = vld [vmem:[%s3185_s8] sm:$0x3] }
 0x332   :  { %v446_v6 = vmul.f32 0.5, %v445_v5  ;;  %v2838_v5 = vrot.slane %v39_v3, %v172_v44  ;;  %v2435_v44 = vld [vmem:[%s3178_s2] sm:$0xff]  }
 0x334   :  { %v447_v7 = vadd.f32 1e-05, %v446_v6 }
 0x336   :  { %2503 = vrsqrt.f32 %v447_v7 }
 0x340   :  { %v2504_v8 = vpop.eup %2503 }
 0x341   :  { %v449_v9 = vmul.f32 %v2504_v8, %v437_v60 }
 0x343   :  { %450 = vst [vmem:[%s3183_s10] sm:$0x3] %v449_v9  ;;  %v467_v11 = vpack.c.bf16 %v449_v9, %v449_v9  ;;  %v2842_v9 = vrot.slane %v39_v3, %v177_v46 }
 0x345   :  { %2190 = vmatmul.mubr.bf16.vlgmr.msra.gmra.mrb[4].mxu1 %v467_v11 }
 0x346   :  { %2206 = vmatpush3.bf16.msra.mxu1 %v2423_v10  ;;  %2221 = vmatprep.mubr.msk.bf16.mxu1 %vm2525_vm0, %v2524_v0 }
 0x347   :  { %2207 = vmatprep.subr.bf16.mxu1 %v2524_v0 }
 0x34a   :  { %2208 = vmatpush3.bf16.msra.mxu1 %v2424_v12 }
 0x34b   :  { %2209 = vmatprep.subr.bf16.mxu1 %v2524_v0 }
 0x34e   :  { %2210 = vmatpush3.bf16.msra.mxu1 %v2425_v13 }
 0x34f   :  { %2211 = vmatprep.subr.bf16.mxu1 %v2524_v0 }
 0x352   :  { %2212 = vmatpush3.bf16.msra.mxu1 %v2426_v14 }
 0x353   :  { %2213 = vmatprep.subr.bf16.mxu1 %v2524_v0 }
 0x356   :  { %2214 = vmatpush3.bf16.msra.mxu1 %v2427_v15 }
 0x357   :  { %2215 = vmatprep.subr.bf16.mxu1 %v2524_v0 }
 0x35a   :  { %2216 = vmatpush3.bf16.msra.mxu1 %v2428_v16 }
 0x35b   :  { %2217 = vmatprep.subr.bf16.mxu1 %v2524_v0 }
 0x35e   :  { %2218 = vmatpush3.bf16.msra.mxu1 %v2429_v17 }
 0x35f   :  { %2219 = vmatprep.subr.bf16.mxu1 %v2524_v0 }
 0x362   :  { %2220 = vmatpush3.bf16.msra.mxu1 %v2430_v18 }
 0x363   :  { %2245 = vmatprep.subr.bf16.mxu1 %v2524_v0 }
 0x365   :  { %2222 = vmatmul.mubr.bf16.vlgmr.msra.gmra.mrb[8].mxu1 %v691_v20 }
 0x366   :  { %2261 = vmatprep.mubr.msk.bf16.mxu1 %vm2525_vm0, %v2524_v0 }
 0x418   :  { %v550_v26 = vpop.f32.mrb[4].mxu1 }
 0x419   :  { %v557_v27 = vsel %vm556_vm2, %v550_v26, 0.0  ;;  %v2191_v29 = vpop.f32.mrb[5].mxu1 }
 0x41a   :  { %v558_v30 = vrot.slane %v557_v27, 4  ;;  %v553_v31 = vpop.f32.mrb[6].mxu1  ;;  %v2440_v29 = vld [vmem:[%s3178_s2 + $0x28] sm:$0xff]  }
 0x41b   :  { %v2192_v32 = vpop.f32.mrb[7].mxu1  ;;  %v2441_v31 = vld [vmem:[%s3178_s2 + $0x30] sm:$0xff]  }
 0x41c   :  { %v559_v33 = vadd.f32 %v558_v30, %v557_v27  ;;  %v2439_v27 = vld [vmem:[%s3178_s2 + $0x20] sm:$0xff]  }
 0x41e   :  { %v560_v34 = vrot.slane %v559_v33, 2 }
 0x420   :  { %v561_v35 = vadd.f32 %v560_v34, %v559_v33  ;;  %v2442_v34 = vld [vmem:[%s3178_s2 + $0x38] sm:$0xff]  }
 0x422   :  { %v562_v36 = vrot.slane %v561_v35, 1 }
 0x424   :  { %v563_v37 = vadd.f32 %v562_v36, %v561_v35 }
 0x426   :  { %v564_v38 = vmul.f32 0.5, %v563_v37 }
 0x428   :  { %v565_v39 = vsub.f32 %v550_v26, %v564_v38  ;;  %v2438_v26 = vld [vmem:[%s3178_s2 + $0x18] sm:$0xff]   ;;  %v2443_v38 = vld [vmem:[%s3180_s3] sm:$0xff]  }
 0x429   :  { %2246 = vmatpush3.bf16.msra.mxu1 %v2443_v38 }
 0x42a   :  { %v566_v40 = vmul.f32 %v565_v39, %v565_v39  ;;  %2247 = vmatprep.subr.bf16.mxu1 %v2524_v0 }
 0x42c   :  { %v567_v42 = vsel %vm556_vm2, %v566_v40, 0.0  ;;  %v2445_v40 = vld [vmem:[%s3180_s3 + $0x10] sm:$0xff]  }
 0x42d   :  { %v568_v45 = vrot.slane %v567_v42, 4 }
 0x42f   :  { %v569_v48 = vadd.f32 %v568_v45, %v567_v42  ;;  %v2446_v42 = vld [vmem:[%s3180_s3 + $0x18] sm:$0xff]   ;;  %v2447_v45 = vld [vmem:[%s3180_s3 + $0x20] sm:$0xff]  }
 0x431   :  { %v570_v49 = vrot.slane %v569_v48, 2 }
 0x433   :  { %v571_v51 = vadd.f32 %v570_v49, %v569_v48  ;;  %v2448_v48 = vld [vmem:[%s3180_s3 + $0x28] sm:$0xff]   ;;  %v2449_v49 = vld [vmem:[%s3180_s3 + $0x30] sm:$0xff]  }
 0x435   :  { %v572_v52 = vrot.slane %v571_v51, 1 }
 0x437   :  { %v573_v53 = vadd.f32 %v572_v52, %v571_v51  ;;  %v2450_v51 = vld [vmem:[%s3180_s3 + $0x38] sm:$0xff]   ;;  %v2921_v52 = vld [vmem:[%s3186_s9] ss:$0 sm:$0xff] }
 0x438   :  { %v774_v54 = vpop.f32.mrb[8].mxu1 }
 0x439   :  { %v574_v55 = vmul.f32 0.5, %v573_v53  ;;  %v780_v56 = vsel %vm148_vm1, %v774_v54, 0.0  ;;  %v2223_v57 = vpop.f32.mrb[9].mxu1 }
 0x43a   :  { %v781_v58 = vrot.slane %v780_v56, 4  ;;  %v777_v59 = vpop.f32.mrb[10].mxu1 }
 0x43b   :  { %v575_v60 = vadd.f32 1e-05, %v574_v55  ;;  %v2224_v61 = vpop.f32.mrb[11].mxu1 }
 0x43c   :  { %v782_v62 = vadd.f32 %v781_v58, %v780_v56 }
 0x43d   :  { %2505 = vrsqrt.f32 %v575_v60 }
 0x43e   :  { %v783_v63 = vrot.slane %v782_v62, 2 }
 0x440   :  { %v784_v1 = vadd.f32 %v783_v63, %v782_v62 }
 0x442   :  { %v785_v2 = vrot.slane %v784_v1, 1 }
 0x444   :  { %v786_v4 = vadd.f32 %v785_v2, %v784_v1 }
 0x446   :  { %v787_v6 = vmul.f32 0.5, %v786_v4 }
 0x447   :  { %v2506_v7 = vpop.eup %2505 }
 0x448   :  { %v577_v8 = vmul.f32 %v2506_v7, %v565_v39  ;;  %v788_v10 = vsub.f32 %v774_v54, %v787_v6  ;;  %v2444_v39 = vld [vmem:[%s3180_s3 + $0x8] sm:$0xff]  }
 0x449   :  { %2248 = vmatpush3.bf16.msra.mxu1 %v2444_v39 }
 0x44a   :  { %v582_v11 = vmul.f32 %v2838_v5, %v577_v8  ;;  %v789_v12 = vmul.f32 %v788_v10, %v788_v10  ;;  %2249 = vmatprep.subr.bf16.mxu1 %v2524_v0 }
 0x44c   :  { %v587_v13 = vadd.f32 %v2842_v9, %v582_v11  ;;  %v790_v14 = vsel %vm148_vm1, %v789_v12, 0.0 }
 0x44d   :  { %v791_v15 = vrot.slane %v790_v14, 4  ;;  %2250 = vmatpush3.bf16.msra.mxu1 %v2445_v40 }
 0x44e   :  { %v588_v16 = vmax.f32 %v587_v13, 0.0  ;;  %2251 = vmatprep.subr.bf16.mxu1 %v2524_v0 }
 0x44f   :  { %v792_v17 = vadd.f32 %v791_v15, %v790_v14 }
 0x450   :  { %v597_v18 = vpack.c.bf16 %v588_v16, %v588_v16 }
 0x451   :  { %v793_v43 = vrot.slane %v792_v17, 2  ;;  %2252 = vmatpush3.bf16.msra.mxu1 %v2446_v42 }
 0x452   :  { %2202 = vmatmul.mubr.msk.bf16.vlgmr.msra.gmra.mrb[8].mxu0 %vm628_vm3, %v597_v18  ;;  %2253 = vmatprep.subr.bf16.mxu1 %v2524_v0 }
 0x453   :  { %v794_v46 = vadd.f32 %v793_v43, %v792_v17  ;;  %2226 = vmatpush3.bf16.msra.mxu0 %v2435_v44  ;;  %2241 = vmatprep.mubr.msk.bf16.mxu0 %vm2525_vm0, %v2524_v0 }
 0x454   :  { %2227 = vmatprep.subr.bf16.mxu0 %v2524_v0 }
 0x455   :  { %v795_v20 = vrot.slane %v794_v46, 1  ;;  %2254 = vmatpush3.bf16.msra.mxu1 %v2447_v45 }
 0x456   :  { %2255 = vmatprep.subr.bf16.mxu1 %v2524_v0 }
 0x457   :  { %v796_v21 = vadd.f32 %v795_v20, %v794_v46  ;;  %2228 = vmatpush3.bf16.msra.mxu0 %v2436_v19 }
 0x458   :  { %2229 = vmatprep.subr.bf16.mxu0 %v2524_v0 }
 0x459   :  { %v797_v23 = vmul.f32 0.5, %v796_v21  ;;  %2256 = vmatpush3.bf16.msra.mxu1 %v2448_v48 }
 0x45a   :  { %2257 = vmatprep.subr.bf16.mxu1 %v2524_v0 }
 0x45b   :  { %v798_v24 = vadd.f32 1e-05, %v797_v23  ;;  %2230 = vmatpush3.bf16.msra.mxu0 %v2437_v22  ;;  %v2451_v23 = vld [vmem:[%s3181_s4] sm:$0xff]  }
 0x45c   :  { %2231 = vmatprep.subr.bf16.mxu0 %v2524_v0 }
 0x45d   :  { %2507 = vrsqrt.f32 %v798_v24  ;;  %2258 = vmatpush3.bf16.msra.mxu1 %v2449_v49  ;;  %v2452_v24 = vld [vmem:[%s3181_s4 + $0x8] sm:$0xff]  }
 0x45e   :  { %2259 = vmatprep.subr.bf16.mxu1 %v2524_v0 }
 0x45f   :  { %2232 = vmatpush3.bf16.msra.mxu0 %v2438_v26  ;;  %v2453_v26 = vld [vmem:[%s3181_s4 + $0x10] sm:$0xff]  }
 0x460   :  { %2233 = vmatprep.subr.bf16.mxu0 %v2524_v0 }
 0x461   :  { %2260 = vmatpush3.bf16.msra.mxu1 %v2450_v51 }
 0x462   :  { %2285 = vmatprep.subr.bf16.mxu1 %v2524_v0 }
 0x463   :  { %2234 = vmatpush3.bf16.msra.mxu0 %v2439_v27  ;;  %v2454_v27 = vld [vmem:[%s3181_s4 + $0x18] sm:$0xff]  }
 0x464   :  { %2235 = vmatprep.subr.bf16.mxu0 %v2524_v0 }
 0x467   :  { %v2508_v30 = vpop.eup %2507  ;;  %2236 = vmatpush3.bf16.msra.mxu0 %v2440_v29  ;;  %v2455_v29 = vld [vmem:[%s3181_s4 + $0x20] sm:$0xff]  }
 0x468   :  { %v800_v32 = vmul.f32 %v2508_v30, %v788_v10  ;;  %2237 = vmatprep.subr.bf16.mxu0 %v2524_v0  ;;  %v2456_v30 = vld [vmem:[%s3181_s4 + $0x28] sm:$0xff]  }
 0x46a   :  { %v801_v33 = vmul.f32 %v800_v32, %v2675_v47  ;;  %v2458_v32 = vld [vmem:[%s3181_s4 + $0x38] sm:$0xff]  }
 0x46b   :  { %2238 = vmatpush3.bf16.msra.mxu0 %v2441_v31  ;;  %v2457_v31 = vld [vmem:[%s3181_s4 + $0x30] sm:$0xff]  }
 0x46c   :  { %v802_v35 = vadd.f32 %v801_v33, %v2680_v50  ;;  %2239 = vmatprep.subr.bf16.mxu0 %v2524_v0 }
 0x46e   :  { %v803_v36 = vmax.f32 %v802_v35, 0.0 }
 0x46f   :  { %2240 = vmatpush3.bf16.msra.mxu0 %v2442_v34 }
 0x470   :  { %v820_v37 = vpack.c.bf16 %v803_v36, %v803_v36  ;;  %2265 = vmatprep.subr.bf16.mxu0 %v2524_v0 }
 0x472   :  { %2242 = vmatmul.mubr.bf16.vlgmr.msra.gmra.mrb[12].mxu0 %v820_v37 }
 0x473   :  { %2281 = vmatprep.mubr.msk.bf16.mxu0 %vm2525_vm0, %v2524_v0  ;;  %2266 = vmatpush3.bf16.msra.mxu0 %v2451_v23 }
 0x474   :  { %2267 = vmatprep.subr.bf16.mxu0 %v2524_v0 }
 0x477   :  { %2268 = vmatpush3.bf16.msra.mxu0 %v2452_v24 }
 0x478   :  { %2269 = vmatprep.subr.bf16.mxu0 %v2524_v0 }
 0x47b   :  { %2270 = vmatpush3.bf16.msra.mxu0 %v2453_v26 }
 0x47c   :  { %2271 = vmatprep.subr.bf16.mxu0 %v2524_v0 }
 0x47f   :  { %2272 = vmatpush3.bf16.msra.mxu0 %v2454_v27 }
 0x480   :  { %2273 = vmatprep.subr.bf16.mxu0 %v2524_v0 }
 0x483   :  { %2274 = vmatpush3.bf16.msra.mxu0 %v2455_v29 }
 0x484   :  { %2275 = vmatprep.subr.bf16.mxu0 %v2524_v0 }
 0x487   :  { %2276 = vmatpush3.bf16.msra.mxu0 %v2456_v30 }
 0x488   :  { %2277 = vmatprep.subr.bf16.mxu0 %v2524_v0 }
 0x48b   :  { %2278 = vmatpush3.bf16.msra.mxu0 %v2457_v31 }
 0x48c   :  { %2279 = vmatprep.subr.bf16.mxu0 %v2524_v0 }
 0x48f   :  { %2280 = vmatpush3.bf16.msra.mxu0 %v2458_v32 }
 0x490   :  { %2297 = vmatprep.subr.bf16.mxu0 %v2524_v0 }
 0x525   :  { %v666_v53 = vpop.f32.mrb[8].mxu0 }
 0x526   :  { %v667_v54 = vadd.f32 %v2921_v52, %v666_v53  ;;  %v2203_v55 = vpop.f32.mrb[9].mxu0 }
 0x527   :  { %v669_v56 = vpop.f32.mrb[10].mxu0 }
 0x528   :  { %672 = vst [vmem:[%s3187_s11] sm:$0x3] %v667_v54  ;;  %v2204_v57 = vpop.f32.mrb[11].mxu0 }
 0x545   :  { %v903_v58 = vpop.f32.mrb[12].mxu0 }
 0x546   :  { %v909_v59 = vsel %vm148_vm1, %v903_v58, 0.0  ;;  %v2243_v60 = vpop.f32.mrb[13].mxu0 }
 0x547   :  { %v910_v61 = vrot.slane %v909_v59, 4  ;;  %v906_v62 = vpop.f32.mrb[14].mxu0 }
 0x548   :  { %v2244_v63 = vpop.f32.mrb[15].mxu0 }
 0x549   :  { %v911_v1 = vadd.f32 %v910_v61, %v909_v59 }
 0x54b   :  { %v912_v2 = vrot.slane %v911_v1, 2 }
 0x54d   :  { %v913_v3 = vadd.f32 %v912_v2, %v911_v1  ;;  %v2459_v2 = vld [vmem:[%s3176_s1] sm:$0xff]  }
 0x54f   :  { %v914_v4 = vrot.slane %v913_v3, 1 }
 0x551   :  { %v915_v6 = vadd.f32 %v914_v4, %v913_v3  ;;  %v2460_v4 = vld [vmem:[%s3176_s1 + $0x8] sm:$0xff]  }
 0x553   :  { %v916_v7 = vmul.f32 0.5, %v915_v6  ;;  %v2461_v6 = vld [vmem:[%s3176_s1 + $0x10] sm:$0xff]  }
 0x555   :  { %v917_v8 = vsub.f32 %v903_v58, %v916_v7  ;;  %v2462_v7 = vld [vmem:[%s3176_s1 + $0x18] sm:$0xff]  }
 0x557   :  { %v918_v10 = vmul.f32 %v917_v8, %v917_v8 }
 0x559   :  { %v919_v11 = vsel %vm148_vm1, %v918_v10, 0.0  ;;  %v2464_v10 = vld [vmem:[%s3176_s1 + $0x28] sm:$0xff]  }
 0x55a   :  { %v920_v12 = vrot.slane %v919_v11, 4 }
 0x55c   :  { %v921_v13 = vadd.f32 %v920_v12, %v919_v11  ;;  %v2465_v11 = vld [vmem:[%s3176_s1 + $0x30] sm:$0xff]   ;;  %v2466_v12 = vld [vmem:[%s3176_s1 + $0x38] sm:$0xff]  }
 0x55e   :  { %v922_v14 = vrot.slane %v921_v13, 2 }
 0x560   :  { %v923_v15 = vadd.f32 %v922_v14, %v921_v13  ;;  %v1950_v13 = vld [vmem:[%s3177_s0 + $0x4] sm:$0x3] }
 0x561   :  { %v1286_v14 = vpack.c.bf16 %v1950_v13, %v1950_v13 }
 0x562   :  { %v924_v16 = vrot.slane %v923_v15, 1 }
 0x564   :  { %v925_v17 = vadd.f32 %v924_v16, %v923_v15  ;;  %v2467_v15 = vld [vmem:[%s3184_s5] sm:$0xff]   ;;  %v2468_v16 = vld [vmem:[%s3184_s5 + $0x8] sm:$0xff]  }
 0x566   :  { %v926_v44 = vmul.f32 0.5, %v925_v17  ;;  %v2469_v17 = vld [vmem:[%s3184_s5 + $0x10] sm:$0xff]  }
 0x568   :  { %v927_v18 = vadd.f32 1e-05, %v926_v44  ;;  %v2470_v44 = vld [vmem:[%s3184_s5 + $0x18] sm:$0xff]  }
 0x56a   :  { %2509 = vrsqrt.f32 %v927_v18 }
 0x574   :  { %v2510_v43 = vpop.eup %2509 }
 0x575   :  { %v929_v46 = vmul.f32 %v2510_v43, %v917_v8  ;;  %v2463_v8 = vld [vmem:[%s3176_s1 + $0x20] sm:$0xff]  }
 0x577   :  { %v930_v19 = vmul.f32 %v929_v46, %v2723_v25 }
 0x579   :  { %v931_v20 = vadd.f32 %v930_v19, %v2726_v28 }
 0x57b   :  { %v932_v21 = vmax.f32 %v931_v20, 0.0 }
 0x57d   :  { %v949_v22 = vpack.c.bf16 %v932_v21, %v932_v21 }
 0x57f   :  { %2262 = vmatmul.mubr.bf16.vlgmr.msra.gmra.mrb[12].mxu1 %v949_v22 }
 0x580   :  { %2293 = vmatprep.mubr.msk.bf16.mxu1 %vm2525_vm0, %v2524_v0  ;;  %2286 = vmatpush3.bf16.msra.mxu1 %v2467_v15  ;;  %v2473_v15 = vld [vmem:[%s3178_s2 + $0x10] sm:$0xff]  }
 0x581   :  { %2287 = vmatprep.subr.bf16.mxu1 %v2524_v0 }
 0x584   :  { %2288 = vmatpush3.bf16.msra.mxu1 %v2468_v16 }
 0x585   :  { %2289 = vmatprep.subr.bf16.mxu1 %v2524_v0 }
 0x588   :  { %2290 = vmatpush3.bf16.msra.mxu1 %v2469_v17 }
 0x589   :  { %2291 = vmatprep.subr.bf16.mxu1 %v2524_v0 }
 0x58c   :  { %2292 = vmatpush3.bf16.msra.mxu1 %v2470_v44  ;;  %v2474_v44 = vld [vmem:[%s3178_s2 + $0x18] sm:$0xff]  }
 0x58d   :  { %2317 = vmatprep.subr.bf16.mxu1 %v2524_v0 }
 0x652   :  { %v1032_v33 = vpop.f32.mrb[12].mxu1 }
 0x653   :  { %v1033_v34 = vadd.f32 %v2767_v41, %v1032_v33  ;;  %v2263_v35 = vpop.f32.mrb[13].mxu1 }
 0x654   :  { %v1035_v36 = vpop.f32.mrb[14].mxu1 }
 0x655   :  { %v1038_v37 = vsel %vm148_vm1, %v1033_v34, 0.0  ;;  %v2264_v38 = vpop.f32.mrb[15].mxu1 }
 0x656   :  { %v1039_v39 = vrot.slane %v1038_v37, 4 }
 0x658   :  { %v1040_v40 = vadd.f32 %v1039_v39, %v1038_v37 }
 0x65a   :  { %v1041_v42 = vrot.slane %v1040_v40, 2 }
 0x65c   :  { %v1042_v45 = vadd.f32 %v1041_v42, %v1040_v40 }
 0x65e   :  { %v1043_v48 = vrot.slane %v1042_v45, 1 }
 0x660   :  { %v1044_v49 = vadd.f32 %v1043_v48, %v1042_v45 }
 0x662   :  { %v1045_v51 = vmul.f32 0.5, %v1044_v49 }
 0x664   :  { %v1046_v53 = vsub.f32 %v1033_v34, %v1045_v51 }
 0x666   :  { %v1047_v54 = vmul.f32 %v1046_v53, %v1046_v53 }
 0x668   :  { %v1048_v55 = vsel %vm148_vm1, %v1047_v54, 0.0 }
 0x669   :  { %v1049_v56 = vrot.slane %v1048_v55, 4 }
 0x66b   :  { %v1050_v57 = vadd.f32 %v1049_v56, %v1048_v55 }
 0x66d   :  { %v1051_v58 = vrot.slane %v1050_v57, 2 }
 0x66f   :  { %v1052_v41 = vadd.f32 %v1051_v58, %v1050_v57 }
 0x671   :  { %v1053_v59 = vrot.slane %v1052_v41, 1 }
 0x673   :  { %v1054_v60 = vadd.f32 %v1053_v59, %v1052_v41 }
 0x675   :  { %v1055_v61 = vmul.f32 0.5, %v1054_v60 }
 0x677   :  { %v1056_v62 = vadd.f32 1e-05, %v1055_v61 }
 0x679   :  { %2511 = vrsqrt.f32 %v1056_v62 }
 0x683   :  { %v2512_v63 = vpop.eup %2511 }
 0x684   :  { %v1058_v1 = vmul.f32 %v2512_v63, %v1046_v53 }
 0x686   :  { %1935 = vst [vmem:[%s3183_s10 + $0x2] sm:$0x3] %v1058_v1  ;;  %v1077_v3 = vpack.c.bf16 %v1058_v1, %v1058_v1 }
 0x688   :  { %2282 = vmatmul.mubr.bf16.vlgmr.msra.gmra.mrb[16].mxu0 %v1077_v3 }
 0x689   :  { %2298 = vmatpush3.bf16.msra.mxu0 %v2459_v2  ;;  %2313 = vmatprep.mubr.msk.bf16.mxu0 %vm2525_vm0, %v2524_v0 }
 0x68a   :  { %2299 = vmatprep.subr.bf16.mxu0 %v2524_v0 }
 0x68d   :  { %2300 = vmatpush3.bf16.msra.mxu0 %v2460_v4 }
 0x68e   :  { %2301 = vmatprep.subr.bf16.mxu0 %v2524_v0 }
 0x691   :  { %2302 = vmatpush3.bf16.msra.mxu0 %v2461_v6 }
 0x692   :  { %2303 = vmatprep.subr.bf16.mxu0 %v2524_v0 }
 0x695   :  { %2304 = vmatpush3.bf16.msra.mxu0 %v2462_v7  ;;  %v2471_v7 = vld [vmem:[%s3178_s2] sm:$0xff]  }
 0x696   :  { %2305 = vmatprep.subr.bf16.mxu0 %v2524_v0 }
 0x699   :  { %2306 = vmatpush3.bf16.msra.mxu0 %v2463_v8 }
 0x69a   :  { %2307 = vmatprep.subr.bf16.mxu0 %v2524_v0 }
 0x69d   :  { %2308 = vmatpush3.bf16.msra.mxu0 %v2464_v10 }
 0x69e   :  { %2309 = vmatprep.subr.bf16.mxu0 %v2524_v0 }
 0x6a1   :  { %2310 = vmatpush3.bf16.msra.mxu0 %v2465_v11 }
 0x6a2   :  { %2311 = vmatprep.subr.bf16.mxu0 %v2524_v0 }
 0x6a5   :  { %2312 = vmatpush3.bf16.msra.mxu0 %v2466_v12  ;;  %v2472_v12 = vld [vmem:[%s3178_s2 + $0x8] sm:$0xff]  }
 0x6a6   :  { %2337 = vmatprep.subr.bf16.mxu0 %v2524_v0 }
 0x6a8   :  { %2314 = vmatmul.mubr.bf16.vlgmr.msra.gmra.mrb[20].mxu0 %v1286_v14 }
 0x6a9   :  { %2353 = vmatprep.mubr.msk.bf16.mxu0 %vm2525_vm0, %v2524_v0 }
 0x75b   :  { %v1160_v18 = vpop.f32.mrb[16].mxu0 }
 0x75c   :  { %v1166_v43 = vsel %vm556_vm2, %v1160_v18, 0.0  ;;  %v2283_v46 = vpop.f32.mrb[17].mxu0 }
 0x75d   :  { %v1167_v19 = vrot.slane %v1166_v43, 4  ;;  %v1163_v20 = vpop.f32.mrb[18].mxu0 }
 0x75e   :  { %v2284_v21 = vpop.f32.mrb[19].mxu0 }
 0x75f   :  { %v1168_v22 = vadd.f32 %v1167_v19, %v1166_v43  ;;  %v2476_v43 = vld [vmem:[%s3178_s2 + $0x28] sm:$0xff]   ;;  %v2477_v19 = vld [vmem:[%s3178_s2 + $0x30] sm:$0xff]  }
 0x761   :  { %v1169_v23 = vrot.slane %v1168_v22, 2 }
 0x763   :  { %v1170_v24 = vadd.f32 %v1169_v23, %v1168_v22  ;;  %v2478_v22 = vld [vmem:[%s3178_s2 + $0x38] sm:$0xff]  }
 0x765   :  { %v1171_v26 = vrot.slane %v1170_v24, 1 }
 0x767   :  { %v1172_v27 = vadd.f32 %v1171_v26, %v1170_v24 }
 0x769   :  { %v1173_v29 = vmul.f32 0.5, %v1172_v27  ;;  %v2481_v27 = vld [vmem:[%s3180_s3 + $0x10] sm:$0xff]  }
 0x76b   :  { %v1174_v30 = vsub.f32 %v1160_v18, %v1173_v29  ;;  %v2475_v18 = vld [vmem:[%s3178_s2 + $0x20] sm:$0xff]   ;;  %v2482_v29 = vld [vmem:[%s3180_s3 + $0x18] sm:$0xff]  }
 0x76d   :  { %v1175_v31 = vmul.f32 %v1174_v30, %v1174_v30 }
 0x76f   :  { %v1176_v32 = vsel %vm556_vm2, %v1175_v31, 0.0  ;;  %v2484_v31 = vld [vmem:[%s3180_s3 + $0x28] sm:$0xff]  }
 0x770   :  { %v1177_v33 = vrot.slane %v1176_v32, 4 }
 0x772   :  { %v1178_v34 = vadd.f32 %v1177_v33, %v1176_v32  ;;  %v2485_v32 = vld [vmem:[%s3180_s3 + $0x30] sm:$0xff]   ;;  %v2486_v33 = vld [vmem:[%s3180_s3 + $0x38] sm:$0xff]  }
 0x774   :  { %v1179_v35 = vrot.slane %v1178_v34, 2 }
 0x776   :  { %v1180_v36 = vadd.f32 %v1179_v35, %v1178_v34 }
 0x778   :  { %v1181_v37 = vrot.slane %v1180_v36, 1 }
 0x77a   :  { %v1182_v38 = vadd.f32 %v1181_v37, %v1180_v36 }
 0x77b   :  { %v1369_v39 = vpop.f32.mrb[20].mxu0 }
 0x77c   :  { %v1183_v40 = vmul.f32 0.5, %v1182_v38  ;;  %v1375_v42 = vsel %vm148_vm1, %v1369_v39, 0.0  ;;  %v2315_v45 = vpop.f32.mrb[21].mxu0 }
 0x77d   :  { %v1376_v48 = vrot.slane %v1375_v42, 4  ;;  %v1372_v49 = vpop.f32.mrb[22].mxu0 }
 0x77e   :  { %v1184_v51 = vadd.f32 1e-05, %v1183_v40  ;;  %v2316_v53 = vpop.f32.mrb[23].mxu0 }
 0x77f   :  { %v1377_v54 = vadd.f32 %v1376_v48, %v1375_v42 }
 0x780   :  { %2513 = vrsqrt.f32 %v1184_v51 }
 0x781   :  { %v1378_v55 = vrot.slane %v1377_v54, 2 }
 0x783   :  { %v1379_v56 = vadd.f32 %v1378_v55, %v1377_v54 }
 0x785   :  { %v1380_v57 = vrot.slane %v1379_v56, 1 }
 0x787   :  { %v1381_v58 = vadd.f32 %v1380_v57, %v1379_v56 }
 0x789   :  { %v1382_v41 = vmul.f32 0.5, %v1381_v58 }
 0x78a   :  { %v2514_v59 = vpop.eup %2513 }
 0x78b   :  { %v1186_v60 = vmul.f32 %v2514_v59, %v1174_v30  ;;  %v1383_v61 = vsub.f32 %v1369_v39, %v1382_v41  ;;  %v2483_v30 = vld [vmem:[%s3180_s3 + $0x20] sm:$0xff]  }
 0x78d   :  { %v1187_v62 = vmul.f32 %v1186_v60, %v2838_v5  ;;  %v1384_v63 = vmul.f32 %v1383_v61, %v1383_v61 }
 0x78f   :  { %v1188_v1 = vadd.f32 %v1187_v62, %v2842_v9  ;;  %v1385_v2 = vsel %vm148_vm1, %v1384_v63, 0.0 }
 0x790   :  { %v1386_v3 = vrot.slane %v1385_v2, 4 }
 0x791   :  { %v1189_v4 = vmax.f32 %v1188_v1, 0.0 }
 0x792   :  { %v1387_v6 = vadd.f32 %v1386_v3, %v1385_v2 }
 0x793   :  { %v1198_v8 = vpack.c.bf16 %v1189_v4, %v1189_v4 }
 0x794   :  { %v1388_v10 = vrot.slane %v1387_v6, 2 }
 0x795   :  { %2294 = vmatmul.mubr.msk.bf16.vlgmr.msra.gmra.mrb[16].mxu1 %vm628_vm3, %v1198_v8 }
 0x796   :  { %v1389_v11 = vadd.f32 %v1388_v10, %v1387_v6  ;;  %2318 = vmatpush3.bf16.msra.mxu1 %v2471_v7  ;;  %2333 = vmatprep.mubr.msk.bf16.mxu1 %vm2525_vm0, %v2524_v0 }
 0x797   :  { %2319 = vmatprep.subr.bf16.mxu1 %v2524_v0 }
 0x798   :  { %v1390_v13 = vrot.slane %v1389_v11, 1 }
 0x79a   :  { %v1391_v14 = vadd.f32 %v1390_v13, %v1389_v11  ;;  %2320 = vmatpush3.bf16.msra.mxu1 %v2472_v12  ;;  %v2487_v13 = vld [vmem:[%s3181_s4] sm:$0xff]  }
 0x79b   :  { %2321 = vmatprep.subr.bf16.mxu1 %v2524_v0 }
 0x79c   :  { %v1392_v16 = vmul.f32 0.5, %v1391_v14  ;;  %v2488_v14 = vld [vmem:[%s3181_s4 + $0x8] sm:$0xff]  }
 0x79e   :  { %v1393_v17 = vadd.f32 1e-05, %v1392_v16  ;;  %2322 = vmatpush3.bf16.msra.mxu1 %v2473_v15  ;;  %v2491_v15 = vld [vmem:[%s3181_s4 + $0x20] sm:$0xff]   ;;  %v2492_v16 = vld [vmem:[%s3181_s4 + $0x28] sm:$0xff]  }
 0x79f   :  { %2323 = vmatprep.subr.bf16.mxu1 %v2524_v0 }
 0x7a0   :  { %2515 = vrsqrt.f32 %v1393_v17  ;;  %v2493_v17 = vld [vmem:[%s3181_s4 + $0x30] sm:$0xff]  }
 0x7a2   :  { %2324 = vmatpush3.bf16.msra.mxu1 %v2474_v44  ;;  %v2494_v44 = vld [vmem:[%s3181_s4 + $0x38] sm:$0xff]  }
 0x7a3   :  { %2325 = vmatprep.subr.bf16.mxu1 %v2524_v0 }
 0x7a6   :  { %2326 = vmatpush3.bf16.msra.mxu1 %v2475_v18 }
 0x7a7   :  { %2327 = vmatprep.subr.bf16.mxu1 %v2524_v0 }
 0x7aa   :  { %v2516_v46 = vpop.eup %2515  ;;  %2328 = vmatpush3.bf16.msra.mxu1 %v2476_v43  ;;  %v2523_v43 = vld [vmem:[%s3182_s7] ss:$0 sm:$0xff] }
 0x7ab   :  { %v1395_v20 = vmul.f32 %v2516_v46, %v1383_v61  ;;  %2329 = vmatprep.subr.bf16.mxu1 %v2524_v0 }
 0x7ad   :  { %v1396_v21 = vmul.f32 %v1395_v20, %v2675_v47  ;;  %v2479_v47 = vld [vmem:[%s3180_s3] sm:$0xff]  }
 0x7ae   :  { %2330 = vmatpush3.bf16.msra.mxu1 %v2477_v19  ;;  %2338 = vmatpush3.bf16.msra.mxu0 %v2479_v47 }
 0x7af   :  { %v1397_v23 = vadd.f32 %v1396_v21, %v2680_v50  ;;  %2331 = vmatprep.subr.bf16.mxu1 %v2524_v0  ;;  %2339 = vmatprep.subr.bf16.mxu0 %v2524_v0  ;;  %v2480_v50 = vld [vmem:[%s3180_s3 + $0x8] sm:$0xff]  }
 0x7b1   :  { %v1398_v24 = vmax.f32 %v1397_v23, 0.0 }
 0x7b2   :  { %2332 = vmatpush3.bf16.msra.mxu1 %v2478_v22  ;;  %2340 = vmatpush3.bf16.msra.mxu0 %v2480_v50 }
 0x7b3   :  { %v1415_v26 = vpack.c.bf16 %v1398_v24, %v1398_v24  ;;  %2357 = vmatprep.subr.bf16.mxu1 %v2524_v0  ;;  %2341 = vmatprep.subr.bf16.mxu0 %v2524_v0 }
 0x7b5   :  { %2334 = vmatmul.mubr.bf16.vlgmr.msra.gmra.mrb[20].mxu1 %v1415_v26 }
 0x7b6   :  { %2373 = vmatprep.mubr.msk.bf16.mxu1 %vm2525_vm0, %v2524_v0  ;;  %2342 = vmatpush3.bf16.msra.mxu0 %v2481_v27 }
 0x7b7   :  { %2343 = vmatprep.subr.bf16.mxu0 %v2524_v0  ;;  %2358 = vmatpush3.bf16.msra.mxu1 %v2487_v13 }
 0x7b8   :  { %2359 = vmatprep.subr.bf16.mxu1 %v2524_v0 }
 0x7ba   :  { %2344 = vmatpush3.bf16.msra.mxu0 %v2482_v29 }
 0x7bb   :  { %2345 = vmatprep.subr.bf16.mxu0 %v2524_v0  ;;  %2360 = vmatpush3.bf16.msra.mxu1 %v2488_v14 }
 0x7bc   :  { %2361 = vmatprep.subr.bf16.mxu1 %v2524_v0 }
 0x7be   :  { %2346 = vmatpush3.bf16.msra.mxu0 %v2483_v30 }
 0x7bf   :  { %2347 = vmatprep.subr.bf16.mxu0 %v2524_v0 }
 0x7c2   :  { %2348 = vmatpush3.bf16.msra.mxu0 %v2484_v31 }
 0x7c3   :  { %2349 = vmatprep.subr.bf16.mxu0 %v2524_v0 }
 0x7c6   :  { %2350 = vmatpush3.bf16.msra.mxu0 %v2485_v32 }
 0x7c7   :  { %2351 = vmatprep.subr.bf16.mxu0 %v2524_v0 }
 0x7ca   :  { %2352 = vmatpush3.bf16.msra.mxu0 %v2486_v33 }
 0x7cb   :  { %2377 = vmatprep.subr.bf16.mxu0 %v2524_v0 }
 0x868   :  { %v1260_v34 = vpop.f32.mrb[16].mxu1 }
 0x869   :  { %v1261_v35 = vadd.f32 %v2921_v52, %v1260_v34  ;;  %v2295_v36 = vpop.f32.mrb[17].mxu1 }
 0x86a   :  { %v1263_v37 = vpop.f32.mrb[18].mxu1 }
 0x86b   :  { %1949 = vst [vmem:[%s3187_s11 + $0x2] sm:$0x3] %v1261_v35  ;;  %v2296_v38 = vpop.f32.mrb[19].mxu1 }
 0x888   :  { %v1498_v39 = vpop.f32.mrb[20].mxu1 }
 0x889   :  { %v1504_v40 = vsel %vm148_vm1, %v1498_v39, 0.0  ;;  %v2335_v42 = vpop.f32.mrb[21].mxu1 }
 0x88a   :  { %v1505_v45 = vrot.slane %v1504_v40, 4  ;;  %v1501_v48 = vpop.f32.mrb[22].mxu1 }
 0x88b   :  { %v2336_v49 = vpop.f32.mrb[23].mxu1 }
 0x88c   :  { %v1506_v51 = vadd.f32 %v1505_v45, %v1504_v40  ;;  %v2495_v49 = vld [vmem:[%s3184_s5] sm:$0xff]  }
 0x88e   :  { %v1507_v53 = vrot.slane %v1506_v51, 2 }
 0x890   :  { %v1508_v54 = vadd.f32 %v1507_v53, %v1506_v51  ;;  %v2496_v51 = vld [vmem:[%s3184_s5 + $0x8] sm:$0xff]   ;;  %v2497_v53 = vld [vmem:[%s3184_s5 + $0x10] sm:$0xff]  }
 0x892   :  { %v1509_v55 = vrot.slane %v1508_v54, 1 }
 0x894   :  { %v1510_v56 = vadd.f32 %v1509_v55, %v1508_v54  ;;  %v2498_v54 = vld [vmem:[%s3184_s5 + $0x18] sm:$0xff]  }
 0x896   :  { %v1511_v57 = vmul.f32 0.5, %v1510_v56 }
 0x898   :  { %v1512_v58 = vsub.f32 %v1498_v39, %v1511_v57 }
 0x89a   :  { %v1513_v41 = vmul.f32 %v1512_v58, %v1512_v58 }
 0x89c   :  { %v1514_v59 = vsel %vm148_vm1, %v1513_v41, 0.0 }
 0x89d   :  { %v1515_v60 = vrot.slane %v1514_v59, 4 }
 0x89f   :  { %v1516_v61 = vadd.f32 %v1515_v60, %v1514_v59 }
 0x8a1   :  { %v1517_v62 = vrot.slane %v1516_v61, 2 }
 0x8a3   :  { %v1518_v63 = vadd.f32 %v1517_v62, %v1516_v61 }
 0x8a5   :  { %v1519_v1 = vrot.slane %v1518_v63, 1 }
 0x8a7   :  { %v1520_v2 = vadd.f32 %v1519_v1, %v1518_v63 }
 0x8a9   :  { %v1521_v3 = vmul.f32 0.5, %v1520_v2 }
 0x8ab   :  { %v1522_v4 = vadd.f32 1e-05, %v1521_v3 }
 0x8ad   :  { %2517 = vrsqrt.f32 %v1522_v4 }
 0x8b7   :  { %v2518_v6 = vpop.eup %2517 }
 0x8b8   :  { %v1524_v7 = vmul.f32 %v2518_v6, %v1512_v58 }
 0x8ba   :  { %v1525_v8 = vmul.f32 %v1524_v7, %v2723_v25  ;;  %v2489_v25 = vld [vmem:[%s3181_s4 + $0x10] sm:$0xff]  }
 0x8bb   :  { %2362 = vmatpush3.bf16.msra.mxu1 %v2489_v25 }
 0x8bc   :  { %v1526_v10 = vadd.f32 %v1525_v8, %v2726_v28  ;;  %2363 = vmatprep.subr.bf16.mxu1 %v2524_v0  ;;  %v2490_v28 = vld [vmem:[%s3181_s4 + $0x18] sm:$0xff]  }
 0x8be   :  { %v1527_v11 = vmax.f32 %v1526_v10, 0.0 }
 0x8bf   :  { %2364 = vmatpush3.bf16.msra.mxu1 %v2490_v28 }
 0x8c0   :  { %v1544_v12 = vpack.c.bf16 %v1527_v11, %v1527_v11  ;;  %2365 = vmatprep.subr.bf16.mxu1 %v2524_v0 }
 0x8c2   :  { %2354 = vmatmul.mubr.bf16.vlgmr.msra.gmra.mrb[24].mxu0 %v1544_v12 }
 0x8c3   :  { %2385 = vmatprep.mubr.msk.bf16.mxu0 %vm2525_vm0, %v2524_v0  ;;  %2366 = vmatpush3.bf16.msra.mxu1 %v2491_v15 }
 0x8c4   :  { %2367 = vmatprep.subr.bf16.mxu1 %v2524_v0  ;;  %2378 = vmatpush3.bf16.msra.mxu0 %v2495_v49 }
 0x8c5   :  { %2379 = vmatprep.subr.bf16.mxu0 %v2524_v0 }
 0x8c7   :  { %2368 = vmatpush3.bf16.msra.mxu1 %v2492_v16 }
 0x8c8   :  { %2369 = vmatprep.subr.bf16.mxu1 %v2524_v0  ;;  %2380 = vmatpush3.bf16.msra.mxu0 %v2496_v51 }
 0x8c9   :  { %2381 = vmatprep.subr.bf16.mxu0 %v2524_v0 }
 0x8cb   :  { %2370 = vmatpush3.bf16.msra.mxu1 %v2493_v17 }
 0x8cc   :  { %2371 = vmatprep.subr.bf16.mxu1 %v2524_v0  ;;  %2382 = vmatpush3.bf16.msra.mxu0 %v2497_v53 }
 0x8cd   :  { %2383 = vmatprep.subr.bf16.mxu0 %v2524_v0 }
 0x8cf   :  { %2372 = vmatpush3.bf16.msra.mxu1 %v2494_v44 }
 0x8d0   :  { %2384 = vmatpush3.bf16.msra.mxu0 %v2498_v54 }
 0x995   :  { %v1627_v18 = vpop.f32.mrb[24].mxu0 }
 0x996   :  { %v1628_v46 = vadd.f32 %v2523_v43, %v1627_v18  ;;  %v2355_v19 = vpop.f32.mrb[25].mxu0 }
 0x997   :  { %v1630_v20 = vpop.f32.mrb[26].mxu0 }
 0x998   :  { %v1633_v21 = vsel %vm148_vm1, %v1628_v46, 0.0  ;;  %v2356_v22 = vpop.f32.mrb[27].mxu0 }
 0x999   :  { %v1634_v23 = vrot.slane %v1633_v21, 4 }
 0x99b   :  { %v1635_v24 = vadd.f32 %v1634_v23, %v1633_v21 }
 0x99d   :  { %v1636_v26 = vrot.slane %v1635_v24, 2 }
 0x99f   :  { %v1637_v47 = vadd.f32 %v1636_v26, %v1635_v24 }
 0x9a1   :  { %v1638_v50 = vrot.slane %v1637_v47, 1 }
 0x9a3   :  { %v1639_v27 = vadd.f32 %v1638_v50, %v1637_v47 }
 0x9a5   :  { %v1640_v29 = vmul.f32 0.5, %v1639_v27 }
 0x9a7   :  { %v1641_v30 = vsub.f32 %v1628_v46, %v1640_v29 }
 0x9a9   :  { %v1642_v31 = vmul.f32 %v1641_v30, %v1641_v30 }
 0x9ab   :  { %v1643_v32 = vsel %vm148_vm1, %v1642_v31, 0.0 }
 0x9ac   :  { %v1644_v33 = vrot.slane %v1643_v32, 4 }
 0x9ae   :  { %v1645_v34 = vadd.f32 %v1644_v33, %v1643_v32 }
 0x9b0   :  { %v1646_v35 = vrot.slane %v1645_v34, 2 }
 0x9b2   :  { %v1647_v36 = vadd.f32 %v1646_v35, %v1645_v34 }
 0x9b4   :  { %v1648_v37 = vrot.slane %v1647_v36, 1 }
 0x9b6   :  { %v1649_v38 = vadd.f32 %v1648_v37, %v1647_v36 }
 0x9b8   :  { %v1650_v39 = vmul.f32 0.5, %v1649_v38 }
 0x9ba   :  { %v1651_v40 = vadd.f32 1e-05, %v1650_v39 }
 0x9bc   :  { %2519 = vrsqrt.f32 %v1651_v40 }
 0x9c6   :  { %v2520_v42 = vpop.eup %2519 }
 0x9c7   :  { %v1653_v45 = vmul.f32 %v2520_v42, %v1641_v30 }
 0x9c9   :  { %1975 = vst [vmem:[%s3183_s10 + $0x4] sm:$0x3] %v1653_v45  ;;  %v1672_v48 = vpack.c.bf16 %v1653_v45, %v1653_v45 }
 0x9cb   :  { %2374 = vmatmul.mubr.bf16.vlgmr.msra.gmra.mrb[24].mxu1 %v1672_v48 }
 0xa9e   :  { %v1755_v55 = vpop.f32.mrb[24].mxu1 }
 0xa9f   :  { %v1761_v56 = vsel %vm556_vm2, %v1755_v55, 0.0  ;;  %v2375_v57 = vpop.f32.mrb[25].mxu1 }
 0xaa0   :  { %v1762_v58 = vrot.slane %v1761_v56, 4  ;;  %v1758_v41 = vpop.f32.mrb[26].mxu1 }
 0xaa1   :  { %v2376_v59 = vpop.f32.mrb[27].mxu1 }
 0xaa2   :  { %v1763_v60 = vadd.f32 %v1762_v58, %v1761_v56 }
 0xaa4   :  { %v1764_v61 = vrot.slane %v1763_v60, 2 }
 0xaa6   :  { %v1765_v62 = vadd.f32 %v1764_v61, %v1763_v60 }
 0xaa8   :  { %v1766_v63 = vrot.slane %v1765_v62, 1 }
 0xaaa   :  { %v1767_v1 = vadd.f32 %v1766_v63, %v1765_v62 }
 0xaac   :  { %v1768_v2 = vmul.f32 0.5, %v1767_v1 }
 0xaae   :  { %v1769_v3 = vsub.f32 %v1755_v55, %v1768_v2 }
 0xab0   :  { %v1770_v0 = vmul.f32 %v1769_v3, %v1769_v3 }
 0xab2   :  { %v1771_v4 = vsel %vm556_vm2, %v1770_v0, 0.0 }
 0xab3   :  { %v1772_v6 = vrot.slane %v1771_v4, 4 }
 0xab5   :  { %v1773_v7 = vadd.f32 %v1772_v6, %v1771_v4 }
 0xab7   :  { %v1774_v8 = vrot.slane %v1773_v7, 2 }
 0xab9   :  { %v1775_v10 = vadd.f32 %v1774_v8, %v1773_v7 }
 0xabb   :  { %v1776_v11 = vrot.slane %v1775_v10, 1 }
 0xabd   :  { %v1777_v12 = vadd.f32 %v1776_v11, %v1775_v10 }
 0xabf   :  { %v1778_v13 = vmul.f32 0.5, %v1777_v12 }
 0xac1   :  { %v1779_v14 = vadd.f32 1e-05, %v1778_v13 }
 0xac3   :  { %2521 = vrsqrt.f32 %v1779_v14 }
 0xacd   :  { %v2522_v25 = vpop.eup %2521 }
 0xace   :  { %v1781_v28 = vmul.f32 %v2522_v25, %v1769_v3 }
 0xad0   :  { %v1782_v15 = vmul.f32 %v1781_v28, %v2838_v5 }
 0xad2   :  { %v1783_v16 = vadd.f32 %v1782_v15, %v2842_v9 }
 0xad4   :  { %v1784_v17 = vmax.f32 %v1783_v16, 0.0 }
 0xad6   :  { %v1793_v44 = vpack.c.bf16 %v1784_v17, %v1784_v17 }
 0xad8   :  { %2386 = vmatmul.mubr.msk.bf16.vlgmr.msra.gmra.mrb[28].mxu0 %vm628_vm3, %v1793_v44 }
 0xbab   :  { %v1855_v18 = vpop.f32.mrb[28].mxu0 }
 0xbac   :  { %v1856_v43 = vadd.f32 %v2921_v52, %v1855_v18  ;;  %v2387_v46 = vpop.f32.mrb[29].mxu0 }
 0xbad   :  { %v1858_v19 = vpop.f32.mrb[30].mxu0 }
 0xbae   :  { %1989 = vst [vmem:[%s3187_s11 + $0x4] sm:$0x3] %v1856_v43  ;;  %v2388_v20 = vpop.f32.mrb[31].mxu0 }

</bundles_post_ra>
